<compile_context>
chip_gen: v5e
topology: v5e:2x2
jax: 0.10.0
libtpu: 0.0.40
codegen_flags: <defaults>
</compile_context>

<pallas_src>
import jax
import jax.numpy as jnp
from jax.experimental import pallas as pl
from jax.experimental.pallas import tpu as pltpu


# ---------------------------------------------------------------------------
# Kernel A: tiled  h2 = relu(x @ W_fused + b_fused)
#   grid = (N_pad // tn, K_pad // tk);  n parallel, k arbitrary (reduction,
#   innermost).  The output block is the accumulator (its index_map ignores k).
# ---------------------------------------------------------------------------
def _backbone_matmul_kernel(x_ref, w_ref, b_ref, h_ref):
    k = pl.program_id(1)

    @pl.when(k == 0)
    def _():
        h_ref[...] = jnp.zeros_like(h_ref)

    # bf16 x bf16 -> f32 accumulate on the MXU (both operands pre-cast in HBM).
    h_ref[...] += jnp.dot(
        x_ref[...], w_ref[...], preferred_element_type=jnp.float32
    )

    @pl.when(k == pl.num_programs(1) - 1)
    def _():
        h_ref[...] = jnp.maximum(h_ref[...] + b_ref[...], 0.0)


# ---------------------------------------------------------------------------
# Kernel B: out_layer  out = h2 @ W_out + b_out   (tiny, fully VMEM-resident)
# ---------------------------------------------------------------------------
def _out_layer_kernel(h_ref, w_ref, b_ref, o_ref):
    o_ref[...] = (
        jnp.dot(h_ref[...], w_ref[...], preferred_element_type=jnp.float32)
        + b_ref[...]
    )


# ---------------------------------------------------------------------------
# Tile selection (static, per TPU generation).
# ---------------------------------------------------------------------------
def _select_tiles(K, N):
    try:
        kind = jax.devices()[0].device_kind.lower()
    except Exception:  # pragma: no cover - conservative fallback
        kind = ""
    two_tc = ("v7" in kind) or ("7x" in kind)

    k_round = pl.cdiv(K, 128) * 128
    n_round = pl.cdiv(N, 128) * 128

    # Weight streaming dominates: big K tiles amortize the ~0.35us/step cost.
    tk = min(4096, k_round)
    if two_tc:
        # Keep >= 2 parallel N tiles so both TensorCores stream half the
        # weight columns (N=1000 -> N_pad=1024 -> two 512-wide tiles).
        tn = min(512, n_round)
    else:
        # Single TC: collapse the N grid (x streamed once, lane-dense store).
        tn = min(1024, n_round)
    return tk, tn


# ---------------------------------------------------------------------------
# One-time weight preparation (kept OFF the per-inference path).
# ---------------------------------------------------------------------------
def prepare_params(params, num_classes):
    """Fuse the 1x1 conv into the backbone weight, pad to tile boundaries,
    cast the streamed weight to bf16.  Call once; reuse the result."""
    wcc, bcc, wbb, bbb, wout, bout = params
    C = wcc.shape[0]
    feat = wbb.shape[0]          # 3*H*W
    HW = feat // 3
    N = wbb.shape[1]             # 1000 backbone features
    K = C * HW                   # fused contraction dim (NCHW flatten order)
    NC = num_classes

    tk, tn = _select_tiles(K, N)
    K_pad = pl.cdiv(K, tk) * tk
    N_pad = pl.cdiv(N, tn) * tn
    NC_pad = pl.cdiv(NC, 128) * 128

    # Fold the 1x1 conv into the backbone weight, in NCHW-flatten order so the
    # kernel needs no input transpose and no tiny N=3 matmul:
    #   W_fused[c*H*W + s, m] = sum_j wcc[c,j] * wbb[s*3+j, m]
    #   b_fused[m]            = bbb[m] + sum_{s,j} bcc[j] * wbb[s*3+j, m]
    wbb_r = wbb.reshape(HW, 3, N)
    w_fused = jnp.einsum("cj,sjm->csm", wcc, wbb_r).reshape(K, N)
    b_fused = bbb + jnp.einsum("j,sjm->m", bcc[0], wbb_r)[None, :]

    w_p = jnp.pad(w_fused, ((0, K_pad - K), (0, N_pad - N))).astype(jnp.bfloat16)
    b_p = jnp.pad(b_fused, ((0, 0), (0, N_pad - N)))
    wout_p = jnp.pad(wout, ((0, N_pad - N), (0, NC_pad - NC)))
    bout_p = jnp.pad(bout, ((0, 0), (0, NC_pad - NC)))

    weights = (w_p, b_p, wout_p, bout_p)
    meta = dict(K=K, K_pad=K_pad, N_pad=N_pad, NC=NC, NC_pad=NC_pad, tk=tk, tn=tn)
    return weights, meta


def make_classification_forward(params, num_classes):
    """Returns a jitted forward(x_nchw) closure over cached prepared weights."""
    (w_p, b_p, wout_p, bout_p), meta = prepare_params(params, num_classes)
    K, K_pad = meta["K"], meta["K_pad"]
    N_pad, NC, NC_pad = meta["N_pad"], meta["NC"], meta["NC_pad"]
    tk, tn = meta["tk"], meta["tn"]

    @jax.jit
    def _forward(x_nchw, w_p, b_p, wout_p, bout_p):
        B = x_nchw.shape[0]
        x_flat = x_nchw.reshape(B, K)                  # NCHW flatten, no transpose
        # Pre-cast activations to bf16 here (removes per-step VPU cast).
        x_p = jnp.pad(x_flat, ((0, 0), (0, K_pad - K))).astype(jnp.bfloat16)

        # --- fused conv + backbone matmul (tiled, pipelined) -----------------
        h2 = pl.pallas_call(
            _backbone_matmul_kernel,
            out_shape=jax.ShapeDtypeStruct((B, N_pad), jnp.float32),
            grid_spec=pltpu.PrefetchScalarGridSpec(
                num_scalar_prefetch=0,
                grid=(N_pad // tn, K_pad // tk),
                in_specs=[
                    pl.BlockSpec((B, tk), lambda n, k: (0, k)),   # bf16 activations
                    pl.BlockSpec((tk, tn), lambda n, k: (k, n)),  # bf16 fused weight
                    pl.BlockSpec((1, tn), lambda n, k: (0, n)),   # f32 fused bias
                ],
                out_specs=pl.BlockSpec((B, tn), lambda n, k: (0, n)),
            ),
            compiler_params=pltpu.CompilerParams(
                dimension_semantics=("parallel", "arbitrary"),
                vmem_limit_bytes=48 * 1024 * 1024,  # > worst-case 16 MiB weight dbuf
            ),
        )(x_p, w_p, b_p)

        # --- out_layer: Linear(1000 -> num_classes), lane-padded output ------
        vmem = pl.BlockSpec(memory_space=pltpu.MemorySpace.VMEM)
        out_padded = pl.pallas_call(
            _out_layer_kernel,
            out_shape=jax.ShapeDtypeStruct((B, NC_pad), jnp.float32),
            in_specs=[vmem, vmem, vmem],
            out_specs=vmem,
        )(h2, wout_p, bout_p)

        return out_padded[:, :NC]

    def forward(x_nchw):
        return _forward(x_nchw, w_p, b_p, wout_p, bout_p)

    return forward


# ---------------------------------------------------------------------------
# Synthetic parameters and pure-JAX reference (original unfused f32 semantics).
# ---------------------------------------------------------------------------
def init_params(key, in_channels, H, W, num_classes):
    """Deterministic synthetic parameters (PyTorch-like uniform fan-in scaling)."""
    k_cc, k_bb, k_out = jax.random.split(key, 3)
    feat_dim = 3 * H * W

    def uniform(k, shape, fan_in):
        bound = 1.0 / jnp.sqrt(jnp.float32(fan_in))
        return jax.random.uniform(k, shape, jnp.float32, -bound, bound)

    # channel_corrector: Conv2d(in_channels, 3, 1) -> weight used as [C_in, 3]
    wcc = uniform(k_cc, (in_channels, 3), in_channels)
    bcc = uniform(jax.random.fold_in(k_cc, 1), (1, 3), in_channels)
    # synthetic backbone: Linear(3*H*W, 1000)
    wbb = uniform(k_bb, (feat_dim, 1000), feat_dim)
    bbb = uniform(jax.random.fold_in(k_bb, 1), (1, 1000), feat_dim)
    # out_layer: Linear(1000, num_classes)
    wout = uniform(k_out, (1000, num_classes), 1000)
    bout = uniform(jax.random.fold_in(k_out, 1), (1, num_classes), 1000)
    return (wcc, bcc, wbb, bbb, wout, bout)


def reference_forward(x_nchw, params):
    wcc, bcc, wbb, bbb, wout, bout = params
    B, C, H, W = x_nchw.shape
    x_nhwc = jnp.transpose(x_nchw, (0, 2, 3, 1)).reshape(B * H * W, C)
    h1 = x_nhwc @ wcc + bcc                     # 1x1 conv
    feat = h1.reshape(B, 3 * H * W)             # flatten
    h2 = jnp.maximum(feat @ wbb + bbb, 0.0)     # synthetic backbone
    return h2 @ wout + bout                     # out_layer


if __name__ == "__main__":
    B, C_in, H, W = 2, 4, 16, 16
    NUM_CLASSES = 10

    key = jax.random.PRNGKey(0)
    k_x, k_p = jax.random.split(key)
    x = jax.random.normal(k_x, (B, C_in, H, W), jnp.float32)
    params = init_params(k_p, C_in, H, W, NUM_CLASSES)

    # One-time prep (fusion + padding + bf16 cast) -- off the per-call path.
    forward = make_classification_forward(params, NUM_CLASSES)

    out = jax.block_until_ready(forward(x))     # compile + run
    out = jax.block_until_ready(forward(x))     # steady-state call reuses cached weights

    ref = reference_forward(x, params)
    assert out.shape == (B, NUM_CLASSES)
    # bf16 weight/activation quantization of the dominant matmul -> loose tol.
    assert jnp.allclose(out, ref, atol=3e-2, rtol=3e-2), "mismatch vs JAX reference"

    print("KERNEL_OK")
</pallas_src>

<mosaic_0001>
module attributes {stable_mosaic.version = 11 : i64} {
  func.func @_backbone_matmul_kernel(%arg0: i32, %arg1: i32, %arg2: memref<2x1024xbf16, #tpu.memory_space<vmem>>, %arg3: memref<1024x1024xbf16, #tpu.memory_space<vmem>>, %arg4: memref<1x1024xf32, #tpu.memory_space<vmem>>, %arg5: memref<2x1024xf32, #tpu.memory_space<vmem>>) attributes {dimension_semantics = [#tpu.dimension_semantics<parallel>, #tpu.dimension_semantics<arbitrary>], iteration_bounds = array<i64: 1, 1>, scalar_prefetch = 0 : i64, scratch_operands = 0 : i64, tpu.core_type = #tpu.core_type<tc>, window_params = [{transform_indices = @transform_0, window_bounds = array<i64: 2, 1024>}, {transform_indices = @transform_1, window_bounds = array<i64: 1024, 1024>}, {transform_indices = @transform_2, window_bounds = array<i64: 1, 1024>}, {transform_indices = @transform_3, window_bounds = array<i64: 2, 1024>}]} {
    %c0_i32 = arith.constant 0 : i32
    %0 = arith.cmpi eq, %arg1, %c0_i32 : i32
    %1 = arith.extui %0 : i1 to i32
    %c0_i32_0 = arith.constant 0 : i32
    %2 = arith.cmpi ne, %1, %c0_i32_0 : i32
    scf.if %2 {
      %cst_10 = arith.constant 0.000000e+00 : f32
      %12 = vector.broadcast %cst_10 : f32 to vector<2x1024xf32>
      %c0_11 = arith.constant 0 : index
      %c0_12 = arith.constant 0 : index
      %13 = vector.load %arg5[%c0_11, %c0_12] : memref<2x1024xf32, #tpu.memory_space<vmem>>, vector<2x1024xf32>
      tpu.vector_store %arg5[%c0_11, %c0_12], %12 {strides = array<i32>} : memref<2x1024xf32, #tpu.memory_space<vmem>>, vector<2x1024xf32>,
    } else {
    }
    %c0 = arith.constant 0 : index
    %c0_1 = arith.constant 0 : index
    %3 = vector.load %arg5[%c0, %c0_1] : memref<2x1024xf32, #tpu.memory_space<vmem>>, vector<2x1024xf32>
    %c0_2 = arith.constant 0 : index
    %c0_3 = arith.constant 0 : index
    %4 = vector.load %arg2[%c0_2, %c0_3] : memref<2x1024xbf16, #tpu.memory_space<vmem>>, vector<2x1024xbf16>
    %c0_4 = arith.constant 0 : index
    %c0_5 = arith.constant 0 : index
    %5 = vector.load %arg3[%c0_4, %c0_5] : memref<1024x1024xbf16, #tpu.memory_space<vmem>>, vector<1024x1024xbf16>
    %cst = arith.constant dense<0.000000e+00> : vector<2x1024xf32>
    %6 = tpu.matmul %4, %5, %cst {dimension_numbers = #tpu.dot_dimension_numbers<[1], [0], [0], [1], [0, 0, 1, 1], [], []>} : vector<2x1024xbf16>, vector<1024x1024xbf16>, vector<2x1024xf32> -> vector<2x1024xf32>
    %7 = arith.addf %3, %6 : vector<2x1024xf32>
    %c0_6 = arith.constant 0 : index
    %c0_7 = arith.constant 0 : index
    %8 = vector.load %arg5[%c0_6, %c0_7] : memref<2x1024xf32, #tpu.memory_space<vmem>>, vector<2x1024xf32>
    tpu.vector_store %arg5[%c0_6, %c0_7], %7 {strides = array<i32>} : memref<2x1024xf32, #tpu.memory_space<vmem>>, vector<2x1024xf32>,
    %c0_i32_8 = arith.constant 0 : i32
    %9 = arith.cmpi eq, %arg1, %c0_i32_8 : i32
    %10 = arith.extui %9 : i1 to i32
    %c0_i32_9 = arith.constant 0 : i32
    %11 = arith.cmpi ne, %10, %c0_i32_9 : i32
    scf.if %11 {
      %c0_10 = arith.constant 0 : index
      %c0_11 = arith.constant 0 : index
      %12 = vector.load %arg5[%c0_10, %c0_11] : memref<2x1024xf32, #tpu.memory_space<vmem>>, vector<2x1024xf32>
      %c0_12 = arith.constant 0 : index
      %c0_13 = arith.constant 0 : index
      %13 = vector.load %arg4[%c0_12, %c0_13] : memref<1x1024xf32, #tpu.memory_space<vmem>>, vector<1x1024xf32>
      %14 = vector.broadcast %13 : vector<1x1024xf32> to vector<2x1024xf32>
      %15 = arith.addf %12, %14 : vector<2x1024xf32>
      %cst_14 = arith.constant 0.000000e+00 : f32
      %16 = vector.broadcast %cst_14 : f32 to vector<2x1024xf32>
      %17 = arith.maximumf %15, %16 : vector<2x1024xf32>
      %c0_15 = arith.constant 0 : index
      %c0_16 = arith.constant 0 : index
      %18 = vector.load %arg5[%c0_15, %c0_16] : memref<2x1024xf32, #tpu.memory_space<vmem>>, vector<2x1024xf32>
      tpu.vector_store %arg5[%c0_15, %c0_16], %17 {strides = array<i32>} : memref<2x1024xf32, #tpu.memory_space<vmem>>, vector<2x1024xf32>,
    } else {
    }
    return
  }
  func.func @transform_0(%arg0: i32, %arg1: i32) -> (i32, i32) {
    %c0_i32 = arith.constant 0 : i32
    %c0_i32_0 = arith.constant 0 : i32
    return %c0_i32, %arg1 : i32, i32
  }
  func.func @transform_1(%arg0: i32, %arg1: i32) -> (i32, i32) {
    %c0_i32 = arith.constant 0 : i32
    return %arg1, %arg0 : i32, i32
  }
  func.func @transform_2(%arg0: i32, %arg1: i32) -> (i32, i32) {
    %c0_i32 = arith.constant 0 : i32
    %c0_i32_0 = arith.constant 0 : i32
    return %c0_i32, %arg0 : i32, i32
  }
  func.func @transform_3(%arg0: i32, %arg1: i32) -> (i32, i32) {
    %c0_i32 = arith.constant 0 : i32
    %c0_i32_0 = arith.constant 0 : i32
    return %c0_i32, %arg0 : i32, i32
  }
}

module attributes {stable_mosaic.version = 11 : i64} {
  func.func @_out_layer_kernel(%arg0: memref<2x1024xf32, #tpu.memory_space<vmem>>, %arg1: memref<1024x128xf32, #tpu.memory_space<vmem>>, %arg2: memref<1x128xf32, #tpu.memory_space<vmem>>, %arg3: memref<2x128xf32, #tpu.memory_space<vmem>>) attributes {dimension_semantics = [], scalar_prefetch = 0 : i64, scratch_operands = 0 : i64, tpu.core_type = #tpu.core_type<tc>} {
    %c0 = arith.constant 0 : index
    %c0_0 = arith.constant 0 : index
    %0 = vector.load %arg0[%c0, %c0_0] : memref<2x1024xf32, #tpu.memory_space<vmem>>, vector<2x1024xf32>
    %c0_1 = arith.constant 0 : index
    %c0_2 = arith.constant 0 : index
    %1 = vector.load %arg1[%c0_1, %c0_2] : memref<1024x128xf32, #tpu.memory_space<vmem>>, vector<1024x128xf32>
    %cst = arith.constant dense<0.000000e+00> : vector<2x128xf32>
    %2 = tpu.matmul %0, %1, %cst {dimension_numbers = #tpu.dot_dimension_numbers<[1], [0], [0], [1], [0, 0, 1, 1], [], []>} : vector<2x1024xf32>, vector<1024x128xf32>, vector<2x128xf32> -> vector<2x128xf32>
    %c0_3 = arith.constant 0 : index
    %c0_4 = arith.constant 0 : index
    %3 = vector.load %arg2[%c0_3, %c0_4] : memref<1x128xf32, #tpu.memory_space<vmem>>, vector<1x128xf32>
    %4 = vector.broadcast %3 : vector<1x128xf32> to vector<2x128xf32>
    %5 = arith.addf %2, %4 : vector<2x128xf32>
    %c0_5 = arith.constant 0 : index
    %c0_6 = arith.constant 0 : index
    %6 = vector.load %arg3[%c0_5, %c0_6] : memref<2x128xf32, #tpu.memory_space<vmem>>, vector<2x128xf32>
    tpu.vector_store %arg3[%c0_5, %c0_6], %5 {strides = array<i32>} : memref<2x128xf32, #tpu.memory_space<vmem>>, vector<2x128xf32>,
    return
  }
}

</mosaic_0001>

<bundles_post_ra>
// kernel: _forward.3
= control target key start
LH: loop header
LB: loop body
LE: loop exit
PB: predicated region body
PF: predicated region fallthrough
CT: control target
= control target key end

     0   :  { %8 = vsyncpa [#allocation3], 0  ;;  %s503_s0 = inlined_call_operand.vmem [shape: f32[2,1024], index: 0, kind: input, shape index: {}]   ;;  %s504_s1 = inlined_call_operand.hbm [shape: f32[1024,128], index: 1, kind: input, shape index: {}]   ;;  %s505_s2 = inlined_call_operand.hbm [shape: f32[1,128], index: 2, kind: input, shape index: {}]   ;;  %s506_s3 = inlined_call_operand.hbm [shape: f32[2,128], index: 3, kind: output, shape index: {}]  }
   0x1   :  { %9 = vsyncpa [#allocation6], 0 }
   0x2   :  { %10 = vsyncpa [#allocation4], 0  ;;  %s17_s14 = sshll.u32 %s504_s1, 4  ;;  %s463_s15 = smov [#allocation2]   ;;  %s18_s14 = int_to_ptr.hbm [resolvable:$true] %s17_s14 }
   0x3   :  { %s19_s16 = sshll.u32 %s463_s15, 4  ;;  %s31_s19 = sshll.u32 %s505_s2, 4  ;;  %s20_s16 = int_to_ptr.vmem [resolvable:$true] %s19_s16  ;;  %s32_s19 = int_to_ptr.hbm [resolvable:$true] %s31_s19 }
   0x4   :  { %s464_s20 = smov 128   ;;  %s465_s21 = smov 8  }
   0x5   :  { %25 = dma.hbm_to_vmem [thread:$0]  %s18_s14, 16384, %s20_s16, [#allocation3], %s464_s20, %s464_s20, %s465_s21  }
   0x6   :  { %s466_s22 = smov [#allocation5]  }
   0x7   :  { %s33_s23 = sshll.u32 %s466_s22, 4  ;;  %s34_s23 = int_to_ptr.vmem [resolvable:$true] %s33_s23 }
   0x8   :  { %36 = dma.hbm_to_vmem [thread:$0]  %s32_s19, 16, %s34_s23, [#allocation6]  }
   0x9   :  { %457 = dma.done.wait [#allocation3], 16384  }
   0xa   :  { %458 = vsyncadd [#allocation3], 4294950912 }
   0xb   :  { %459 = dma.done.wait [#allocation6], 16  }
   0xc   :  { %460 = vsyncadd [#allocation6], 4294967280  ;;  %v94_v0 = vld [vmem:[#allocation2 + $0x178] sm:$0xff]  ;;  %v93_v2 = vld [vmem:[#allocation2 + $0x170] sm:$0xff]  ;;  %s368_s29 = sshll.u32 %s506_s3, 4  ;;  %s369_s29 = int_to_ptr.hbm [resolvable:$true] %s368_s29 }
   0xd   :  { %v62_v1 = vld [vmem:[#allocation2 + $0x78] sm:$0xff]  ;;  %240 = vmatpush.msra.mxu2 %v94_v0  ;;  %v61_v4 = vld [vmem:[#allocation2 + $0x70] sm:$0xff]  ;;  %v92_v6 = vld [vmem:[#allocation2 + $0x168] sm:$0xff] }
   0xe   :  { %200 = vmatpush.msra.mxu0 %v62_v1  ;;  %v110_v3 = vld [vmem:[#allocation2 + $0x1f8] sm:$0xff]  ;;  %v109_v7 = vld [vmem:[#allocation2 + $0x1f0] sm:$0xff]  ;;  %v60_v8 = vld [vmem:[#allocation2 + $0x68] sm:$0xff] }
   0xf   :  { %v78_v5 = vld [vmem:[#allocation2 + $0xf8] sm:$0xff]  ;;  %260 = vmatpush.msra.mxu3 %v110_v3  ;;  %241 = vmatpush.msra.mxu2 %v93_v2  ;;  %v77_v9 = vld [vmem:[#allocation2 + $0xf0] sm:$0xff]  ;;  %v108_v10 = vld [vmem:[#allocation2 + $0x1e8] sm:$0xff] }
  0x10   :  { %220 = vmatpush.msra.mxu1 %v78_v5  ;;  %201 = vmatpush.msra.mxu0 %v61_v4  ;;  %v91_v11 = vld [vmem:[#allocation2 + $0x160] sm:$0xff]  ;;  %v76_v13 = vld [vmem:[#allocation2 + $0xe8] sm:$0xff]  ;;  %v90_v16 = vld [vmem:[#allocation2 + $0x158] sm:$0xff] }
  0x11   :  { %261 = vmatpush.msra.mxu3 %v109_v7  ;;  %v59_v12 = vld [vmem:[#allocation2 + $0x60] sm:$0xff]  ;;  %242 = vmatpush.msra.mxu2 %v92_v6  ;;  %v58_v17 = vld [vmem:[#allocation2 + $0x58] sm:$0xff]  ;;  %v89_v20 = vld [vmem:[#allocation2 + $0x150] sm:$0xff] }
  0x12   :  { %221 = vmatpush.msra.mxu1 %v77_v9  ;;  %202 = vmatpush.msra.mxu0 %v60_v8  ;;  %v107_v14 = vld [vmem:[#allocation2 + $0x1e0] sm:$0xff]  ;;  %v106_v18 = vld [vmem:[#allocation2 + $0x1d8] sm:$0xff]  ;;  %v57_v21 = vld [vmem:[#allocation2 + $0x50] sm:$0xff] }
  0x13   :  { %v75_v15 = vld [vmem:[#allocation2 + $0xe0] sm:$0xff]  ;;  %262 = vmatpush.msra.mxu3 %v108_v10  ;;  %243 = vmatpush.msra.mxu2 %v91_v11  ;;  %v74_v19 = vld [vmem:[#allocation2 + $0xd8] sm:$0xff]  ;;  %v105_v22 = vld [vmem:[#allocation2 + $0x1d0] sm:$0xff] }
  0x14   :  { %222 = vmatpush.msra.mxu1 %v76_v13  ;;  %203 = vmatpush.msra.mxu0 %v59_v12  ;;  %v73_v23 = vld [vmem:[#allocation2 + $0xd0] sm:$0xff]  ;;  %v88_v24 = vld [vmem:[#allocation2 + $0x148] sm:$0xff]  ;;  %v87_v28 = vld [vmem:[#allocation2 + $0x140] sm:$0xff] }
  0x15   :  { %263 = vmatpush.msra.mxu3 %v107_v14  ;;  %244 = vmatpush.msra.mxu2 %v90_v16  ;;  %v56_v25 = vld [vmem:[#allocation2 + $0x48] sm:$0xff]  ;;  %v55_v29 = vld [vmem:[#allocation2 + $0x40] sm:$0xff]  ;;  %v86_v32 = vld [vmem:[#allocation2 + $0x138] sm:$0xff] }
  0x16   :  { %223 = vmatpush.msra.mxu1 %v75_v15  ;;  %204 = vmatpush.msra.mxu0 %v58_v17  ;;  %v104_v26 = vld [vmem:[#allocation2 + $0x1c8] sm:$0xff]  ;;  %v103_v30 = vld [vmem:[#allocation2 + $0x1c0] sm:$0xff]  ;;  %v54_v33 = vld [vmem:[#allocation2 + $0x38] sm:$0xff] }
  0x17   :  { %264 = vmatpush.msra.mxu3 %v106_v18  ;;  %245 = vmatpush.msra.mxu2 %v89_v20  ;;  %v72_v27 = vld [vmem:[#allocation2 + $0xc8] sm:$0xff]  ;;  %v71_v31 = vld [vmem:[#allocation2 + $0xc0] sm:$0xff]  ;;  %v102_v34 = vld [vmem:[#allocation2 + $0x1b8] sm:$0xff] }
  0x18   :  { %224 = vmatpush.msra.mxu1 %v74_v19  ;;  %205 = vmatpush.msra.mxu0 %v57_v21  ;;  %v70_v35 = vld [vmem:[#allocation2 + $0xb8] sm:$0xff]  ;;  %v85_v36 = vld [vmem:[#allocation2 + $0x130] sm:$0xff]  ;;  %v84_v40 = vld [vmem:[#allocation2 + $0x128] sm:$0xff] }
  0x19   :  { %265 = vmatpush.msra.mxu3 %v105_v22  ;;  %246 = vmatpush.msra.mxu2 %v88_v24  ;;  %v53_v37 = vld [vmem:[#allocation2 + $0x30] sm:$0xff]  ;;  %v52_v41 = vld [vmem:[#allocation2 + $0x28] sm:$0xff]  ;;  %v83_v44 = vld [vmem:[#allocation2 + $0x120] sm:$0xff] }
  0x1a   :  { %225 = vmatpush.msra.mxu1 %v73_v23  ;;  %206 = vmatpush.msra.mxu0 %v56_v25  ;;  %v101_v38 = vld [vmem:[#allocation2 + $0x1b0] sm:$0xff]  ;;  %v100_v42 = vld [vmem:[#allocation2 + $0x1a8] sm:$0xff]  ;;  %v51_v45 = vld [vmem:[#allocation2 + $0x20] sm:$0xff] }
  0x1b   :  { %266 = vmatpush.msra.mxu3 %v104_v26  ;;  %247 = vmatpush.msra.mxu2 %v87_v28  ;;  %v69_v39 = vld [vmem:[#allocation2 + $0xb0] sm:$0xff]  ;;  %v68_v43 = vld [vmem:[#allocation2 + $0xa8] sm:$0xff]  ;;  %v99_v46 = vld [vmem:[#allocation2 + $0x1a0] sm:$0xff] }
  0x1c   :  { %226 = vmatpush.msra.mxu1 %v72_v27  ;;  %207 = vmatpush.msra.mxu0 %v55_v29  ;;  %v67_v47 = vld [vmem:[#allocation2 + $0xa0] sm:$0xff]  ;;  %v82_v48 = vld [vmem:[#allocation2 + $0x118] sm:$0xff]  ;;  %v81_v52 = vld [vmem:[#allocation2 + $0x110] sm:$0xff] }
  0x1d   :  { %267 = vmatpush.msra.mxu3 %v103_v30  ;;  %248 = vmatpush.msra.mxu2 %v86_v32  ;;  %v50_v49 = vld [vmem:[#allocation2 + $0x18] sm:$0xff]  ;;  %v49_v53 = vld [vmem:[#allocation2 + $0x10] sm:$0xff]  ;;  %v80_v56 = vld [vmem:[#allocation2 + $0x108] sm:$0xff] }
  0x1e   :  { %227 = vmatpush.msra.mxu1 %v71_v31  ;;  %208 = vmatpush.msra.mxu0 %v54_v33  ;;  %v98_v50 = vld [vmem:[#allocation2 + $0x198] sm:$0xff]  ;;  %v97_v54 = vld [vmem:[#allocation2 + $0x190] sm:$0xff]  ;;  %v48_v57 = vld [vmem:[#allocation2 + $0x8] sm:$0xff] }
  0x1f   :  { %268 = vmatpush.msra.mxu3 %v102_v34  ;;  %249 = vmatpush.msra.mxu2 %v85_v36  ;;  %v66_v51 = vld [vmem:[#allocation2 + $0x98] sm:$0xff]  ;;  %v65_v55 = vld [vmem:[#allocation2 + $0x90] sm:$0xff]  ;;  %v96_v58 = vld [vmem:[#allocation2 + $0x188] sm:$0xff] }
  0x20   :  { %228 = vmatpush.msra.mxu1 %v70_v35  ;;  %209 = vmatpush.msra.mxu0 %v53_v37  ;;  %v64_v59 = vld [vmem:[#allocation2 + $0x88] sm:$0xff]  ;;  %v79_v60 = vld [vmem:[#allocation2 + $0x100] sm:$0xff]  ;;  %v158_v62 = vld [vmem:[#allocation2 + $0x378] sm:$0xff] }
  0x21   :  { %269 = vmatpush.msra.mxu3 %v101_v38  ;;  %250 = vmatpush.msra.mxu2 %v84_v40  ;;  %v47_v61 = vld [vmem:[#allocation2] sm:$0xff]  ;;  %v126_v0 = vld [vmem:[#allocation2 + $0x278] sm:$0xff]  ;;  %v157_v2 = vld [vmem:[#allocation2 + $0x370] sm:$0xff] }
  0x22   :  { %229 = vmatpush.msra.mxu1 %v69_v39  ;;  %210 = vmatpush.msra.mxu0 %v52_v41  ;;  %v95_v63 = vld [vmem:[#allocation2 + $0x180] sm:$0xff]  ;;  %v174_v1 = vld [vmem:[#allocation2 + $0x3f8] sm:$0xff]  ;;  %v125_v4 = vld [vmem:[#allocation2 + $0x270] sm:$0xff] }
  0x23   :  { %270 = vmatpush.msra.mxu3 %v100_v42  ;;  %251 = vmatpush.msra.mxu2 %v83_v44  ;;  %v63_v3 = vld [vmem:[#allocation2 + $0x80] sm:$0xff]  ;;  %v142_v5 = vld [vmem:[#allocation2 + $0x2f8] sm:$0xff]  ;;  %v156_v6 = vld [vmem:[#allocation2 + $0x368] sm:$0xff] }
  0x24   :  { %230 = vmatpush.msra.mxu1 %v68_v43  ;;  %211 = vmatpush.msra.mxu0 %v51_v45  ;;  %v173_v7 = vld [vmem:[#allocation2 + $0x3f0] sm:$0xff]  ;;  %v124_v8 = vld [vmem:[#allocation2 + $0x268] sm:$0xff]  ;;  %v155_v10 = vld [vmem:[#allocation2 + $0x360] sm:$0xff] }
  0x25   :  { %271 = vmatpush.msra.mxu3 %v99_v46  ;;  %252 = vmatpush.msra.mxu2 %v82_v48  ;;  %v141_v9 = vld [vmem:[#allocation2 + $0x2f0] sm:$0xff]  ;;  %v172_v11 = vld [vmem:[#allocation2 + $0x3e8] sm:$0xff]  ;;  %v123_v12 = vld [vmem:[#allocation2 + $0x260] sm:$0xff] }
  0x26   :  { %231 = vmatpush.msra.mxu1 %v67_v47  ;;  %212 = vmatpush.msra.mxu0 %v50_v49  ;;  %v140_v13 = vld [vmem:[#allocation2 + $0x2e8] sm:$0xff]  ;;  %v45_v14 = vld [vmem:[%s503_s0] sm:$0xff]  ;;  %v171_v16 = vld [vmem:[#allocation2 + $0x3e0] sm:$0xff] }
  0x27   :  { %272 = vmatpush.msra.mxu3 %v98_v50  ;;  %253 = vmatpush.msra.mxu2 %v81_v52  ;;  %v154_v15 = vld [vmem:[#allocation2 + $0x358] sm:$0xff]  ;;  %181 = vst [vmem:[#allocation1] ss:$4 sm:$0xff] %v45_v14  ;;  %v139_v18 = vld [vmem:[#allocation2 + $0x2e0] sm:$0xff]  ;;  %v153_v19 = vld [vmem:[#allocation2 + $0x350] sm:$0xff] }
  0x28   :  { %232 = vmatpush.msra.mxu1 %v66_v51  ;;  %213 = vmatpush.msra.mxu0 %v49_v53  ;;  %v122_v17 = vld [vmem:[#allocation2 + $0x258] sm:$0xff]  ;;  %v121_v21 = vld [vmem:[#allocation2 + $0x250] sm:$0xff]  ;;  %v152_v23 = vld [vmem:[#allocation2 + $0x348] sm:$0xff] }
  0x29   :  { %273 = vmatpush.msra.mxu3 %v97_v54  ;;  %254 = vmatpush.msra.mxu2 %v80_v56  ;;  %v170_v20 = vld [vmem:[#allocation2 + $0x3d8] sm:$0xff]  ;;  %v169_v24 = vld [vmem:[#allocation2 + $0x3d0] sm:$0xff]  ;;  %v46_v25 = vld [vmem:[%s503_s0 + $0x8] sm:$0xff]  ;;  %s467_s0 = smov [#allocation7]  }
  0x2a   :  { %233 = vmatpush.msra.mxu1 %v65_v55  ;;  %214 = vmatpush.msra.mxu0 %v48_v57  ;;  %v138_v22 = vld [vmem:[#allocation2 + $0x2d8] sm:$0xff]  ;;  %v120_v26 = vld [vmem:[#allocation2 + $0x248] sm:$0xff]  ;;  %v137_v27 = vld [vmem:[#allocation2 + $0x2d0] sm:$0xff]  ;;  %183 = vst [vmem:[#allocation1 + $0x20] ss:$4 sm:$0xff] %v46_v25  ;;  %s366_s26 = sshll.u32 %s467_s0, 4  ;;  %s367_s26 = int_to_ptr.vmem [resolvable:$true] %s366_s26 }
  0x2b   :  { %274 = vmatpush.msra.mxu3 %v96_v58  ;;  %255 = vmatpush.msra.mxu2 %v79_v60  ;;  %v151_v28 = vld [vmem:[#allocation2 + $0x340] sm:$0xff]  ;;  %v168_v29 = vld [vmem:[#allocation2 + $0x3c8] sm:$0xff]  ;;  %v150_v32 = vld [vmem:[#allocation2 + $0x338] sm:$0xff] }
  0x2c   :  { %234 = vmatpush.msra.mxu1 %v64_v59  ;;  %215 = vmatpush.msra.mxu0 %v47_v61  ;;  %v119_v30 = vld [vmem:[#allocation2 + $0x240] sm:$0xff]  ;;  %v136_v31 = vld [vmem:[#allocation2 + $0x2c8] sm:$0xff]  ;;  %v118_v34 = vld [vmem:[#allocation2 + $0x238] sm:$0xff] }
  0x2d   :  { %320 = vmatpush.msrb.mxu2 %v158_v62  ;;  %275 = vmatpush.msra.mxu3 %v95_v63  ;;  %v167_v33 = vld [vmem:[#allocation2 + $0x3c0] sm:$0xff]  ;;  %v149_v36 = vld [vmem:[#allocation2 + $0x330] sm:$0xff]  ;;  %v166_v37 = vld [vmem:[#allocation2 + $0x3b8] sm:$0xff] }
  0x2e   :  { %280 = vmatpush.msrb.mxu0 %v126_v0  ;;  %235 = vmatpush.msra.mxu1 %v63_v3  ;;  %v135_v35 = vld [vmem:[#allocation2 + $0x2c0] sm:$0xff]  ;;  %v117_v38 = vld [vmem:[#allocation2 + $0x230] sm:$0xff]  ;;  %v134_v39 = vld [vmem:[#allocation2 + $0x2b8] sm:$0xff] }
  0x2f   :  { %340 = vmatpush.msrb.mxu3 %v174_v1  ;;  %321 = vmatpush.msrb.mxu2 %v157_v2  ;;  %v148_v40 = vld [vmem:[#allocation2 + $0x328] sm:$0xff]  ;;  %v165_v41 = vld [vmem:[#allocation2 + $0x3b0] sm:$0xff]  ;;  %v147_v44 = vld [vmem:[#allocation2 + $0x320] sm:$0xff] }
  0x30   :  { %281 = vmatpush.msrb.mxu0 %v125_v4  ;;  %300 = vmatpush.msrb.mxu1 %v142_v5  ;;  %v116_v42 = vld [vmem:[#allocation2 + $0x228] sm:$0xff]  ;;  %v133_v43 = vld [vmem:[#allocation2 + $0x2b0] sm:$0xff]  ;;  %v115_v47 = vld [vmem:[#allocation2 + $0x220] sm:$0xff] }
  0x31   :  { %322 = vmatpush.msrb.mxu2 %v156_v6  ;;  %341 = vmatpush.msrb.mxu3 %v173_v7  ;;  %v164_v45 = vld [vmem:[#allocation2 + $0x3a8] sm:$0xff]  ;;  %v146_v49 = vld [vmem:[#allocation2 + $0x318] sm:$0xff]  ;;  %v163_v50 = vld [vmem:[#allocation2 + $0x3a0] sm:$0xff] }
  0x32   :  { %282 = vmatpush.msrb.mxu0 %v124_v8  ;;  %301 = vmatpush.msrb.mxu1 %v141_v9  ;;  %v186_v46 = vld.sshfl [vmem:[#allocation1 + $0x10] sm:$0xff pattern:$0x73625140]  ;;  %v184_v51 = vld.sshfl [vmem:[#allocation1] sm:$0xff pattern:$0x73625140] }
  0x33   :  { %323 = vmatpush.msrb.mxu2 %v155_v10  ;;  %342 = vmatpush.msrb.mxu3 %v172_v11  ;;  %v132_v48 = vld [vmem:[#allocation2 + $0x2a8] sm:$0xff]  ;;  %v187_v52 = vld.sshfl [vmem:[#allocation1 + $0x18] sm:$0xff pattern:$0x73625140]  ;;  %v114_v53 = vld [vmem:[#allocation2 + $0x218] sm:$0xff] }
  0x34   :  { %283 = vmatpush.msrb.mxu0 %v123_v12  ;;  %302 = vmatpush.msrb.mxu1 %v140_v13  ;;  %v131_v54 = vld [vmem:[#allocation2 + $0x2a0] sm:$0xff]  ;;  %v145_v55 = vld [vmem:[#allocation2 + $0x310] sm:$0xff]  ;;  %v162_v56 = vld [vmem:[#allocation2 + $0x398] sm:$0xff] }
  0x35   :  { %324 = vmatpush.msrb.mxu2 %v154_v15  ;;  %343 = vmatpush.msrb.mxu3 %v171_v16  ;;  %v185_v57 = vld.sshfl [vmem:[#allocation1 + $0x8] sm:$0xff pattern:$0x73625140]  ;;  %v113_v58 = vld [vmem:[#allocation2 + $0x210] sm:$0xff]  ;;  %v130_v59 = vld [vmem:[#allocation2 + $0x298] sm:$0xff] }
  0x36   :  { %284 = vmatpush.msrb.mxu0 %v122_v17  ;;  %303 = vmatpush.msrb.mxu1 %v139_v18  ;;  %v144_v60 = vld [vmem:[#allocation2 + $0x308] sm:$0xff]  ;;  %v161_v61 = vld [vmem:[#allocation2 + $0x390] sm:$0xff]  ;;  %v143_v0 = vld [vmem:[#allocation2 + $0x300] sm:$0xff] }
  0x37   :  { %325 = vmatpush.msrb.mxu2 %v153_v19  ;;  %344 = vmatpush.msrb.mxu3 %v170_v20  ;;  %v112_v62 = vld [vmem:[#allocation2 + $0x208] sm:$0xff]  ;;  %v129_v63 = vld [vmem:[#allocation2 + $0x290] sm:$0xff]  ;;  %v111_v3 = vld [vmem:[#allocation2 + $0x200] sm:$0xff] }
  0x38   :  { %285 = vmatpush.msrb.mxu0 %v121_v21  ;;  %304 = vmatpush.msrb.mxu1 %v138_v22  ;;  %v160_v1 = vld [vmem:[#allocation2 + $0x388] sm:$0xff]  ;;  %v159_v5 = vld [vmem:[#allocation2 + $0x380] sm:$0xff]  ;;  %v188_v6 = vld.sshfl [vmem:[#allocation1 + $0x20] sm:$0xff pattern:$0x73625140] }
  0x39   :  { %326 = vmatpush.msrb.mxu2 %v152_v23  ;;  %345 = vmatpush.msrb.mxu3 %v169_v24  ;;  %v190_v2 = vld.sshfl [vmem:[#allocation1 + $0x30] sm:$0xff pattern:$0x73625140]  ;;  %v191_v7 = vld.sshfl [vmem:[#allocation1 + $0x38] sm:$0xff pattern:$0x73625140] }
  0x3a   :  { %286 = vmatpush.msrb.mxu0 %v120_v26  ;;  %305 = vmatpush.msrb.mxu1 %v137_v27  ;;  %v128_v4 = vld [vmem:[#allocation2 + $0x288] sm:$0xff]  ;;  %v127_v8 = vld [vmem:[#allocation2 + $0x280] sm:$0xff] }
  0x3b   :  { %327 = vmatpush.msrb.mxu2 %v151_v28  ;;  %346 = vmatpush.msrb.mxu3 %v168_v29  ;;  %v189_v9 = vld.sshfl [vmem:[#allocation1 + $0x28] sm:$0xff pattern:$0x73625140] }
  0x3c   :  { %287 = vmatpush.msrb.mxu0 %v119_v30  ;;  %306 = vmatpush.msrb.mxu1 %v136_v31  ;;  %v384_v10 = vld [vmem:[#allocation5] ss:$0 sm:$0xff] }
  0x3d   :  { %328 = vmatpush.msrb.mxu2 %v150_v32  ;;  %347 = vmatpush.msrb.mxu3 %v167_v33 }
  0x3e   :  { %288 = vmatpush.msrb.mxu0 %v118_v34  ;;  %307 = vmatpush.msrb.mxu1 %v135_v35 }
  0x3f   :  { %329 = vmatpush.msrb.mxu2 %v149_v36  ;;  %348 = vmatpush.msrb.mxu3 %v166_v37 }
  0x40   :  { %289 = vmatpush.msrb.mxu0 %v117_v38  ;;  %308 = vmatpush.msrb.mxu1 %v134_v39 }
  0x41   :  { %330 = vmatpush.msrb.mxu2 %v148_v40  ;;  %349 = vmatpush.msrb.mxu3 %v165_v41 }
  0x42   :  { %290 = vmatpush.msrb.mxu0 %v116_v42  ;;  %309 = vmatpush.msrb.mxu1 %v133_v43 }
  0x43   :  { %331 = vmatpush.msrb.mxu2 %v147_v44  ;;  %350 = vmatpush.msrb.mxu3 %v164_v45 }
  0x44   :  { %256 = vmatmul.f32.vlgmr.msra.gmra.mxu2 %v186_v46  ;;  %291 = vmatpush.msrb.mxu0 %v115_v47 }
  0x45   :  { %310 = vmatpush.msrb.mxu1 %v132_v48  ;;  %332 = vmatpush.msrb.mxu2 %v146_v49 }
  0x46   :  { %351 = vmatpush.msrb.mxu3 %v163_v50  ;;  %216 = vmatmul.f32.vlgmr.msra.gmra.mxu0 %v184_v51 }
  0x47   :  { %276 = vmatmul.f32.vlgmr.msra.gmra.mxu3 %v187_v52  ;;  %292 = vmatpush.msrb.mxu0 %v114_v53 }
  0x48   :  { %311 = vmatpush.msrb.mxu1 %v131_v54  ;;  %333 = vmatpush.msrb.mxu2 %v145_v55 }
  0x49   :  { %352 = vmatpush.msrb.mxu3 %v162_v56  ;;  %236 = vmatmul.f32.vlgmr.msra.gmra.mxu1 %v185_v57 }
  0x4a   :  { %293 = vmatpush.msrb.mxu0 %v113_v58  ;;  %312 = vmatpush.msrb.mxu1 %v130_v59 }
  0x4b   :  { %334 = vmatpush.msrb.mxu2 %v144_v60  ;;  %353 = vmatpush.msrb.mxu3 %v161_v61 }
  0x4c   :  { %294 = vmatpush.msrb.mxu0 %v112_v62  ;;  %313 = vmatpush.msrb.mxu1 %v129_v63 }
  0x4d   :  { %335 = vmatpush.msrb.mxu2 %v143_v0  ;;  %354 = vmatpush.msrb.mxu3 %v160_v1 }
  0x4e   :  { %336 = vmatmul.f32.vlgmr.msrb.gmra.mxu2 %v190_v2  ;;  %295 = vmatpush.msrb.mxu0 %v111_v3 }
  0x4f   :  { %314 = vmatpush.msrb.mxu1 %v128_v4  ;;  %355 = vmatpush.msrb.mxu3 %v159_v5 }
  0x50   :  { %296 = vmatmul.f32.vlgmr.msrb.gmra.mxu0 %v188_v6  ;;  %356 = vmatmul.f32.vlgmr.msrb.gmra.mxu3 %v191_v7 }
  0x51   :  { %315 = vmatpush.msrb.mxu1 %v127_v8 }
  0x52   :  { %316 = vmatmul.f32.vlgmr.msrb.gmra.mxu1 %v189_v9 }
  0xc3   :  { %v217_v11 = vpop.f32.mrf.mxu0 }
  0xc4   :  { %v218_v12 = vadd.f32 %v384_v10, %v217_v11 }
  0xc6   :  { %v237_v13 = vpop.f32.mrf.mxu1 }
  0xc7   :  { %v238_v14 = vadd.f32 %v237_v13, %v218_v12  ;;  %v257_v15 = vpop.f32.mrf.mxu2 }
  0xc9   :  { %v258_v16 = vadd.f32 %v257_v15, %v238_v14 }
  0xca   :  { %v277_v17 = vpop.f32.mrf.mxu3 }
  0xcb   :  { %v278_v18 = vadd.f32 %v277_v17, %v258_v16 }
  0xcd   :  { %v297_v19 = vpop.f32.mrf.mxu0 }
  0xce   :  { %v298_v20 = vadd.f32 %v297_v19, %v278_v18 }
  0xcf   :  { %v317_v21 = vpop.f32.mrf.mxu1 }
  0xd0   :  { %v318_v22 = vadd.f32 %v317_v21, %v298_v20 }
  0xd1   :  { %v337_v23 = vpop.f32.mrf.mxu2 }
  0xd2   :  { %v338_v24 = vadd.f32 %v337_v23, %v318_v22 }
  0xd3   :  { %v357_v25 = vpop.f32.mrf.mxu3 }
  0xd4   :  { %v358_v26 = vadd.f32 %v357_v25, %v338_v24 }
  0xd6   :  { %360 = vst [vmem:[#allocation7] sm:$0x3] %v358_v26 }
  0xd7   :  { %371 = dma.vmem_to_hbm [thread:$0]  %s367_s26, 32, %s369_s29, [#allocation4]  }
  0xd8   :  { %461 = dma.done.wait [#allocation4], 32  }
  0xd9   :  { %462 = vsyncadd [#allocation4], 4294967264 }
  0xda   :  { %376 = vsyncpa [#allocation3], 1 }
  0xdb   :  { %377 = vsyncpa [#allocation6], 1 }
  0xdc   :  { %378 = vsyncpa [#allocation4], 1 }

// kernel: _forward.2
= control target key start
LH: loop header
LB: loop body
LE: loop exit
PB: predicated region body
PF: predicated region fallthrough
CT: control target
= control target key end

     0   :  { %8 = vsyncpa [#allocation3], 0  ;;  %s6905_s0 = inlined_call_operand.vmem [shape: bf16[2,1024], index: 0, kind: input, shape index: {}]   ;;  %s6906_s1 = inlined_call_operand.hbm [shape: bf16[1024,1024], index: 1, kind: input, shape index: {}]   ;;  %s6907_s2 = inlined_call_operand.hbm [shape: f32[1,1024], index: 2, kind: input, shape index: {}]   ;;  %s6908_s3 = inlined_call_operand.vmem [shape: f32[2,1024], index: 3, kind: output, shape index: {}]  }
   0x1   :  { %s16_s14 = sshll.u32 %s6906_s1, 4  ;;  %s17_s14 = int_to_ptr.hbm [resolvable:$true] %s16_s14 }
   0x2   :  { %9 = vsyncpa [#allocation5], 0  ;;  %s6687_s15 = smov [#allocation2]   ;;  %s30_s19 = sshll.u32 %s6907_s2, 4  ;;  %s31_s19 = int_to_ptr.hbm [resolvable:$true] %s30_s19 }
   0x3   :  { %s18_s16 = sshll.u32 %s6687_s15, 4  ;;  %s6688_s20 = smov 512   ;;  %s19_s16 = int_to_ptr.vmem [resolvable:$true] %s18_s16 }
   0x4   :  { %s6689_s21 = smov 32   ;;  %s6690_s22 = smov [#allocation4]  }
   0x5   :  { %24 = dma.hbm_to_vmem [thread:$0]  %s17_s14, 65536, %s19_s16, [#allocation3], %s6688_s20, %s6688_s20, %s6689_s21  }
   0x6   :  { %s32_s23 = sshll.u32 %s6690_s22, 4  ;;  %s33_s23 = int_to_ptr.vmem [resolvable:$true] %s32_s23 }
   0x7   :  { %35 = dma.hbm_to_vmem [thread:$0]  %s31_s19, 128, %s33_s23, [#allocation5]  }
   0x8   :  { %6683 = dma.done.wait [#allocation3], 65536  }
   0x9   :  { %6684 = vsyncadd [#allocation3], 4294901760 }
   0xa   :  { %6685 = dma.done.wait [#allocation5], 128  }
   0xb   :  { %6686 = vsyncadd [#allocation5], 4294967168  ;;  %v4271_v0 = vld [vmem:[#allocation2 + $0x1c0] sm:$0xf]  ;;  %vm3989_vm0 = vcmask 1041408   ;;  %vm3991_vm1 = vcmask 1045508  }
   0xc   :  { %v6153_v1 = vld [vmem:[#allocation2 + $0x1dc] sm:$0xf0]  ;;  %vm3993_vm2 = vcmask 1043456  }
   0xd   :  { %v4527_v2 = vld [vmem:[#allocation2 + $0x3c0] sm:$0xf]  ;;  %v4272_v3 = vor.u32 %v6153_v1, %v4271_v0 }
   0xe   :  { %v6217_v4 = vld [vmem:[#allocation2 + $0x3dc] sm:$0xf0] }
   0xf   :  { %v4783_v5 = vld [vmem:[#allocation2 + $0x5c0] sm:$0xf]  ;;  %v4528_v7 = vor.u32 %v6217_v4, %v4527_v2  ;;  %3143 = vmatpush.bf16.msra.mxu0 %v4272_v3 }
  0x10   :  { %v6281_v6 = vld [vmem:[#allocation2 + $0x5dc] sm:$0xf0] }
  0x11   :  { %v4784_v8 = vor.u32 %v6281_v6, %v4783_v5  ;;  %v5039_v9 = vld [vmem:[#allocation2 + $0x7c0] sm:$0xf]  ;;  %3156 = vmatpush.bf16.msra.mxu1 %v4528_v7 }
  0x12   :  { %v6345_v10 = vld [vmem:[#allocation2 + $0x7dc] sm:$0xf0] }
  0x13   :  { %v4239_v11 = vld [vmem:[#allocation2 + $0x180] sm:$0xf]  ;;  %v5040_v12 = vor.u32 %v6345_v10, %v5039_v9  ;;  %3169 = vmatpush.bf16.msra.mxu2 %v4784_v8 }
  0x14   :  { %v6145_v13 = vld [vmem:[#allocation2 + $0x19c] sm:$0xf0] }
  0x15   :  { %v4495_v14 = vld [vmem:[#allocation2 + $0x380] sm:$0xf]  ;;  %v4240_v16 = vor.u32 %v6145_v13, %v4239_v11  ;;  %3182 = vmatpush.bf16.msra.mxu3 %v5040_v12 }
  0x16   :  { %v6209_v15 = vld [vmem:[#allocation2 + $0x39c] sm:$0xf0] }
  0x17   :  { %v4496_v17 = vor.u32 %v6209_v15, %v4495_v14  ;;  %v4751_v18 = vld [vmem:[#allocation2 + $0x580] sm:$0xf]  ;;  %3144 = vmatpush.bf16.msra.mxu0 %v4240_v16 }
  0x18   :  { %v6273_v19 = vld [vmem:[#allocation2 + $0x59c] sm:$0xf0] }
  0x19   :  { %v5007_v20 = vld [vmem:[#allocation2 + $0x780] sm:$0xf]  ;;  %v4752_v21 = vor.u32 %v6273_v19, %v4751_v18  ;;  %3157 = vmatpush.bf16.msra.mxu1 %v4496_v17 }
  0x1a   :  { %v6337_v22 = vld [vmem:[#allocation2 + $0x79c] sm:$0xf0] }
  0x1b   :  { %v4207_v23 = vld [vmem:[#allocation2 + $0x140] sm:$0xf]  ;;  %v5008_v25 = vor.u32 %v6337_v22, %v5007_v20  ;;  %3170 = vmatpush.bf16.msra.mxu2 %v4752_v21 }
  0x1c   :  { %v6137_v24 = vld [vmem:[#allocation2 + $0x15c] sm:$0xf0] }
  0x1d   :  { %v4463_v26 = vld [vmem:[#allocation2 + $0x340] sm:$0xf]  ;;  %v4208_v29 = vor.u32 %v6137_v24, %v4207_v23  ;;  %3183 = vmatpush.bf16.msra.mxu3 %v5008_v25 }
  0x1e   :  { %v6201_v27 = vld [vmem:[#allocation2 + $0x35c] sm:$0xf0] }
  0x1f   :  { %v4719_v28 = vld [vmem:[#allocation2 + $0x540] sm:$0xf]  ;;  %v4464_v33 = vor.u32 %v6201_v27, %v4463_v26  ;;  %3145 = vmatpush.bf16.msra.mxu0 %v4208_v29 }
  0x20   :  { %v6265_v30 = vld [vmem:[#allocation2 + $0x55c] sm:$0xf0] }
  0x21   :  { %v4975_v31 = vld [vmem:[#allocation2 + $0x740] sm:$0xf]  ;;  %v4720_v34 = vor.u32 %v6265_v30, %v4719_v28  ;;  %3158 = vmatpush.bf16.msra.mxu1 %v4464_v33 }
  0x22   :  { %v6329_v32 = vld [vmem:[#allocation2 + $0x75c] sm:$0xf0] }
  0x23   :  { %v4175_v35 = vld [vmem:[#allocation2 + $0x100] sm:$0xf]  ;;  %v4976_v38 = vor.u32 %v6329_v32, %v4975_v31  ;;  %3171 = vmatpush.bf16.msra.mxu2 %v4720_v34 }
  0x24   :  { %v6129_v36 = vld [vmem:[#allocation2 + $0x11c] sm:$0xf0] }
  0x25   :  { %v4431_v37 = vld [vmem:[#allocation2 + $0x300] sm:$0xf]  ;;  %v4176_v44 = vor.u32 %v6129_v36, %v4175_v35  ;;  %3184 = vmatpush.bf16.msra.mxu3 %v4976_v38 }
  0x26   :  { %v6193_v39 = vld [vmem:[#allocation2 + $0x31c] sm:$0xf0] }
  0x27   :  { %v4687_v40 = vld [vmem:[#allocation2 + $0x500] sm:$0xf]  ;;  %v4432_v45 = vor.u32 %v6193_v39, %v4431_v37  ;;  %3146 = vmatpush.bf16.msra.mxu0 %v4176_v44 }
  0x28   :  { %v6257_v41 = vld [vmem:[#allocation2 + $0x51c] sm:$0xf0] }
  0x29   :  { %v4943_v42 = vld [vmem:[#allocation2 + $0x700] sm:$0xf]  ;;  %v4688_v46 = vor.u32 %v6257_v41, %v4687_v40  ;;  %3159 = vmatpush.bf16.msra.mxu1 %v4432_v45 }
  0x2a   :  { %v6321_v43 = vld [vmem:[#allocation2 + $0x71c] sm:$0xf0] }
  0x2b   :  { %v4143_v47 = vld [vmem:[#allocation2 + $0xc0] sm:$0xf]  ;;  %v4944_v50 = vor.u32 %v6321_v43, %v4943_v42  ;;  %3172 = vmatpush.bf16.msra.mxu2 %v4688_v46 }
  0x2c   :  { %v6121_v48 = vld [vmem:[#allocation2 + $0xdc] sm:$0xf0] }
  0x2d   :  { %v4399_v49 = vld [vmem:[#allocation2 + $0x2c0] sm:$0xf]  ;;  %v4144_v56 = vor.u32 %v6121_v48, %v4143_v47  ;;  %3185 = vmatpush.bf16.msra.mxu3 %v4944_v50 }
  0x2e   :  { %v6185_v51 = vld [vmem:[#allocation2 + $0x2dc] sm:$0xf0] }
  0x2f   :  { %v4655_v52 = vld [vmem:[#allocation2 + $0x4c0] sm:$0xf]  ;;  %v4400_v57 = vor.u32 %v6185_v51, %v4399_v49  ;;  %3147 = vmatpush.bf16.msra.mxu0 %v4144_v56 }
  0x30   :  { %v6249_v53 = vld [vmem:[#allocation2 + $0x4dc] sm:$0xf0] }
  0x31   :  { %v4911_v54 = vld [vmem:[#allocation2 + $0x6c0] sm:$0xf]  ;;  %v4656_v58 = vor.u32 %v6249_v53, %v4655_v52  ;;  %3160 = vmatpush.bf16.msra.mxu1 %v4400_v57 }
  0x32   :  { %v6313_v55 = vld [vmem:[#allocation2 + $0x6dc] sm:$0xf0] }
  0x33   :  { %v4111_v59 = vld [vmem:[#allocation2 + $0x80] sm:$0xf]  ;;  %v4912_v62 = vor.u32 %v6313_v55, %v4911_v54  ;;  %3173 = vmatpush.bf16.msra.mxu2 %v4656_v58 }
  0x34   :  { %v6113_v60 = vld [vmem:[#allocation2 + $0x9c] sm:$0xf0] }
  0x35   :  { %v4367_v61 = vld [vmem:[#allocation2 + $0x280] sm:$0xf]  ;;  %v4112_v4 = vor.u32 %v6113_v60, %v4111_v59  ;;  %3186 = vmatpush.bf16.msra.mxu3 %v4912_v62  ;;  %v52_v59 = vld [vmem:[%s6905_s0] sm:$0xff] }
  0x36   :  { %v6177_v63 = vld [vmem:[#allocation2 + $0x29c] sm:$0xf0]  ;;  %566 = vst [vmem:[#allocation1] ss:$9 sm:$0xff] %v52_v59 }
  0x37   :  { %v4623_v0 = vld [vmem:[#allocation2 + $0x480] sm:$0xf]  ;;  %v4368_v5 = vor.u32 %v6177_v63, %v4367_v61  ;;  %3148 = vmatpush.bf16.msra.mxu0 %v4112_v4 }
  0x38   :  { %v6241_v1 = vld [vmem:[#allocation2 + $0x49c] sm:$0xf0] }
  0x39   :  { %v4879_v2 = vld [vmem:[#allocation2 + $0x680] sm:$0xf]  ;;  %v4624_v6 = vor.u32 %v6241_v1, %v4623_v0  ;;  %3161 = vmatpush.bf16.msra.mxu1 %v4368_v5 }
  0x3a   :  { %v6305_v3 = vld [vmem:[#allocation2 + $0x69c] sm:$0xf0] }
  0x3b   :  { %v4079_v7 = vld [vmem:[#allocation2 + $0x40] sm:$0xf]  ;;  %v4880_v10 = vor.u32 %v6305_v3, %v4879_v2  ;;  %3174 = vmatpush.bf16.msra.mxu2 %v4624_v6 }
  0x3c   :  { %v6105_v8 = vld [vmem:[#allocation2 + $0x5c] sm:$0xf0] }
  0x3d   :  { %v4335_v9 = vld [vmem:[#allocation2 + $0x240] sm:$0xf]  ;;  %v4080_v16 = vor.u32 %v6105_v8, %v4079_v7  ;;  %3187 = vmatpush.bf16.msra.mxu3 %v4880_v10 }
  0x3e   :  { %v6169_v11 = vld [vmem:[#allocation2 + $0x25c] sm:$0xf0] }
  0x3f   :  { %v4591_v12 = vld [vmem:[#allocation2 + $0x440] sm:$0xf]  ;;  %v4336_v19 = vor.u32 %v6169_v11, %v4335_v9  ;;  %3149 = vmatpush.bf16.msra.mxu0 %v4080_v16 }
  0x40   :  { %v6233_v13 = vld [vmem:[#allocation2 + $0x45c] sm:$0xf0] }
  0x41   :  { %v4847_v14 = vld [vmem:[#allocation2 + $0x640] sm:$0xf]  ;;  %v4592_v20 = vor.u32 %v6233_v13, %v4591_v12  ;;  %3162 = vmatpush.bf16.msra.mxu1 %v4336_v19 }
  0x42   :  { %v6297_v15 = vld [vmem:[#allocation2 + $0x65c] sm:$0xf0] }
  0x43   :  { %v4047_v17 = vld [vmem:[#allocation2] sm:$0xf]  ;;  %v4848_v24 = vor.u32 %v6297_v15, %v4847_v14  ;;  %3175 = vmatpush.bf16.msra.mxu2 %v4592_v20  ;;  %v6720_v20 = vld [vmem:[#allocation1 + $0x12] sm:$0xff] }
  0x44   :  { %v6097_v18 = vld [vmem:[#allocation2 + $0x1c] sm:$0xf0] }
  0x45   :  { %v4303_v21 = vld [vmem:[#allocation2 + $0x200] sm:$0xf]  ;;  %v4048_v31 = vor.u32 %v6097_v18, %v4047_v17  ;;  %3188 = vmatpush.bf16.msra.mxu3 %v4848_v24 }
  0x46   :  { %v6161_v22 = vld [vmem:[#allocation2 + $0x21c] sm:$0xf0] }
  0x47   :  { %v4559_v23 = vld [vmem:[#allocation2 + $0x400] sm:$0xf]  ;;  %v4304_v35 = vor.u32 %v6161_v22, %v4303_v21  ;;  %3150 = vmatpush.bf16.msra.mxu0 %v4048_v31  ;;  %v6722_v21 = vld [vmem:[#allocation1] sm:$0xff] }
  0x48   :  { %v6225_v25 = vld [vmem:[#allocation2 + $0x41c] sm:$0xf0]  ;;  %v6724_v22 = vld [vmem:[#allocation1 + $0x1b] sm:$0xff] }
  0x49   :  { %v4815_v26 = vld [vmem:[#allocation2 + $0x600] sm:$0xf]  ;;  %v4560_v36 = vor.u32 %v6225_v25, %v4559_v23  ;;  %3163 = vmatpush.bf16.msra.mxu1 %v4304_v35 }
  0x4a   :  { %v6289_v27 = vld [vmem:[#allocation2 + $0x61c] sm:$0xf0]  ;;  %3151 = vmatmul.bf16.vlgmr.msra.gmra.mxu0 %v6722_v21 }
  0x4b   :  { %v5295_v28 = vld [vmem:[#allocation2 + $0x9c0] sm:$0xf]  ;;  %v4816_v39 = vor.u32 %v6289_v27, %v4815_v26  ;;  %3176 = vmatpush.bf16.msra.mxu2 %v4560_v36 }
  0x4c   :  { %v6409_v29 = vld [vmem:[#allocation2 + $0x9dc] sm:$0xf0] }
  0x4d   :  { %v5551_v30 = vld [vmem:[#allocation2 + $0xbc0] sm:$0xf]  ;;  %v5296_v40 = vor.u32 %v6409_v29, %v5295_v28  ;;  %3189 = vmatpush.bf16.msra.mxu3 %v4816_v39 }
  0x4e   :  { %v6473_v32 = vld [vmem:[#allocation2 + $0xbdc] sm:$0xf0]  ;;  %3177 = vmatmul.bf16.vlgmr.msra.gmra.mxu2 %v6720_v20 }
  0x4f   :  { %v5807_v33 = vld [vmem:[#allocation2 + $0xdc0] sm:$0xf]  ;;  %v5552_v41 = vor.u32 %v6473_v32, %v5551_v30  ;;  %3195 = vmatpush.bf16.msrb.mxu0 %v5296_v40 }
  0x50   :  { %v6537_v34 = vld [vmem:[#allocation2 + $0xddc] sm:$0xf0]  ;;  %3190 = vmatmul.bf16.vlgmr.msra.gmra.mxu3 %v6724_v22 }
  0x51   :  { %v6063_v37 = vld [vmem:[#allocation2 + $0xfc0] sm:$0xf]  ;;  %v5808_v42 = vor.u32 %v6537_v34, %v5807_v33  ;;  %3208 = vmatpush.bf16.msrb.mxu1 %v5552_v41 }
  0x52   :  { %v6601_v38 = vld [vmem:[#allocation2 + $0xfdc] sm:$0xf0] }
  0x53   :  { %v5263_v43 = vld [vmem:[#allocation2 + $0x980] sm:$0xf]  ;;  %v6064_v46 = vor.u32 %v6601_v38, %v6063_v37  ;;  %3221 = vmatpush.bf16.msrb.mxu2 %v5808_v42 }
  0x54   :  { %v6401_v44 = vld [vmem:[#allocation2 + $0x99c] sm:$0xf0] }
  0x55   :  { %v5519_v45 = vld [vmem:[#allocation2 + $0xb80] sm:$0xf]  ;;  %v5264_v52 = vor.u32 %v6401_v44, %v5263_v43  ;;  %3234 = vmatpush.bf16.msrb.mxu3 %v6064_v46 }
  0x56   :  { %v6465_v47 = vld [vmem:[#allocation2 + $0xb9c] sm:$0xf0] }
  0x57   :  { %v5775_v48 = vld [vmem:[#allocation2 + $0xd80] sm:$0xf]  ;;  %v5520_v55 = vor.u32 %v6465_v47, %v5519_v45  ;;  %3196 = vmatpush.bf16.msrb.mxu0 %v5264_v52 }
  0x58   :  { %v6529_v49 = vld [vmem:[#allocation2 + $0xd9c] sm:$0xf0] }
  0x59   :  { %v6031_v50 = vld [vmem:[#allocation2 + $0xf80] sm:$0xf]  ;;  %v5776_v56 = vor.u32 %v6529_v49, %v5775_v48  ;;  %3209 = vmatpush.bf16.msrb.mxu1 %v5520_v55 }
  0x5a   :  { %v6593_v51 = vld [vmem:[#allocation2 + $0xf9c] sm:$0xf0] }
  0x5b   :  { %v5231_v53 = vld [vmem:[#allocation2 + $0x940] sm:$0xf]  ;;  %v6032_v60 = vor.u32 %v6593_v51, %v6031_v50  ;;  %3222 = vmatpush.bf16.msrb.mxu2 %v5776_v56 }
  0x5c   :  { %v6393_v54 = vld [vmem:[#allocation2 + $0x95c] sm:$0xf0] }
  0x5d   :  { %v5487_v57 = vld [vmem:[#allocation2 + $0xb40] sm:$0xf]  ;;  %v5232_v1 = vor.u32 %v6393_v54, %v5231_v53  ;;  %3235 = vmatpush.bf16.msrb.mxu3 %v6032_v60 }
  0x5e   :  { %v6457_v58 = vld [vmem:[#allocation2 + $0xb5c] sm:$0xf0] }
  0x5f   :  { %v5743_v61 = vld [vmem:[#allocation2 + $0xd40] sm:$0xf]  ;;  %v5488_v2 = vor.u32 %v6457_v58, %v5487_v57  ;;  %3197 = vmatpush.bf16.msrb.mxu0 %v5232_v1  ;;  %v6149_v1 = vld [vmem:[#allocation2 + $0x1c4] sm:$0xf] }
  0x60   :  { %v6521_v62 = vld [vmem:[#allocation2 + $0xd5c] sm:$0xf0] }
  0x61   :  { %v5999_v63 = vld [vmem:[#allocation2 + $0xf40] sm:$0xf]  ;;  %v5744_v3 = vor.u32 %v6521_v62, %v5743_v61  ;;  %3210 = vmatpush.bf16.msrb.mxu1 %v5488_v2  ;;  %v4273_v2 = vld [vmem:[#allocation2 + $0x1e0] sm:$0xf0] }
  0x62   :  { %v6585_v0 = vld [vmem:[#allocation2 + $0xf5c] sm:$0xf0] }
  0x63   :  { %v5199_v4 = vld [vmem:[#allocation2 + $0x900] sm:$0xf]  ;;  %v6000_v7 = vor.u32 %v6585_v0, %v5999_v63  ;;  %3223 = vmatpush.bf16.msrb.mxu2 %v5744_v3  ;;  %v6213_v3 = vld [vmem:[#allocation2 + $0x3c4] sm:$0xf] }
  0x64   :  { %v6385_v5 = vld [vmem:[#allocation2 + $0x91c] sm:$0xf0] }
  0x65   :  { %v5455_v6 = vld [vmem:[#allocation2 + $0xb00] sm:$0xf]  ;;  %v5200_v14 = vor.u32 %v6385_v5, %v5199_v4  ;;  %3236 = vmatpush.bf16.msrb.mxu3 %v6000_v7  ;;  %v4529_v5 = vld [vmem:[#allocation2 + $0x3e0] sm:$0xf0] }
  0x66   :  { %v6449_v8 = vld [vmem:[#allocation2 + $0xb1c] sm:$0xf0]  ;;  %v4785_v7 = vld [vmem:[#allocation2 + $0x5e0] sm:$0xf0] }
  0x67   :  { %v5711_v9 = vld [vmem:[#allocation2 + $0xd00] sm:$0xf]  ;;  %v5456_v18 = vor.u32 %v6449_v8, %v5455_v6  ;;  %3198 = vmatpush.bf16.msrb.mxu0 %v5200_v14  ;;  %v6277_v6 = vld [vmem:[#allocation2 + $0x5c4] sm:$0xf]  ;;  %v4532_v14 = vor.u32 %v6213_v3, %v4529_v5 }
  0x68   :  { %v6513_v10 = vld [vmem:[#allocation2 + $0xd1c] sm:$0xf0]  ;;  %v6309_v3 = vld [vmem:[#allocation2 + $0x6c4] sm:$0xf] }
  0x69   :  { %v5967_v11 = vld [vmem:[#allocation2 + $0xf00] sm:$0xf]  ;;  %v5712_v19 = vor.u32 %v6513_v10, %v5711_v9  ;;  %3211 = vmatpush.bf16.msrb.mxu1 %v5456_v18  ;;  %v6341_v10 = vld [vmem:[#allocation2 + $0x7c4] sm:$0xf] }
  0x6a   :  { %v6577_v12 = vld [vmem:[#allocation2 + $0xf1c] sm:$0xf0]  ;;  %v6205_v18 = vld [vmem:[#allocation2 + $0x384] sm:$0xf] }
  0x6b   :  { %v5167_v13 = vld [vmem:[#allocation2 + $0x8c0] sm:$0xf]  ;;  %v5968_v23 = vor.u32 %v6577_v12, %v5967_v11  ;;  %3224 = vmatpush.bf16.msrb.mxu2 %v5712_v19  ;;  %v5041_v11 = vld [vmem:[#allocation2 + $0x7e0] sm:$0xf0] }
  0x6c   :  { %v6377_v15 = vld [vmem:[#allocation2 + $0x8dc] sm:$0xf0]  ;;  %v5044_v19 = vor.u32 %v6341_v10, %v5041_v11  ;;  %v6173_v10 = vld [vmem:[#allocation2 + $0x284] sm:$0xf] }
  0x6d   :  { %v5423_v16 = vld [vmem:[#allocation2 + $0xac0] sm:$0xf]  ;;  %v5168_v29 = vor.u32 %v6377_v15, %v5167_v13  ;;  %3237 = vmatpush.bf16.msrb.mxu3 %v5968_v23  ;;  %v4276_v13 = vor.u32 %v6149_v1, %v4273_v2  ;;  %v4788_v15 = vor.u32 %v6277_v6, %v4785_v7  ;;  %v4497_v23 = vld [vmem:[#allocation2 + $0x3a0] sm:$0xf0] }
  0x6e   :  { %v6441_v17 = vld [vmem:[#allocation2 + $0xadc] sm:$0xf0]  ;;  %v6245_v1 = vld [vmem:[#allocation2 + $0x4c4] sm:$0xf] }
  0x6f   :  { %v5679_v24 = vld [vmem:[#allocation2 + $0xcc0] sm:$0xf]  ;;  %v5424_v30 = vor.u32 %v6441_v17, %v5423_v16  ;;  %3199 = vmatpush.bf16.msrb.mxu0 %v5168_v29  ;;  %v6141_v16 = vld [vmem:[#allocation2 + $0x184] sm:$0xf]  ;;  %v6732_v29 = vld [vmem:[#allocation1 + $0x36] sm:$0xff] }
  0x70   :  { %v6505_v25 = vld [vmem:[#allocation2 + $0xcdc] sm:$0xf0]  ;;  %v4241_v17 = vld [vmem:[#allocation2 + $0x1a0] sm:$0xf0] }
  0x71   :  { %v6727_v26 = vld [vmem:[#allocation1 + $0x9] sm:$0xff]  ;;  %v5680_v31 = vor.u32 %v6505_v25, %v5679_v24  ;;  %3212 = vmatpush.bf16.msrb.mxu1 %v5424_v30  ;;  %v4244_v30 = vor.u32 %v6141_v16, %v4241_v17 }
  0x72   :  { %v5935_v27 = vld [vmem:[#allocation2 + $0xec0] sm:$0xf]  ;;  %3164 = vmatmul.bf16.vlgmr.msra.gmra.mxu1 %v6727_v26  ;;  %v6269_v24 = vld [vmem:[#allocation2 + $0x584] sm:$0xf] }
  0x73   :  { %v6569_v28 = vld [vmem:[#allocation2 + $0xedc] sm:$0xf0]  ;;  %3225 = vmatpush.bf16.msrb.mxu2 %v5680_v31  ;;  %v4753_v25 = vld [vmem:[#allocation2 + $0x5a0] sm:$0xf0] }
  0x74   :  { %v5135_v32 = vld [vmem:[#allocation2 + $0x880] sm:$0xf]  ;;  %v5936_v35 = vor.u32 %v6569_v28, %v5935_v27  ;;  %v6333_v27 = vld [vmem:[#allocation2 + $0x784] sm:$0xf] }
  0x75   :  { %v6369_v33 = vld [vmem:[#allocation2 + $0x89c] sm:$0xf0]  ;;  %v5009_v28 = vld [vmem:[#allocation2 + $0x7a0] sm:$0xf0] }
  0x76   :  { %v5391_v34 = vld [vmem:[#allocation2 + $0xa80] sm:$0xf]  ;;  %v5136_v41 = vor.u32 %v6369_v33, %v5135_v32  ;;  %3238 = vmatpush.bf16.msrb.mxu3 %v5936_v35  ;;  %v6736_v32 = vld [vmem:[#allocation1 + $0x3f] sm:$0xff]  ;;  %v6133_v33 = vld [vmem:[#allocation2 + $0x144] sm:$0xf]  ;;  %v4756_v35 = vor.u32 %v6269_v24, %v4753_v25 }
  0x77   :  { %v6433_v36 = vld [vmem:[#allocation2 + $0xa9c] sm:$0xf0]  ;;  %v4657_v2 = vld [vmem:[#allocation2 + $0x4e0] sm:$0xf0] }
  0x78   :  { %v5647_v37 = vld [vmem:[#allocation2 + $0xc80] sm:$0xf]  ;;  %v5392_v42 = vor.u32 %v6433_v36, %v5391_v34  ;;  %3200 = vmatpush.bf16.msrb.mxu0 %v5136_v41  ;;  %v4500_v34 = vor.u32 %v6205_v18, %v4497_v23  ;;  %v4209_v36 = vld [vmem:[#allocation2 + $0x160] sm:$0xf0]  ;;  %v4660_v7 = vor.u32 %v6245_v1, %v4657_v2 }
  0x79   :  { %v6497_v38 = vld [vmem:[#allocation2 + $0xc9c] sm:$0xf0]  ;;  %v6261_v41 = vld [vmem:[#allocation2 + $0x544] sm:$0xf] }
  0x7a   :  { %v5903_v39 = vld [vmem:[#allocation2 + $0xe80] sm:$0xf]  ;;  %v5648_v43 = vor.u32 %v6497_v38, %v5647_v37  ;;  %3213 = vmatpush.bf16.msrb.mxu1 %v5392_v42  ;;  %v6197_v37 = vld [vmem:[#allocation2 + $0x344] sm:$0xf] }
  0x7b   :  { %v6561_v40 = vld [vmem:[#allocation2 + $0xe9c] sm:$0xf0]  ;;  %v6738_v38 = vld [vmem:[#allocation1 + $0x2d] sm:$0xff] }
  0x7c   :  { %v5103_v44 = vld [vmem:[#allocation2 + $0x840] sm:$0xf]  ;;  %v5904_v47 = vor.u32 %v6561_v40, %v5903_v39  ;;  %3226 = vmatpush.bf16.msrb.mxu2 %v5648_v43  ;;  %v5012_v39 = vor.u32 %v6333_v27, %v5009_v28  ;;  %v4465_v40 = vld [vmem:[#allocation2 + $0x360] sm:$0xf0] }
  0x7d   :  { %v6361_v45 = vld [vmem:[#allocation2 + $0x85c] sm:$0xf0]  ;;  %v4721_v42 = vld [vmem:[#allocation2 + $0x560] sm:$0xf0] }
  0x7e   :  { %v5359_v46 = vld [vmem:[#allocation2 + $0xa40] sm:$0xf]  ;;  %v5104_v53 = vor.u32 %v6361_v45, %v5103_v44  ;;  %3239 = vmatpush.bf16.msrb.mxu3 %v5904_v47  ;;  %v6325_v43 = vld [vmem:[#allocation2 + $0x744] sm:$0xf]  ;;  %v4212_v45 = vor.u32 %v6133_v33, %v4209_v36  ;;  %v4724_v47 = vor.u32 %v6261_v41, %v4721_v42 }
  0x7f   :  { %v6425_v48 = vld [vmem:[#allocation2 + $0xa5c] sm:$0xf0]  ;;  %v4977_v44 = vld [vmem:[#allocation2 + $0x760] sm:$0xf0] }
  0x80   :  { %v5615_v49 = vld [vmem:[#allocation2 + $0xc40] sm:$0xf]  ;;  %v5360_v56 = vor.u32 %v6425_v48, %v5359_v46  ;;  %3201 = vmatpush.bf16.msrb.mxu0 %v5104_v53  ;;  %v4468_v46 = vor.u32 %v6197_v37, %v4465_v40  ;;  %v6125_v48 = vld [vmem:[#allocation2 + $0x104] sm:$0xf] }
  0x81   :  { %v6489_v50 = vld [vmem:[#allocation2 + $0xc5c] sm:$0xf0]  ;;  %v6253_v53 = vld [vmem:[#allocation2 + $0x504] sm:$0xf] }
  0x82   :  { %v5871_v51 = vld [vmem:[#allocation2 + $0xe40] sm:$0xf]  ;;  %v5616_v57 = vor.u32 %v6489_v50, %v5615_v49  ;;  %3214 = vmatpush.bf16.msrb.mxu1 %v5360_v56  ;;  %v4177_v49 = vld [vmem:[#allocation2 + $0x120] sm:$0xf0] }
  0x83   :  { %v6553_v52 = vld [vmem:[#allocation2 + $0xe5c] sm:$0xf0]  ;;  %v6189_v50 = vld [vmem:[#allocation2 + $0x304] sm:$0xf] }
  0x84   :  { %v5071_v54 = vld [vmem:[#allocation2 + $0x800] sm:$0xf]  ;;  %v5872_v61 = vor.u32 %v6553_v52, %v5871_v51  ;;  %3227 = vmatpush.bf16.msrb.mxu2 %v5616_v57  ;;  %v4980_v51 = vor.u32 %v6325_v43, %v4977_v44  ;;  %v4433_v52 = vld [vmem:[#allocation2 + $0x320] sm:$0xf0]  ;;  %v4180_v57 = vor.u32 %v6125_v48, %v4177_v49 }
  0x85   :  { %v6353_v55 = vld [vmem:[#allocation2 + $0x81c] sm:$0xf0]  ;;  %v4945_v56 = vld [vmem:[#allocation2 + $0x720] sm:$0xf0] }
  0x86   :  { %v5327_v58 = vld [vmem:[#allocation2 + $0xa00] sm:$0xf]  ;;  %v5072_v4 = vor.u32 %v6353_v55, %v5071_v54  ;;  %3240 = vmatpush.bf16.msrb.mxu3 %v5872_v61  ;;  %v4689_v54 = vld [vmem:[#allocation2 + $0x520] sm:$0xf0] }
  0x87   :  { %v6417_v59 = vld [vmem:[#allocation2 + $0xa1c] sm:$0xf0]  ;;  %v6317_v55 = vld [vmem:[#allocation2 + $0x704] sm:$0xf] }
  0x88   :  { %v5583_v60 = vld [vmem:[#allocation2 + $0xc00] sm:$0xf]  ;;  %v5328_v8 = vor.u32 %v6417_v59, %v5327_v58  ;;  %3202 = vmatpush.bf16.msrb.mxu0 %v5072_v4  ;;  %v4436_v58 = vor.u32 %v6189_v50, %v4433_v52  ;;  %v4692_v59 = vor.u32 %v6253_v53, %v4689_v54  ;;  %v4145_v61 = vld [vmem:[#allocation2 + $0xe0] sm:$0xf0] }
  0x89   :  { %v6481_v62 = vld [vmem:[#allocation2 + $0xc1c] sm:$0xf0]  ;;  %v4913_v4 = vld [vmem:[#allocation2 + $0x6e0] sm:$0xf0] }
  0x8a   :  { %v5839_v63 = vld [vmem:[#allocation2 + $0xe00] sm:$0xf]  ;;  %v5584_v9 = vor.u32 %v6481_v62, %v5583_v60  ;;  %3215 = vmatpush.bf16.msrb.mxu1 %v5328_v8  ;;  %v6117_v60 = vld [vmem:[#allocation2 + $0xc4] sm:$0xf]  ;;  %v4916_v11 = vor.u32 %v6309_v3, %v4913_v4 }
  0x8b   :  { %v6545_v0 = vld [vmem:[#allocation2 + $0xe1c] sm:$0xf0]  ;;  %v6181_v62 = vld [vmem:[#allocation2 + $0x2c4] sm:$0xf]  ;;  %v4148_v5 = vor.u32 %v6117_v60, %v4145_v61 }
  0x8c   :  { %v5840_v12 = vor.u32 %v6545_v0, %v5839_v63  ;;  %3228 = vmatpush.bf16.msrb.mxu2 %v5584_v9  ;;  %3247 = vmatpush.bf16.msra.mxu0 %v4276_v13  ;;  %v6734_v31 = vld [vmem:[#allocation1 + $0x24] sm:$0xff]  ;;  %v4948_v63 = vor.u32 %v6317_v55, %v4945_v56  ;;  %v4401_v0 = vld [vmem:[#allocation2 + $0x2e0] sm:$0xf0] }
  0x8d   :  { %3203 = vmatmul.bf16.vlgmr.msrb.gmra.mxu0 %v6734_v31  ;;  %3216 = vmatmul.bf16.vlgmr.msrb.gmra.mxu1 %v6738_v38  ;;  %v4404_v6 = vor.u32 %v6181_v62, %v4401_v0  ;;  %v6109_v8 = vld [vmem:[#allocation2 + $0x84] sm:$0xf] }
  0x8e   :  { %3241 = vmatpush.bf16.msrb.mxu3 %v5840_v12  ;;  %3260 = vmatpush.bf16.msra.mxu1 %v4532_v14  ;;  %v4113_v9 = vld [vmem:[#allocation2 + $0xa0] sm:$0xf0] }
  0x8f   :  { %3229 = vmatmul.bf16.vlgmr.msrb.gmra.mxu2 %v6732_v29  ;;  %v4369_v12 = vld [vmem:[#allocation2 + $0x2a0] sm:$0xf0]  ;;  %v4116_v17 = vor.u32 %v6109_v8, %v4113_v9 }
  0x90   :  { %3273 = vmatpush.bf16.msra.mxu2 %v4788_v15  ;;  %3248 = vmatpush.bf16.msra.mxu0 %v4244_v30  ;;  %v6237_v13 = vld [vmem:[#allocation2 + $0x484] sm:$0xf]  ;;  %v4372_v18 = vor.u32 %v6173_v10, %v4369_v12 }
  0x91   :  { %3242 = vmatmul.bf16.vlgmr.msrb.gmra.mxu3 %v6736_v32  ;;  %v4625_v14 = vld [vmem:[#allocation2 + $0x4a0] sm:$0xf0] }
  0x92   :  { %3286 = vmatpush.bf16.msra.mxu3 %v5044_v19  ;;  %3261 = vmatpush.bf16.msra.mxu1 %v4500_v34  ;;  %v6301_v15 = vld [vmem:[#allocation2 + $0x684] sm:$0xf]  ;;  %v4628_v19 = vor.u32 %v6237_v13, %v4625_v14 }
  0x93   :  { %v4881_v16 = vld [vmem:[#allocation2 + $0x6a0] sm:$0xf0] }
  0x94   :  { %3274 = vmatpush.bf16.msra.mxu2 %v4756_v35  ;;  %3249 = vmatpush.bf16.msra.mxu0 %v4212_v45  ;;  %v6101_v23 = vld [vmem:[#allocation2 + $0x44] sm:$0xf]  ;;  %v4884_v27 = vor.u32 %v6301_v15, %v4881_v16 }
  0x95   :  { %v4081_v24 = vld [vmem:[#allocation2 + $0x60] sm:$0xf0] }
  0x96   :  { %3287 = vmatpush.bf16.msra.mxu3 %v5012_v39  ;;  %3262 = vmatpush.bf16.msra.mxu1 %v4468_v46  ;;  %v6165_v25 = vld [vmem:[#allocation2 + $0x244] sm:$0xf]  ;;  %v4084_v36 = vor.u32 %v6101_v23, %v4081_v24 }
  0x97   :  { %v4337_v28 = vld [vmem:[#allocation2 + $0x260] sm:$0xf0] }
  0x98   :  { %3275 = vmatpush.bf16.msra.mxu2 %v4724_v47  ;;  %3250 = vmatpush.bf16.msra.mxu0 %v4180_v57  ;;  %v6229_v30 = vld [vmem:[#allocation2 + $0x444] sm:$0xf]  ;;  %v4340_v40 = vor.u32 %v6165_v25, %v4337_v28 }
  0x99   :  { %v4593_v33 = vld [vmem:[#allocation2 + $0x460] sm:$0xf0] }
  0x9a   :  { %3288 = vmatpush.bf16.msra.mxu3 %v4980_v51  ;;  %3263 = vmatpush.bf16.msra.mxu1 %v4436_v58  ;;  %v6293_v34 = vld [vmem:[#allocation2 + $0x644] sm:$0xf]  ;;  %v4596_v41 = vor.u32 %v6229_v30, %v4593_v33 }
  0x9b   :  { %v4849_v35 = vld [vmem:[#allocation2 + $0x660] sm:$0xf0] }
  0x9c   :  { %3276 = vmatpush.bf16.msra.mxu2 %v4692_v59  ;;  %3251 = vmatpush.bf16.msra.mxu0 %v4148_v5  ;;  %v6093_v37 = vld [vmem:[#allocation2 + $0x4] sm:$0xf]  ;;  %v4852_v45 = vor.u32 %v6293_v34, %v4849_v35 }
  0x9d   :  { %v4049_v39 = vld [vmem:[#allocation2 + $0x20] sm:$0xf0] }
  0x9e   :  { %3289 = vmatpush.bf16.msra.mxu3 %v4948_v63  ;;  %3264 = vmatpush.bf16.msra.mxu1 %v4404_v6  ;;  %v6157_v42 = vld [vmem:[#allocation2 + $0x204] sm:$0xf]  ;;  %v4052_v52 = vor.u32 %v6093_v37, %v4049_v39 }
  0x9f   :  { %v4305_v43 = vld [vmem:[#allocation2 + $0x220] sm:$0xf0] }
  0xa0   :  { %3277 = vmatpush.bf16.msra.mxu2 %v4660_v7  ;;  %3252 = vmatpush.bf16.msra.mxu0 %v4116_v17  ;;  %v6221_v44 = vld [vmem:[#allocation2 + $0x404] sm:$0xf]  ;;  %v4308_v56 = vor.u32 %v6157_v42, %v4305_v43 }
  0xa1   :  { %v4561_v46 = vld [vmem:[#allocation2 + $0x420] sm:$0xf0] }
  0xa2   :  { %3290 = vmatpush.bf16.msra.mxu3 %v4916_v11  ;;  %3265 = vmatpush.bf16.msra.mxu1 %v4372_v18  ;;  %v6285_v47 = vld [vmem:[#allocation2 + $0x604] sm:$0xf]  ;;  %v4564_v57 = vor.u32 %v6221_v44, %v4561_v46 }
  0xa3   :  { %v4817_v48 = vld [vmem:[#allocation2 + $0x620] sm:$0xf0] }
  0xa4   :  { %3278 = vmatpush.bf16.msra.mxu2 %v4628_v19  ;;  %v6405_v49 = vld [vmem:[#allocation2 + $0x9c4] sm:$0xf]  ;;  %3253 = vmatpush.bf16.msra.mxu0 %v4084_v36  ;;  %v4820_v60 = vor.u32 %v6285_v47, %v4817_v48 }
  0xa5   :  { %v5297_v50 = vld [vmem:[#allocation2 + $0x9e0] sm:$0xf0] }
  0xa6   :  { %3291 = vmatpush.bf16.msra.mxu3 %v4884_v27  ;;  %v6469_v51 = vld [vmem:[#allocation2 + $0xbc4] sm:$0xf]  ;;  %3266 = vmatpush.bf16.msra.mxu1 %v4340_v40  ;;  %v5300_v61 = vor.u32 %v6405_v49, %v5297_v50 }
  0xa7   :  { %v5553_v53 = vld [vmem:[#allocation2 + $0xbe0] sm:$0xf0] }
  0xa8   :  { %v6533_v54 = vld [vmem:[#allocation2 + $0xdc4] sm:$0xf]  ;;  %3279 = vmatpush.bf16.msra.mxu2 %v4596_v41  ;;  %v5556_v62 = vor.u32 %v6469_v51, %v5553_v53  ;;  %3254 = vmatpush.bf16.msra.mxu0 %v4052_v52 }
  0xa9   :  { %v5809_v55 = vld [vmem:[#allocation2 + $0xde0] sm:$0xf0] }
  0xaa   :  { %v6597_v58 = vld [vmem:[#allocation2 + $0xfc4] sm:$0xf]  ;;  %3292 = vmatpush.bf16.msra.mxu3 %v4852_v45  ;;  %v5812_v63 = vor.u32 %v6533_v54, %v5809_v55  ;;  %3267 = vmatpush.bf16.msra.mxu1 %v4308_v56 }
  0xab   :  { %v6065_v59 = vld [vmem:[#allocation2 + $0xfe0] sm:$0xf0]  ;;  %3255 = vmatmul.bf16.vlgmr.msra.gmra.mxu0 %v6722_v21 }
  0xac   :  { %v6397_v0 = vld [vmem:[#allocation2 + $0x984] sm:$0xf]  ;;  %v6068_v3 = vor.u32 %v6597_v58, %v6065_v59  ;;  %3280 = vmatpush.bf16.msra.mxu2 %v4564_v57  ;;  %3299 = vmatpush.bf16.msrb.mxu0 %v5300_v61 }
  0xad   :  { %v5265_v1 = vld [vmem:[#allocation2 + $0x9a0] sm:$0xf0]  ;;  %3268 = vmatmul.bf16.vlgmr.msra.gmra.mxu1 %v6727_v26 }
  0xae   :  { %v6461_v2 = vld [vmem:[#allocation2 + $0xb84] sm:$0xf]  ;;  %3293 = vmatpush.bf16.msra.mxu3 %v4820_v60  ;;  %v5268_v9 = vor.u32 %v6397_v0, %v5265_v1  ;;  %3312 = vmatpush.bf16.msrb.mxu1 %v5556_v62 }
  0xaf   :  { %v5521_v4 = vld [vmem:[#allocation2 + $0xba0] sm:$0xf0]  ;;  %3281 = vmatmul.bf16.vlgmr.msra.gmra.mxu2 %v6720_v20 }
  0xb0   :  { %v6525_v5 = vld [vmem:[#allocation2 + $0xd84] sm:$0xf]  ;;  %3325 = vmatpush.bf16.msrb.mxu2 %v5812_v63  ;;  %v5524_v10 = vor.u32 %v6461_v2, %v5521_v4  ;;  %3300 = vmatpush.bf16.msrb.mxu0 %v5268_v9 }
  0xb1   :  { %v5777_v6 = vld [vmem:[#allocation2 + $0xda0] sm:$0xf0]  ;;  %3294 = vmatmul.bf16.vlgmr.msra.gmra.mxu3 %v6724_v22 }
  0xb2   :  { %v6589_v7 = vld [vmem:[#allocation2 + $0xf84] sm:$0xf]  ;;  %v5780_v11 = vor.u32 %v6525_v5, %v5777_v6  ;;  %3338 = vmatpush.bf16.msrb.mxu3 %v6068_v3  ;;  %3313 = vmatpush.bf16.msrb.mxu1 %v5524_v10 }
  0xb3   :  { %v6033_v8 = vld [vmem:[#allocation2 + $0xfa0] sm:$0xf0] }
  0xb4   :  { %v6389_v12 = vld [vmem:[#allocation2 + $0x944] sm:$0xf]  ;;  %v6036_v15 = vor.u32 %v6589_v7, %v6033_v8  ;;  %3326 = vmatpush.bf16.msrb.mxu2 %v5780_v11 }
  0xb5   :  { %v5233_v13 = vld [vmem:[#allocation2 + $0x960] sm:$0xf0] }
  0xb6   :  { %v6453_v14 = vld [vmem:[#allocation2 + $0xb44] sm:$0xf]  ;;  %v5236_v24 = vor.u32 %v6389_v12, %v5233_v13  ;;  %3339 = vmatpush.bf16.msrb.mxu3 %v6036_v15 }
  0xb7   :  { %v5489_v16 = vld [vmem:[#allocation2 + $0xb60] sm:$0xf0] }
  0xb8   :  { %v6517_v17 = vld [vmem:[#allocation2 + $0xd44] sm:$0xf]  ;;  %v5492_v25 = vor.u32 %v6453_v14, %v5489_v16  ;;  %3301 = vmatpush.bf16.msrb.mxu0 %v5236_v24 }
  0xb9   :  { %v5745_v18 = vld [vmem:[#allocation2 + $0xd60] sm:$0xf0] }
  0xba   :  { %v6581_v19 = vld [vmem:[#allocation2 + $0xf44] sm:$0xf]  ;;  %v5748_v27 = vor.u32 %v6517_v17, %v5745_v18  ;;  %3314 = vmatpush.bf16.msrb.mxu1 %v5492_v25 }
  0xbb   :  { %v6001_v23 = vld [vmem:[#allocation2 + $0xf60] sm:$0xf0] }
  0xbc   :  { %v6381_v28 = vld [vmem:[#allocation2 + $0x904] sm:$0xf]  ;;  %v6004_v34 = vor.u32 %v6581_v19, %v6001_v23  ;;  %3327 = vmatpush.bf16.msrb.mxu2 %v5748_v27 }
  0xbd   :  { %v5201_v30 = vld [vmem:[#allocation2 + $0x920] sm:$0xf0] }
  0xbe   :  { %v6445_v33 = vld [vmem:[#allocation2 + $0xb04] sm:$0xf]  ;;  %v5204_v41 = vor.u32 %v6381_v28, %v5201_v30  ;;  %3340 = vmatpush.bf16.msrb.mxu3 %v6004_v34  ;;  %v4279_v30 = vld [vmem:[#allocation2 + $0x1c8] sm:$0xf] }
  0xbf   :  { %v5457_v35 = vld [vmem:[#allocation2 + $0xb20] sm:$0xf0]  ;;  %v4535_v34 = vld [vmem:[#allocation2 + $0x3c8] sm:$0xf] }
  0xc0   :  { %v6509_v36 = vld [vmem:[#allocation2 + $0xd04] sm:$0xf]  ;;  %v5460_v42 = vor.u32 %v6445_v33, %v5457_v35  ;;  %3302 = vmatpush.bf16.msrb.mxu0 %v5204_v41  ;;  %v6154_v33 = vld [vmem:[#allocation2 + $0x1e4] sm:$0xf0] }
  0xc1   :  { %v5713_v37 = vld [vmem:[#allocation2 + $0xd20] sm:$0xf0] }
  0xc2   :  { %v6573_v39 = vld [vmem:[#allocation2 + $0xf04] sm:$0xf]  ;;  %v5716_v43 = vor.u32 %v6509_v36, %v5713_v37  ;;  %3315 = vmatpush.bf16.msrb.mxu1 %v5460_v42  ;;  %v6218_v36 = vld [vmem:[#allocation2 + $0x3e4] sm:$0xf0] }
  0xc3   :  { %v5969_v40 = vld [vmem:[#allocation2 + $0xf20] sm:$0xf0]  ;;  %v4791_v37 = vld [vmem:[#allocation2 + $0x5c8] sm:$0xf] }
  0xc4   :  { %v6373_v44 = vld [vmem:[#allocation2 + $0x8c4] sm:$0xf]  ;;  %v5972_v47 = vor.u32 %v6573_v39, %v5969_v40  ;;  %3328 = vmatpush.bf16.msrb.mxu2 %v5716_v43  ;;  %v6282_v39 = vld [vmem:[#allocation2 + $0x5e4] sm:$0xf0] }
  0xc5   :  { %v5169_v45 = vld [vmem:[#allocation2 + $0x8e0] sm:$0xf0]  ;;  %v5047_v42 = vld [vmem:[#allocation2 + $0x7c8] sm:$0xf] }
  0xc6   :  { %v6437_v46 = vld [vmem:[#allocation2 + $0xac4] sm:$0xf]  ;;  %v5172_v53 = vor.u32 %v6373_v44, %v5169_v45  ;;  %3341 = vmatpush.bf16.msrb.mxu3 %v5972_v47  ;;  %v6346_v43 = vld [vmem:[#allocation2 + $0x7e4] sm:$0xf0]  ;;  %v4280_v45 = vor.u32 %v6154_v33, %v4279_v30  ;;  %v4792_v47 = vor.u32 %v6282_v39, %v4791_v37 }
  0xc7   :  { %v5425_v48 = vld [vmem:[#allocation2 + $0xae0] sm:$0xf0]  ;;  %v4375_v37 = vld [vmem:[#allocation2 + $0x288] sm:$0xf] }
  0xc8   :  { %v6501_v49 = vld [vmem:[#allocation2 + $0xcc4] sm:$0xf]  ;;  %v5428_v54 = vor.u32 %v6437_v46, %v5425_v48  ;;  %3303 = vmatpush.bf16.msrb.mxu0 %v5172_v53  ;;  %v4536_v46 = vor.u32 %v6218_v36, %v4535_v34  ;;  %v4247_v48 = vld [vmem:[#allocation2 + $0x188] sm:$0xf] }
  0xc9   :  { %v5681_v50 = vld [vmem:[#allocation2 + $0xce0] sm:$0xf0]  ;;  %v4759_v53 = vld [vmem:[#allocation2 + $0x588] sm:$0xf] }
  0xca   :  { %v6565_v51 = vld [vmem:[#allocation2 + $0xec4] sm:$0xf]  ;;  %v5684_v55 = vor.u32 %v6501_v49, %v5681_v50  ;;  %3316 = vmatpush.bf16.msrb.mxu1 %v5428_v54  ;;  %v6146_v49 = vld [vmem:[#allocation2 + $0x1a4] sm:$0xf0] }
  0xcb   :  { %v5937_v52 = vld [vmem:[#allocation2 + $0xee0] sm:$0xf0]  ;;  %v4503_v50 = vld [vmem:[#allocation2 + $0x388] sm:$0xf] }
  0xcc   :  { %v6365_v56 = vld [vmem:[#allocation2 + $0x884] sm:$0xf]  ;;  %v5940_v59 = vor.u32 %v6565_v51, %v5937_v52  ;;  %3329 = vmatpush.bf16.msrb.mxu2 %v5684_v55  ;;  %v5048_v51 = vor.u32 %v6346_v43, %v5047_v42  ;;  %v6210_v52 = vld [vmem:[#allocation2 + $0x3a4] sm:$0xf0] }
  0xcd   :  { %v5137_v57 = vld [vmem:[#allocation2 + $0x8a0] sm:$0xf0]  ;;  %v6274_v54 = vld [vmem:[#allocation2 + $0x5a4] sm:$0xf0] }
  0xce   :  { %v6429_v58 = vld [vmem:[#allocation2 + $0xa84] sm:$0xf]  ;;  %v5140_v1 = vor.u32 %v6365_v56, %v5137_v57  ;;  %3342 = vmatpush.bf16.msrb.mxu3 %v5940_v59  ;;  %v5015_v55 = vld [vmem:[#allocation2 + $0x788] sm:$0xf]  ;;  %v4248_v57 = vor.u32 %v6146_v49, %v4247_v48  ;;  %v4760_v59 = vor.u32 %v6274_v54, %v4759_v53 }
  0xcf   :  { %v5393_v60 = vld [vmem:[#allocation2 + $0xaa0] sm:$0xf0]  ;;  %v6338_v56 = vld [vmem:[#allocation2 + $0x7a4] sm:$0xf0] }
  0xd0   :  { %v6493_v61 = vld [vmem:[#allocation2 + $0xc84] sm:$0xf]  ;;  %v5396_v2 = vor.u32 %v6429_v58, %v5393_v60  ;;  %3304 = vmatpush.bf16.msrb.mxu0 %v5140_v1  ;;  %v4504_v58 = vor.u32 %v6210_v52, %v4503_v50  ;;  %v4215_v60 = vld [vmem:[#allocation2 + $0x148] sm:$0xf] }
  0xd1   :  { %v5649_v62 = vld [vmem:[#allocation2 + $0xca0] sm:$0xf0]  ;;  %v4727_v1 = vld [vmem:[#allocation2 + $0x548] sm:$0xf] }
  0xd2   :  { %v6557_v63 = vld [vmem:[#allocation2 + $0xe84] sm:$0xf]  ;;  %v5652_v3 = vor.u32 %v6493_v61, %v5649_v62  ;;  %3317 = vmatpush.bf16.msrb.mxu1 %v5396_v2  ;;  %v6138_v61 = vld [vmem:[#allocation2 + $0x164] sm:$0xf0] }
  0xd3   :  { %v5905_v0 = vld [vmem:[#allocation2 + $0xea0] sm:$0xf0]  ;;  %v4471_v62 = vld [vmem:[#allocation2 + $0x348] sm:$0xf] }
  0xd4   :  { %v6357_v4 = vld [vmem:[#allocation2 + $0x844] sm:$0xf]  ;;  %v5908_v7 = vor.u32 %v6557_v63, %v5905_v0  ;;  %3330 = vmatpush.bf16.msrb.mxu2 %v5652_v3  ;;  %v5016_v63 = vor.u32 %v6338_v56, %v5015_v55  ;;  %v6202_v0 = vld [vmem:[#allocation2 + $0x364] sm:$0xf0] }
  0xd5   :  { %v5105_v5 = vld [vmem:[#allocation2 + $0x860] sm:$0xf0]  ;;  %v6266_v2 = vld [vmem:[#allocation2 + $0x564] sm:$0xf0] }
  0xd6   :  { %v6421_v6 = vld [vmem:[#allocation2 + $0xa44] sm:$0xf]  ;;  %v5108_v13 = vor.u32 %v6357_v4, %v5105_v5  ;;  %3343 = vmatpush.bf16.msrb.mxu3 %v5908_v7  ;;  %v4983_v3 = vld [vmem:[#allocation2 + $0x748] sm:$0xf]  ;;  %v4216_v5 = vor.u32 %v6138_v61, %v4215_v60  ;;  %v4728_v7 = vor.u32 %v6266_v2, %v4727_v1 }
  0xd7   :  { %v5361_v8 = vld [vmem:[#allocation2 + $0xa60] sm:$0xf0]  ;;  %v6330_v4 = vld [vmem:[#allocation2 + $0x764] sm:$0xf0] }
  0xd8   :  { %v6485_v9 = vld [vmem:[#allocation2 + $0xc44] sm:$0xf]  ;;  %v5364_v16 = vor.u32 %v6421_v6, %v5361_v8  ;;  %3305 = vmatpush.bf16.msrb.mxu0 %v5108_v13  ;;  %v4472_v6 = vor.u32 %v6202_v0, %v4471_v62  ;;  %v4183_v8 = vld [vmem:[#allocation2 + $0x108] sm:$0xf] }
  0xd9   :  { %v5617_v10 = vld [vmem:[#allocation2 + $0xc60] sm:$0xf0]  ;;  %v4951_v13 = vld [vmem:[#allocation2 + $0x708] sm:$0xf] }
  0xda   :  { %v6549_v11 = vld [vmem:[#allocation2 + $0xe44] sm:$0xf]  ;;  %v5620_v17 = vor.u32 %v6485_v9, %v5617_v10  ;;  %3318 = vmatpush.bf16.msrb.mxu1 %v5364_v16  ;;  %v4439_v9 = vld [vmem:[#allocation2 + $0x308] sm:$0xf]  ;;  %v4984_v10 = vor.u32 %v6330_v4, %v4983_v3 }
  0xdb   :  { %v5873_v12 = vld [vmem:[#allocation2 + $0xe60] sm:$0xf0]  ;;  %v4151_v16 = vld [vmem:[#allocation2 + $0xc8] sm:$0xf] }
  0xdc   :  { %v6349_v14 = vld [vmem:[#allocation2 + $0x804] sm:$0xf]  ;;  %v5876_v24 = vor.u32 %v6549_v11, %v5873_v12  ;;  %3331 = vmatpush.bf16.msrb.mxu2 %v5620_v17  ;;  %v6194_v11 = vld [vmem:[#allocation2 + $0x324] sm:$0xf0] }
  0xdd   :  { %v5073_v15 = vld [vmem:[#allocation2 + $0x820] sm:$0xf0]  ;;  %v4695_v12 = vld [vmem:[#allocation2 + $0x508] sm:$0xf] }
  0xde   :  { %v6413_v18 = vld [vmem:[#allocation2 + $0xa04] sm:$0xf]  ;;  %v5076_v35 = vor.u32 %v6349_v14, %v5073_v15  ;;  %3344 = vmatpush.bf16.msrb.mxu3 %v5876_v24  ;;  %v6122_v17 = vld [vmem:[#allocation2 + $0xe4] sm:$0xf0] }
  0xdf   :  { %v5329_v19 = vld [vmem:[#allocation2 + $0xa20] sm:$0xf0]  ;;  %v4663_v24 = vld [vmem:[#allocation2 + $0x4c8] sm:$0xf]  ;;  %v4152_v30 = vor.u32 %v6122_v17, %v4151_v16 }
  0xe0   :  { %v6477_v23 = vld [vmem:[#allocation2 + $0xc04] sm:$0xf]  ;;  %v5332_v40 = vor.u32 %v6413_v18, %v5329_v19  ;;  %3306 = vmatpush.bf16.msrb.mxu0 %v5076_v35  ;;  %v4407_v18 = vld [vmem:[#allocation2 + $0x2c8] sm:$0xf] }
  0xe1   :  { %v5585_v25 = vld [vmem:[#allocation2 + $0xc20] sm:$0xf0]  ;;  %v4119_v35 = vld [vmem:[#allocation2 + $0x88] sm:$0xf] }
  0xe2   :  { %v6541_v27 = vld [vmem:[#allocation2 + $0xe04] sm:$0xf]  ;;  %v5588_v41 = vor.u32 %v6477_v23, %v5585_v25  ;;  %3319 = vmatpush.bf16.msrb.mxu1 %v5332_v40  ;;  %v6186_v23 = vld [vmem:[#allocation2 + $0x2e4] sm:$0xf0] }
  0xe3   :  { %v5841_v28 = vld [vmem:[#allocation2 + $0xe20] sm:$0xf0]  ;;  %3307 = vmatmul.bf16.vlgmr.msrb.gmra.mxu0 %v6734_v31  ;;  %v6258_v31 = vld [vmem:[#allocation2 + $0x524] sm:$0xf0]  ;;  %v4408_v33 = vor.u32 %v6186_v23, %v4407_v18 }
  0xe4   :  { %v5844_v44 = vor.u32 %v6541_v27, %v5841_v28  ;;  %3332 = vmatpush.bf16.msrb.mxu2 %v5588_v41  ;;  %3351 = vmatpush.bf16.msra.mxu0 %v4280_v45  ;;  %v4696_v15 = vor.u32 %v6258_v31, %v4695_v12  ;;  %v6250_v25 = vld [vmem:[#allocation2 + $0x4e4] sm:$0xf0] }
  0xe5   :  { %3320 = vmatmul.bf16.vlgmr.msrb.gmra.mxu1 %v6738_v38  ;;  %v4440_v38 = vor.u32 %v6194_v11, %v4439_v9  ;;  %v4919_v27 = vld [vmem:[#allocation2 + $0x6c8] sm:$0xf]  ;;  %v4664_v34 = vor.u32 %v6250_v25, %v4663_v24 }
  0xe6   :  { %3345 = vmatpush.bf16.msrb.mxu3 %v5844_v44  ;;  %3364 = vmatpush.bf16.msra.mxu1 %v4536_v46  ;;  %v6314_v28 = vld [vmem:[#allocation2 + $0x6e4] sm:$0xf0] }
  0xe7   :  { %3333 = vmatmul.bf16.vlgmr.msrb.gmra.mxu2 %v6732_v29  ;;  %v6130_v29 = vld [vmem:[#allocation2 + $0x124] sm:$0xf0]  ;;  %v4920_v39 = vor.u32 %v6314_v28, %v4919_v27 }
  0xe8   :  { %3377 = vmatpush.bf16.msra.mxu2 %v4792_v47  ;;  %3352 = vmatpush.bf16.msra.mxu0 %v4248_v57  ;;  %v4184_v14 = vor.u32 %v6130_v29, %v4183_v8  ;;  %v6114_v36 = vld [vmem:[#allocation2 + $0xa4] sm:$0xf0] }
  0xe9   :  { %3346 = vmatmul.bf16.vlgmr.msrb.gmra.mxu3 %v6736_v32  ;;  %v6322_v32 = vld [vmem:[#allocation2 + $0x724] sm:$0xf0]  ;;  %v4120_v45 = vor.u32 %v6114_v36, %v4119_v35 }
  0xea   :  { %3390 = vmatpush.bf16.msra.mxu3 %v5048_v51  ;;  %3365 = vmatpush.bf16.msra.mxu1 %v4504_v58  ;;  %v4952_v19 = vor.u32 %v6322_v32, %v4951_v13  ;;  %v6178_v40 = vld [vmem:[#allocation2 + $0x2a4] sm:$0xf0] }
  0xeb   :  { %v4631_v41 = vld [vmem:[#allocation2 + $0x488] sm:$0xf]  ;;  %v4376_v46 = vor.u32 %v6178_v40, %v4375_v37 }
  0xec   :  { %3378 = vmatpush.bf16.msra.mxu2 %v4760_v59  ;;  %3353 = vmatpush.bf16.msra.mxu0 %v4216_v5  ;;  %v6242_v42 = vld [vmem:[#allocation2 + $0x4a4] sm:$0xf0] }
  0xed   :  { %v4887_v43 = vld [vmem:[#allocation2 + $0x688] sm:$0xf]  ;;  %v4632_v47 = vor.u32 %v6242_v42, %v4631_v41 }
  0xee   :  { %3391 = vmatpush.bf16.msra.mxu3 %v5016_v63  ;;  %3366 = vmatpush.bf16.msra.mxu1 %v4472_v6  ;;  %v6306_v44 = vld [vmem:[#allocation2 + $0x6a4] sm:$0xf0] }
  0xef   :  { %v4087_v48 = vld [vmem:[#allocation2 + $0x48] sm:$0xf]  ;;  %v4888_v51 = vor.u32 %v6306_v44, %v4887_v43 }
  0xf0   :  { %3379 = vmatpush.bf16.msra.mxu2 %v4728_v7  ;;  %3354 = vmatpush.bf16.msra.mxu0 %v4184_v14  ;;  %v6106_v49 = vld [vmem:[#allocation2 + $0x64] sm:$0xf0] }
  0xf1   :  { %v4343_v50 = vld [vmem:[#allocation2 + $0x248] sm:$0xf]  ;;  %v4088_v57 = vor.u32 %v6106_v49, %v4087_v48 }
  0xf2   :  { %3392 = vmatpush.bf16.msra.mxu3 %v4984_v10  ;;  %3367 = vmatpush.bf16.msra.mxu1 %v4440_v38  ;;  %v6170_v52 = vld [vmem:[#allocation2 + $0x264] sm:$0xf0] }
  0xf3   :  { %v4599_v53 = vld [vmem:[#allocation2 + $0x448] sm:$0xf]  ;;  %v4344_v60 = vor.u32 %v6170_v52, %v4343_v50 }
  0xf4   :  { %3380 = vmatpush.bf16.msra.mxu2 %v4696_v15  ;;  %3355 = vmatpush.bf16.msra.mxu0 %v4152_v30  ;;  %v6234_v54 = vld [vmem:[#allocation2 + $0x464] sm:$0xf0] }
  0xf5   :  { %v4855_v55 = vld [vmem:[#allocation2 + $0x648] sm:$0xf]  ;;  %v4600_v61 = vor.u32 %v6234_v54, %v4599_v53 }
  0xf6   :  { %3393 = vmatpush.bf16.msra.mxu3 %v4952_v19  ;;  %3368 = vmatpush.bf16.msra.mxu1 %v4408_v33  ;;  %v6298_v56 = vld [vmem:[#allocation2 + $0x664] sm:$0xf0] }
  0xf7   :  { %v4055_v58 = vld [vmem:[#allocation2 + $0x8] sm:$0xf]  ;;  %v4856_v1 = vor.u32 %v6298_v56, %v4855_v55 }
  0xf8   :  { %3381 = vmatpush.bf16.msra.mxu2 %v4664_v34  ;;  %3356 = vmatpush.bf16.msra.mxu0 %v4120_v45  ;;  %v6098_v59 = vld [vmem:[#allocation2 + $0x24] sm:$0xf0] }
  0xf9   :  { %v4311_v62 = vld [vmem:[#allocation2 + $0x208] sm:$0xf]  ;;  %v4056_v8 = vor.u32 %v6098_v59, %v4055_v58 }
  0xfa   :  { %3394 = vmatpush.bf16.msra.mxu3 %v4920_v39  ;;  %3369 = vmatpush.bf16.msra.mxu1 %v4376_v46  ;;  %v6162_v63 = vld [vmem:[#allocation2 + $0x224] sm:$0xf0] }
  0xfb   :  { %v4567_v0 = vld [vmem:[#allocation2 + $0x408] sm:$0xf]  ;;  %v4312_v11 = vor.u32 %v6162_v63, %v4311_v62 }
  0xfc   :  { %3382 = vmatpush.bf16.msra.mxu2 %v4632_v47  ;;  %v6226_v2 = vld [vmem:[#allocation2 + $0x424] sm:$0xf0]  ;;  %3357 = vmatpush.bf16.msra.mxu0 %v4088_v57 }
  0xfd   :  { %v4823_v3 = vld [vmem:[#allocation2 + $0x608] sm:$0xf]  ;;  %v4568_v12 = vor.u32 %v6226_v2, %v4567_v0 }
  0xfe   :  { %3395 = vmatpush.bf16.msra.mxu3 %v4888_v51  ;;  %v6290_v4 = vld [vmem:[#allocation2 + $0x624] sm:$0xf0]  ;;  %3370 = vmatpush.bf16.msra.mxu1 %v4344_v60 }
  0xff   :  { %v5303_v5 = vld [vmem:[#allocation2 + $0x9c8] sm:$0xf]  ;;  %v4824_v32 = vor.u32 %v6290_v4, %v4823_v3 }
 0x100   :  { %v6410_v6 = vld [vmem:[#allocation2 + $0x9e4] sm:$0xf0]  ;;  %3383 = vmatpush.bf16.msra.mxu2 %v4600_v61  ;;  %3358 = vmatpush.bf16.msra.mxu0 %v4056_v8 }
 0x101   :  { %v5559_v7 = vld [vmem:[#allocation2 + $0xbc8] sm:$0xf]  ;;  %v5304_v14 = vor.u32 %v6410_v6, %v5303_v5 }
 0x102   :  { %v6474_v29 = vld [vmem:[#allocation2 + $0xbe4] sm:$0xf0]  ;;  %3396 = vmatpush.bf16.msra.mxu3 %v4856_v1  ;;  %3371 = vmatpush.bf16.msra.mxu1 %v4312_v11 }
 0x103   :  { %v5815_v9 = vld [vmem:[#allocation2 + $0xdc8] sm:$0xf]  ;;  %v5560_v38 = vor.u32 %v6474_v29, %v5559_v7  ;;  %3359 = vmatmul.bf16.vlgmr.msra.gmra.mxu0 %v6722_v21 }
 0x104   :  { %v6538_v10 = vld [vmem:[#allocation2 + $0xde4] sm:$0xf0]  ;;  %3384 = vmatpush.bf16.msra.mxu2 %v4568_v12  ;;  %3403 = vmatpush.bf16.msrb.mxu0 %v5304_v14 }
 0x105   :  { %v6071_v31 = vld [vmem:[#allocation2 + $0xfc8] sm:$0xf]  ;;  %v5816_v15 = vor.u32 %v6538_v10, %v5815_v9  ;;  %3372 = vmatmul.bf16.vlgmr.msra.gmra.mxu1 %v6727_v26 }
 0x106   :  { %v6602_v13 = vld [vmem:[#allocation2 + $0xfe4] sm:$0xf0]  ;;  %3397 = vmatpush.bf16.msra.mxu3 %v4824_v32  ;;  %3416 = vmatpush.bf16.msrb.mxu1 %v5560_v38 }
 0x107   :  { %v5271_v16 = vld [vmem:[#allocation2 + $0x988] sm:$0xf]  ;;  %v6072_v19 = vor.u32 %v6602_v13, %v6071_v31  ;;  %3385 = vmatmul.bf16.vlgmr.msra.gmra.mxu2 %v6720_v20  ;;  %v3152_v31 = vpop.f32.mrf.mxu0 }
 0x108   :  { %v6402_v17 = vld [vmem:[#allocation2 + $0x9a4] sm:$0xf0]  ;;  %3429 = vmatpush.bf16.msrb.mxu2 %v5816_v15 }
 0x109   :  { %v5527_v18 = vld [vmem:[#allocation2 + $0xb88] sm:$0xf]  ;;  %v5272_v30 = vor.u32 %v6402_v17, %v5271_v16  ;;  %3398 = vmatmul.bf16.vlgmr.msra.gmra.mxu3 %v6724_v22  ;;  %v3165_v16 = vpop.f32.mrf.mxu1 }
 0x10a   :  { %v6466_v23 = vld [vmem:[#allocation2 + $0xba4] sm:$0xf0]  ;;  %3442 = vmatpush.bf16.msrb.mxu3 %v6072_v19 }
 0x10b   :  { %v5783_v24 = vld [vmem:[#allocation2 + $0xd88] sm:$0xf]  ;;  %v5528_v33 = vor.u32 %v6466_v23, %v5527_v18  ;;  %3404 = vmatpush.bf16.msrb.mxu0 %v5272_v30 }
 0x10c   :  { %v6530_v25 = vld [vmem:[#allocation2 + $0xda4] sm:$0xf0] }
 0x10d   :  { %v6039_v27 = vld [vmem:[#allocation2 + $0xf88] sm:$0xf]  ;;  %v5784_v34 = vor.u32 %v6530_v25, %v5783_v24  ;;  %3417 = vmatpush.bf16.msrb.mxu1 %v5528_v33  ;;  %v3166_v24 = vadd.f32 %v3165_v16, %v3152_v31  ;;  %v6764_v16 = vld [vmem:[#allocation1 + $0x3f] sm:$0xff] }
 0x10e   :  { %v6594_v28 = vld [vmem:[#allocation2 + $0xfa4] sm:$0xf0] }
 0x10f   :  { %v5239_v35 = vld [vmem:[#allocation2 + $0x948] sm:$0xf]  ;;  %v6040_v39 = vor.u32 %v6594_v28, %v6039_v27  ;;  %3430 = vmatpush.bf16.msrb.mxu2 %v5784_v34 }
 0x110   :  { %v6394_v36 = vld [vmem:[#allocation2 + $0x964] sm:$0xf0] }
 0x111   :  { %v5495_v37 = vld [vmem:[#allocation2 + $0xb48] sm:$0xf]  ;;  %v5240_v45 = vor.u32 %v6394_v36, %v5239_v35  ;;  %3443 = vmatpush.bf16.msrb.mxu3 %v6040_v39 }
 0x112   :  { %v6458_v40 = vld [vmem:[#allocation2 + $0xb64] sm:$0xf0] }
 0x113   :  { %v5751_v41 = vld [vmem:[#allocation2 + $0xd48] sm:$0xf]  ;;  %v5496_v46 = vor.u32 %v6458_v40, %v5495_v37  ;;  %3405 = vmatpush.bf16.msrb.mxu0 %v5240_v45  ;;  %v3178_v40 = vpop.f32.mrf.mxu2 }
 0x114   :  { %v6522_v42 = vld [vmem:[#allocation2 + $0xd64] sm:$0xf0]  ;;  %v3179_v45 = vadd.f32 %v3178_v40, %v3166_v24 }
 0x115   :  { %v6007_v43 = vld [vmem:[#allocation2 + $0xf48] sm:$0xf]  ;;  %v5752_v47 = vor.u32 %v6522_v42, %v5751_v41  ;;  %3418 = vmatpush.bf16.msrb.mxu1 %v5496_v46  ;;  %v3191_v46 = vpop.f32.mrf.mxu3 }
 0x116   :  { %v6586_v44 = vld [vmem:[#allocation2 + $0xf64] sm:$0xf0] }
 0x117   :  { %v5207_v48 = vld [vmem:[#allocation2 + $0x908] sm:$0xf]  ;;  %v6008_v51 = vor.u32 %v6586_v44, %v6007_v43  ;;  %3431 = vmatpush.bf16.msrb.mxu2 %v5752_v47  ;;  %v6150_v47 = vld [vmem:[#allocation2 + $0x1cc] sm:$0xf] }
 0x118   :  { %v6386_v49 = vld [vmem:[#allocation2 + $0x924] sm:$0xf0] }
 0x119   :  { %v5463_v50 = vld [vmem:[#allocation2 + $0xb08] sm:$0xf]  ;;  %v5208_v22 = vor.u32 %v6386_v49, %v5207_v48  ;;  %3444 = vmatpush.bf16.msrb.mxu3 %v6008_v51  ;;  %v4281_v48 = vld [vmem:[#allocation2 + $0x1e8] sm:$0xf0] }
 0x11a   :  { %v6450_v20 = vld [vmem:[#allocation2 + $0xb24] sm:$0xf0]  ;;  %v6214_v49 = vld [vmem:[#allocation2 + $0x3cc] sm:$0xf] }
 0x11b   :  { %v5719_v52 = vld [vmem:[#allocation2 + $0xd08] sm:$0xf]  ;;  %v5464_v55 = vor.u32 %v6450_v20, %v5463_v50  ;;  %3406 = vmatpush.bf16.msrb.mxu0 %v5208_v22  ;;  %v4537_v51 = vld [vmem:[#allocation2 + $0x3e8] sm:$0xf0] }
 0x11c   :  { %v6514_v53 = vld [vmem:[#allocation2 + $0xd24] sm:$0xf0]  ;;  %v6278_v20 = vld [vmem:[#allocation2 + $0x5cc] sm:$0xf] }
 0x11d   :  { %v5975_v54 = vld [vmem:[#allocation2 + $0xf08] sm:$0xf]  ;;  %v5720_v26 = vor.u32 %v6514_v53, %v5719_v52  ;;  %3419 = vmatpush.bf16.msrb.mxu1 %v5464_v55  ;;  %v4793_v52 = vld [vmem:[#allocation2 + $0x5e8] sm:$0xf0]  ;;  %v6756_v53 = vadd.f32 %v3191_v46, %v3179_v45 }
 0x11e   :  { %v6578_v21 = vld [vmem:[#allocation2 + $0xf24] sm:$0xf0]  ;;  %v6342_v55 = vld [vmem:[#allocation2 + $0x7cc] sm:$0xf] }
 0x11f   :  { %v5175_v56 = vld [vmem:[#allocation2 + $0x8c8] sm:$0xf]  ;;  %v5976_v59 = vor.u32 %v6578_v21, %v5975_v54  ;;  %3432 = vmatpush.bf16.msrb.mxu2 %v5720_v26  ;;  %v3154_v54 = vpop.f32.mrf.mxu0  ;;  %v5049_v26 = vld [vmem:[#allocation2 + $0x7e8] sm:$0xf0] }
 0x120   :  { %v6378_v57 = vld [vmem:[#allocation2 + $0x8e4] sm:$0xf0]  ;;  %v4153_v45 = vld [vmem:[#allocation2 + $0xe8] sm:$0xf0] }
 0x121   :  { %v5431_v58 = vld [vmem:[#allocation2 + $0xac8] sm:$0xf]  ;;  %v5176_v1 = vor.u32 %v6378_v57, %v5175_v56  ;;  %3445 = vmatpush.bf16.msrb.mxu3 %v5976_v59  ;;  %v3167_v56 = vpop.f32.mrf.mxu1  ;;  %v4540_v59 = vor.u32 %v6214_v49, %v4537_v51  ;;  %v6182_v46 = vld [vmem:[#allocation2 + $0x2cc] sm:$0xf] }
 0x122   :  { %v6442_v60 = vld [vmem:[#allocation2 + $0xae4] sm:$0xf0]  ;;  %v6246_v51 = vld [vmem:[#allocation2 + $0x4cc] sm:$0xf] }
 0x123   :  { %v5687_v61 = vld [vmem:[#allocation2 + $0xcc8] sm:$0xf]  ;;  %v5432_v2 = vor.u32 %v6442_v60, %v5431_v58  ;;  %3407 = vmatpush.bf16.msrb.mxu0 %v5176_v1  ;;  %v4284_v58 = vor.u32 %v6150_v47, %v4281_v48  ;;  %v4796_v60 = vor.u32 %v6278_v20, %v4793_v52  ;;  %v4505_v1 = vld [vmem:[#allocation2 + $0x3a8] sm:$0xf0] }
 0x124   :  { %v6506_v62 = vld [vmem:[#allocation2 + $0xce4] sm:$0xf0]  ;;  %v4665_v20 = vld [vmem:[#allocation2 + $0x4e8] sm:$0xf0] }
 0x125   :  { %v5943_v63 = vld [vmem:[#allocation2 + $0xec8] sm:$0xf]  ;;  %v5688_v3 = vor.u32 %v6506_v62, %v5687_v61  ;;  %3420 = vmatpush.bf16.msrb.mxu1 %v5432_v2  ;;  %v6142_v61 = vld [vmem:[#allocation2 + $0x18c] sm:$0xf] }
 0x126   :  { %v6570_v0 = vld [vmem:[#allocation2 + $0xee4] sm:$0xf0]  ;;  %v4249_v62 = vld [vmem:[#allocation2 + $0x1a8] sm:$0xf0] }
 0x127   :  { %v5143_v4 = vld [vmem:[#allocation2 + $0x888] sm:$0xf]  ;;  %v5944_v7 = vor.u32 %v6570_v0, %v5943_v63  ;;  %3433 = vmatpush.bf16.msrb.mxu2 %v5688_v3  ;;  %v6206_v63 = vld [vmem:[#allocation2 + $0x38c] sm:$0xf]  ;;  %v5052_v0 = vor.u32 %v6342_v55, %v5049_v26  ;;  %v4668_v26 = vor.u32 %v6246_v51, %v4665_v20 }
 0x128   :  { %v6370_v5 = vld [vmem:[#allocation2 + $0x8a4] sm:$0xf0]  ;;  %v6270_v2 = vld [vmem:[#allocation2 + $0x58c] sm:$0xf] }
 0x129   :  { %v5399_v6 = vld [vmem:[#allocation2 + $0xa88] sm:$0xf]  ;;  %v5144_v12 = vor.u32 %v6370_v5, %v5143_v4  ;;  %3446 = vmatpush.bf16.msrb.mxu3 %v5944_v7  ;;  %v4761_v3 = vld [vmem:[#allocation2 + $0x5a8] sm:$0xf0]  ;;  %v4252_v7 = vor.u32 %v6142_v61, %v4249_v62  ;;  %v3217_v48 = vpop.f32.mrf.mxu1 }
 0x12a   :  { %v6434_v8 = vld [vmem:[#allocation2 + $0xaa4] sm:$0xf0]  ;;  %v6334_v4 = vld [vmem:[#allocation2 + $0x78c] sm:$0xf] }
 0x12b   :  { %v5655_v29 = vld [vmem:[#allocation2 + $0xc88] sm:$0xf]  ;;  %v5400_v13 = vor.u32 %v6434_v8, %v5399_v6  ;;  %3408 = vmatpush.bf16.msrb.mxu0 %v5144_v12  ;;  %v5017_v5 = vld [vmem:[#allocation2 + $0x7a8] sm:$0xf0]  ;;  %v3180_v6 = vpop.f32.mrf.mxu2  ;;  %v3193_v8 = vpop.f32.mrf.mxu3 }
 0x12c   :  { %v6498_v9 = vld [vmem:[#allocation2 + $0xca4] sm:$0xf0]  ;;  %v6198_v12 = vld [vmem:[#allocation2 + $0x34c] sm:$0xf]  ;;  %v5020_v31 = vor.u32 %v6334_v4, %v5017_v5 }
 0x12d   :  { %v5911_v10 = vld [vmem:[#allocation2 + $0xe88] sm:$0xf]  ;;  %v5656_v32 = vor.u32 %v6498_v9, %v5655_v29  ;;  %3421 = vmatpush.bf16.msrb.mxu1 %v5400_v13  ;;  %v4508_v29 = vor.u32 %v6206_v63, %v4505_v1  ;;  %v4764_v9 = vor.u32 %v6270_v2, %v4761_v3  ;;  %v6758_v13 = vld [vmem:[#allocation1 + $0x36] sm:$0xff] }
 0x12e   :  { %v6562_v11 = vld [vmem:[#allocation2 + $0xea4] sm:$0xf0]  ;;  %v6310_v52 = vld [vmem:[#allocation2 + $0x6cc] sm:$0xf] }
 0x12f   :  { %v5111_v14 = vld [vmem:[#allocation2 + $0x848] sm:$0xf]  ;;  %v5912_v17 = vor.u32 %v6562_v11, %v5911_v10  ;;  %3434 = vmatpush.bf16.msrb.mxu2 %v5656_v32  ;;  %v6134_v10 = vld [vmem:[#allocation2 + $0x14c] sm:$0xf] }
 0x130   :  { %v6362_v38 = vld [vmem:[#allocation2 + $0x864] sm:$0xf0]  ;;  %v4217_v11 = vld [vmem:[#allocation2 + $0x168] sm:$0xf0] }
 0x131   :  { %v5367_v15 = vld [vmem:[#allocation2 + $0xa48] sm:$0xf]  ;;  %v5112_v28 = vor.u32 %v6362_v38, %v5111_v14  ;;  %3447 = vmatpush.bf16.msrb.mxu3 %v5912_v17  ;;  %v4473_v32 = vld [vmem:[#allocation2 + $0x368] sm:$0xf0] }
 0x132   :  { %v6426_v18 = vld [vmem:[#allocation2 + $0xa64] sm:$0xf0]  ;;  %v6262_v14 = vld [vmem:[#allocation2 + $0x54c] sm:$0xf]  ;;  %v4476_v24 = vor.u32 %v6198_v12, %v4473_v32 }
 0x133   :  { %v5623_v19 = vld [vmem:[#allocation2 + $0xc48] sm:$0xf]  ;;  %v5368_v34 = vor.u32 %v6426_v18, %v5367_v15  ;;  %3409 = vmatpush.bf16.msrb.mxu0 %v5112_v28  ;;  %v4729_v38 = vld [vmem:[#allocation2 + $0x568] sm:$0xf0]  ;;  %v6761_v15 = vld [vmem:[#allocation1 + $0x24] sm:$0xff] }
 0x134   :  { %v6490_v23 = vld [vmem:[#allocation2 + $0xc64] sm:$0xf0]  ;;  %v6326_v17 = vld [vmem:[#allocation2 + $0x74c] sm:$0xf] }
 0x135   :  { %v5879_v25 = vld [vmem:[#allocation2 + $0xe48] sm:$0xf]  ;;  %v5624_v35 = vor.u32 %v6490_v23, %v5623_v19  ;;  %3422 = vmatpush.bf16.msrb.mxu1 %v5368_v34  ;;  %v4985_v18 = vld [vmem:[#allocation2 + $0x768] sm:$0xf0]  ;;  %v4220_v19 = vor.u32 %v6134_v10, %v4217_v11  ;;  %v3219_v10 = vpop.f32.mrf.mxu1 }
 0x136   :  { %v6554_v27 = vld [vmem:[#allocation2 + $0xe64] sm:$0xf0]  ;;  %v4185_v28 = vld [vmem:[#allocation2 + $0x128] sm:$0xf0]  ;;  %v6779_v10 = vld [vmem:[#allocation1 + $0x1b] sm:$0xff] }
 0x137   :  { %v5079_v30 = vld [vmem:[#allocation2 + $0x808] sm:$0xf]  ;;  %v5880_v41 = vor.u32 %v6554_v27, %v5879_v25  ;;  %3435 = vmatpush.bf16.msrb.mxu2 %v5624_v35  ;;  %v4732_v25 = vor.u32 %v6262_v14, %v4729_v38  ;;  %v6126_v27 = vld [vmem:[#allocation2 + $0x10c] sm:$0xf] }
 0x138   :  { %v6354_v33 = vld [vmem:[#allocation2 + $0x824] sm:$0xf0]  ;;  %v4441_v34 = vld [vmem:[#allocation2 + $0x328] sm:$0xf0]  ;;  %v4188_v40 = vor.u32 %v6126_v27, %v4185_v28 }
 0x139   :  { %v5335_v36 = vld [vmem:[#allocation2 + $0xa08] sm:$0xf]  ;;  %v5080_v50 = vor.u32 %v6354_v33, %v5079_v30  ;;  %3448 = vmatpush.bf16.msrb.mxu3 %v5880_v41  ;;  %v6190_v30 = vld [vmem:[#allocation2 + $0x30c] sm:$0xf]  ;;  %v4988_v33 = vor.u32 %v6326_v17, %v4985_v18  ;;  %v3204_v41 = vpop.f32.mrf.mxu0 }
 0x13a   :  { %v6418_v37 = vld [vmem:[#allocation2 + $0xa24] sm:$0xf0]  ;;  %v6254_v35 = vld [vmem:[#allocation2 + $0x50c] sm:$0xf]  ;;  %v3205_v47 = vadd.f32 %v3204_v41, %v6756_v53 }
 0x13b   :  { %v5591_v39 = vld [vmem:[#allocation2 + $0xc08] sm:$0xf]  ;;  %v5336_v21 = vor.u32 %v6418_v37, %v5335_v36  ;;  %3410 = vmatpush.bf16.msrb.mxu0 %v5080_v50  ;;  %v4697_v36 = vld [vmem:[#allocation2 + $0x528] sm:$0xf0] }
 0x13c   :  { %v6482_v42 = vld [vmem:[#allocation2 + $0xc24] sm:$0xf0]  ;;  %v6318_v37 = vld [vmem:[#allocation2 + $0x70c] sm:$0xf] }
 0x13d   :  { %v5847_v43 = vld [vmem:[#allocation2 + $0xe08] sm:$0xf]  ;;  %v5592_v22 = vor.u32 %v6482_v42, %v5591_v39  ;;  %3423 = vmatpush.bf16.msrb.mxu1 %v5336_v21  ;;  %v4953_v39 = vld [vmem:[#allocation2 + $0x728] sm:$0xf0]  ;;  %v4444_v42 = vor.u32 %v6190_v30, %v4441_v34  ;;  %v3218_v21 = vadd.f32 %v3217_v48, %v3205_v47 }
 0x13e   :  { %v6546_v44 = vld [vmem:[#allocation2 + $0xe24] sm:$0xf0]  ;;  %3411 = vmatmul.bf16.vlgmr.msrb.gmra.mxu0 %v6761_v15  ;;  %v4956_v49 = vor.u32 %v6318_v37, %v4953_v39  ;;  %v4409_v50 = vld [vmem:[#allocation2 + $0x2e8] sm:$0xf0] }
 0x13f   :  { %v5848_v57 = vor.u32 %v6546_v44, %v5847_v43  ;;  %3436 = vmatpush.bf16.msrb.mxu2 %v5592_v22  ;;  %3455 = vmatpush.bf16.msra.mxu0 %v4284_v58  ;;  %v6767_v23 = vld [vmem:[#allocation1 + $0x2d] sm:$0xff]  ;;  %v4700_v43 = vor.u32 %v6254_v35, %v4697_v36  ;;  %v4412_v55 = vor.u32 %v6182_v46, %v4409_v50 }
 0x140   :  { %3424 = vmatmul.bf16.vlgmr.msrb.gmra.mxu1 %v6767_v23  ;;  %v6118_v44 = vld [vmem:[#allocation2 + $0xcc] sm:$0xf] }
 0x141   :  { %3449 = vmatpush.bf16.msrb.mxu3 %v5848_v57  ;;  %3468 = vmatpush.bf16.msra.mxu1 %v4540_v59  ;;  %v4921_v54 = vld [vmem:[#allocation2 + $0x6e8] sm:$0xf0]  ;;  %v4156_v22 = vor.u32 %v6118_v44, %v4153_v45  ;;  %v3230_v59 = vpop.f32.mrf.mxu2  ;;  %v3206_v5 = vpop.f32.mrf.mxu0 }
 0x142   :  { %3437 = vmatmul.bf16.vlgmr.msrb.gmra.mxu2 %v6758_v13  ;;  %v6110_v56 = vld [vmem:[#allocation2 + $0x8c] sm:$0xf]  ;;  %v4924_v53 = vor.u32 %v6310_v52, %v4921_v54  ;;  %v3231_v63 = vadd.f32 %v3230_v59, %v3218_v21 }
 0x143   :  { %3481 = vmatpush.bf16.msra.mxu2 %v4796_v60  ;;  %3456 = vmatpush.bf16.msra.mxu0 %v4252_v7  ;;  %v4121_v57 = vld [vmem:[#allocation2 + $0xa8] sm:$0xf0] }
 0x144   :  { %3450 = vmatmul.bf16.vlgmr.msrb.gmra.mxu3 %v6764_v16  ;;  %v6174_v58 = vld [vmem:[#allocation2 + $0x28c] sm:$0xf]  ;;  %v4124_v3 = vor.u32 %v6110_v56, %v4121_v57 }
 0x145   :  { %3494 = vmatpush.bf16.msra.mxu3 %v5052_v0  ;;  %3469 = vmatpush.bf16.msra.mxu1 %v4508_v29  ;;  %v4377_v60 = vld [vmem:[#allocation2 + $0x2a8] sm:$0xf0]  ;;  %v3243_v0 = vpop.f32.mrf.mxu3 }
 0x146   :  { %v6238_v61 = vld [vmem:[#allocation2 + $0x48c] sm:$0xf]  ;;  %v6771_v4 = vadd.f32 %v3243_v0, %v3231_v63  ;;  %v4380_v6 = vor.u32 %v6174_v58, %v4377_v60 }
 0x147   :  { %3482 = vmatpush.bf16.msra.mxu2 %v4764_v9  ;;  %3457 = vmatpush.bf16.msra.mxu0 %v4220_v19  ;;  %v4633_v62 = vld [vmem:[#allocation2 + $0x4a8] sm:$0xf0] }
 0x148   :  { %v6302_v1 = vld [vmem:[#allocation2 + $0x68c] sm:$0xf]  ;;  %v4636_v7 = vor.u32 %v6238_v61, %v4633_v62 }
 0x149   :  { %3495 = vmatpush.bf16.msra.mxu3 %v5020_v31  ;;  %3470 = vmatpush.bf16.msra.mxu1 %v4476_v24  ;;  %v4889_v2 = vld [vmem:[#allocation2 + $0x6a8] sm:$0xf0] }
 0x14a   :  { %v6102_v8 = vld [vmem:[#allocation2 + $0x4c] sm:$0xf]  ;;  %v4892_v11 = vor.u32 %v6302_v1, %v4889_v2 }
 0x14b   :  { %3483 = vmatpush.bf16.msra.mxu2 %v4732_v25  ;;  %3458 = vmatpush.bf16.msra.mxu0 %v4188_v40  ;;  %v4089_v29 = vld [vmem:[#allocation2 + $0x68] sm:$0xf0] }
 0x14c   :  { %v6166_v9 = vld [vmem:[#allocation2 + $0x24c] sm:$0xf]  ;;  %v4092_v17 = vor.u32 %v6102_v8, %v4089_v29 }
 0x14d   :  { %3496 = vmatpush.bf16.msra.mxu3 %v4988_v33  ;;  %3471 = vmatpush.bf16.msra.mxu1 %v4444_v42  ;;  %v4345_v12 = vld [vmem:[#allocation2 + $0x268] sm:$0xf0]  ;;  %v3232_v33 = vpop.f32.mrf.mxu2  ;;  %v3245_v39 = vpop.f32.mrf.mxu3 }
 0x14e   :  { %v6230_v31 = vld [vmem:[#allocation2 + $0x44c] sm:$0xf]  ;;  %v4348_v24 = vor.u32 %v6166_v9, %v4345_v12  ;;  %v6776_v9 = vld [vmem:[#allocation1] sm:$0xff]  ;;  %v6782_v12 = vld [vmem:[#allocation1 + $0x9] sm:$0xff]  ;;  %v3256_v33 = vpop.f32.mrf.mxu0 }
 0x14f   :  { %3484 = vmatpush.bf16.msra.mxu2 %v4700_v43  ;;  %3459 = vmatpush.bf16.msra.mxu0 %v4156_v22  ;;  %v4601_v32 = vld [vmem:[#allocation2 + $0x468] sm:$0xf0] }
 0x150   :  { %v6294_v14 = vld [vmem:[#allocation2 + $0x64c] sm:$0xf]  ;;  %v4604_v25 = vor.u32 %v6230_v31, %v4601_v32 }
 0x151   :  { %3497 = vmatpush.bf16.msra.mxu3 %v4956_v49  ;;  %3472 = vmatpush.bf16.msra.mxu1 %v4412_v55  ;;  %v4857_v38 = vld [vmem:[#allocation2 + $0x668] sm:$0xf0] }
 0x152   :  { %v6094_v18 = vld [vmem:[#allocation2 + $0xc] sm:$0xf]  ;;  %v4860_v34 = vor.u32 %v6294_v14, %v4857_v38 }
 0x153   :  { %3485 = vmatpush.bf16.msra.mxu2 %v4668_v26  ;;  %3460 = vmatpush.bf16.msra.mxu0 %v4124_v3  ;;  %v4057_v19 = vld [vmem:[#allocation2 + $0x28] sm:$0xf0] }
 0x154   :  { %v6158_v27 = vld [vmem:[#allocation2 + $0x20c] sm:$0xf]  ;;  %v4060_v43 = vor.u32 %v6094_v18, %v4057_v19 }
 0x155   :  { %3498 = vmatpush.bf16.msra.mxu3 %v4924_v53  ;;  %3473 = vmatpush.bf16.msra.mxu1 %v4380_v6  ;;  %v4313_v28 = vld [vmem:[#allocation2 + $0x228] sm:$0xf0] }
 0x156   :  { %v6222_v30 = vld [vmem:[#allocation2 + $0x40c] sm:$0xf]  ;;  %v4316_v47 = vor.u32 %v6158_v27, %v4313_v28 }
 0x157   :  { %3486 = vmatpush.bf16.msra.mxu2 %v4636_v7  ;;  %v4569_v35 = vld [vmem:[#allocation2 + $0x428] sm:$0xf0]  ;;  %3461 = vmatpush.bf16.msra.mxu0 %v4092_v17 }
 0x158   :  { %v6286_v36 = vld [vmem:[#allocation2 + $0x60c] sm:$0xf]  ;;  %v4572_v48 = vor.u32 %v6222_v30, %v4569_v35 }
 0x159   :  { %3499 = vmatpush.bf16.msra.mxu3 %v4892_v11  ;;  %v4825_v37 = vld [vmem:[#allocation2 + $0x628] sm:$0xf0]  ;;  %3474 = vmatpush.bf16.msra.mxu1 %v4348_v24 }
 0x15a   :  { %v6406_v40 = vld [vmem:[#allocation2 + $0x9cc] sm:$0xf]  ;;  %v4828_v51 = vor.u32 %v6286_v36, %v4825_v37 }
 0x15b   :  { %v5305_v41 = vld [vmem:[#allocation2 + $0x9e8] sm:$0xf0]  ;;  %3487 = vmatpush.bf16.msra.mxu2 %v4604_v25  ;;  %3462 = vmatpush.bf16.msra.mxu0 %v4060_v43 }
 0x15c   :  { %v6470_v42 = vld [vmem:[#allocation2 + $0xbcc] sm:$0xf]  ;;  %v5308_v20 = vor.u32 %v6406_v40, %v5305_v41  ;;  %v3269_v40 = vpop.f32.mrf.mxu1 }
 0x15d   :  { %v5561_v44 = vld [vmem:[#allocation2 + $0xbe8] sm:$0xf0]  ;;  %3500 = vmatpush.bf16.msra.mxu3 %v4860_v34  ;;  %3475 = vmatpush.bf16.msra.mxu1 %v4316_v47 }
 0x15e   :  { %v6534_v45 = vld [vmem:[#allocation2 + $0xdcc] sm:$0xf]  ;;  %v5564_v52 = vor.u32 %v6470_v42, %v5561_v44  ;;  %3463 = vmatmul.bf16.vlgmr.msra.gmra.mxu0 %v6776_v9 }
 0x15f   :  { %v5817_v46 = vld [vmem:[#allocation2 + $0xde8] sm:$0xf0]  ;;  %3488 = vmatpush.bf16.msra.mxu2 %v4572_v48  ;;  %3507 = vmatpush.bf16.msrb.mxu0 %v5308_v20 }
 0x160   :  { %v6598_v49 = vld [vmem:[#allocation2 + $0xfcc] sm:$0xf]  ;;  %v5820_v54 = vor.u32 %v6534_v45, %v5817_v46  ;;  %3476 = vmatmul.bf16.vlgmr.msra.gmra.mxu1 %v6782_v12  ;;  %v3270_v45 = vadd.f32 %v3269_v40, %v3256_v33 }
 0x161   :  { %v6073_v50 = vld [vmem:[#allocation2 + $0xfe8] sm:$0xf0]  ;;  %3501 = vmatpush.bf16.msra.mxu3 %v4828_v51  ;;  %3520 = vmatpush.bf16.msrb.mxu1 %v5564_v52 }
 0x162   :  { %v6398_v21 = vld [vmem:[#allocation2 + $0x98c] sm:$0xf]  ;;  %v6076_v26 = vor.u32 %v6598_v49, %v6073_v50 }
 0x163   :  { %v5273_v22 = vld [vmem:[#allocation2 + $0x9a8] sm:$0xf0]  ;;  %3533 = vmatpush.bf16.msrb.mxu2 %v5820_v54  ;;  %v3282_v54 = vpop.f32.mrf.mxu2 }
 0x164   :  { %v6462_v55 = vld [vmem:[#allocation2 + $0xb8c] sm:$0xf]  ;;  %v5276_v60 = vor.u32 %v6398_v21, %v5273_v22  ;;  %3502 = vmatmul.bf16.vlgmr.msra.gmra.mxu3 %v6779_v10 }
 0x165   :  { %v5529_v56 = vld [vmem:[#allocation2 + $0xba8] sm:$0xf0]  ;;  %3546 = vmatpush.bf16.msrb.mxu3 %v6076_v26 }
 0x166   :  { %v6526_v57 = vld [vmem:[#allocation2 + $0xd8c] sm:$0xf]  ;;  %v5532_v61 = vor.u32 %v6462_v55, %v5529_v56  ;;  %3508 = vmatpush.bf16.msrb.mxu0 %v5276_v60  ;;  %v3283_v56 = vadd.f32 %v3282_v54, %v3270_v45  ;;  %v4511_v54 = vld [vmem:[#allocation2 + $0x390] sm:$0xf] }
 0x167   :  { %v5785_v58 = vld [vmem:[#allocation2 + $0xda8] sm:$0xf0] }
 0x168   :  { %v6590_v59 = vld [vmem:[#allocation2 + $0xf8c] sm:$0xf]  ;;  %v5788_v62 = vor.u32 %v6526_v57, %v5785_v58  ;;  %3521 = vmatpush.bf16.msrb.mxu1 %v5532_v61  ;;  %v3295_v57 = vpop.f32.mrf.mxu3  ;;  %v3258_v61 = vpop.f32.mrf.mxu0 }
 0x169   :  { %v6041_v53 = vld [vmem:[#allocation2 + $0xfa8] sm:$0xf0]  ;;  %v6785_v60 = vadd.f32 %v3295_v57, %v3283_v56  ;;  %v5023_v56 = vld [vmem:[#allocation2 + $0x790] sm:$0xf] }
 0x16a   :  { %v6390_v63 = vld [vmem:[#allocation2 + $0x94c] sm:$0xf]  ;;  %v6044_v2 = vor.u32 %v6590_v59, %v6041_v53  ;;  %3534 = vmatpush.bf16.msrb.mxu2 %v5788_v62  ;;  %v6339_v57 = vld [vmem:[#allocation2 + $0x7ac] sm:$0xf0] }
 0x16b   :  { %v5241_v0 = vld [vmem:[#allocation2 + $0x968] sm:$0xf0]  ;;  %v4223_v61 = vld [vmem:[#allocation2 + $0x150] sm:$0xf] }
 0x16c   :  { %v6454_v1 = vld [vmem:[#allocation2 + $0xb4c] sm:$0xf]  ;;  %v5244_v11 = vor.u32 %v6390_v63, %v5241_v0  ;;  %3547 = vmatpush.bf16.msrb.mxu3 %v6044_v2 }
 0x16d   :  { %v5497_v3 = vld [vmem:[#allocation2 + $0xb68] sm:$0xf0] }
 0x16e   :  { %v6518_v5 = vld [vmem:[#allocation2 + $0xd4c] sm:$0xf]  ;;  %v5500_v31 = vor.u32 %v6454_v1, %v5497_v3  ;;  %3509 = vmatpush.bf16.msrb.mxu0 %v5244_v11  ;;  %v3271_v3 = vpop.f32.mrf.mxu1 }
 0x16f   :  { %v5753_v6 = vld [vmem:[#allocation2 + $0xd68] sm:$0xf0]  ;;  %v6267_v3 = vld [vmem:[#allocation2 + $0x56c] sm:$0xf0] }
 0x170   :  { %v6773_v7 = vld [vmem:[#allocation1 + $0x12] sm:$0xff]  ;;  %v5756_v32 = vor.u32 %v6518_v5, %v5753_v6  ;;  %3522 = vmatpush.bf16.msrb.mxu1 %v5500_v31 }
 0x171   :  { %3489 = vmatmul.bf16.vlgmr.msra.gmra.mxu2 %v6773_v7  ;;  %v6582_v8 = vld [vmem:[#allocation2 + $0xf4c] sm:$0xf] }
 0x172   :  { %v6009_v29 = vld [vmem:[#allocation2 + $0xf68] sm:$0xf0]  ;;  %3535 = vmatpush.bf16.msrb.mxu2 %v5756_v32 }
 0x173   :  { %v6382_v14 = vld [vmem:[#allocation2 + $0x90c] sm:$0xf]  ;;  %v6012_v18 = vor.u32 %v6582_v8, %v6009_v29 }
 0x174   :  { %v5209_v38 = vld [vmem:[#allocation2 + $0x928] sm:$0xf0] }
 0x175   :  { %v6446_v17 = vld [vmem:[#allocation2 + $0xb0c] sm:$0xf]  ;;  %v5212_v30 = vor.u32 %v6382_v14, %v5209_v38  ;;  %3548 = vmatpush.bf16.msrb.mxu3 %v6012_v18 }
 0x176   :  { %v5465_v19 = vld [vmem:[#allocation2 + $0xb28] sm:$0xf0] }
 0x177   :  { %v6510_v24 = vld [vmem:[#allocation2 + $0xd0c] sm:$0xf]  ;;  %v5468_v34 = vor.u32 %v6446_v17, %v5465_v19  ;;  %3510 = vmatpush.bf16.msrb.mxu0 %v5212_v30 }
 0x178   :  { %v5721_v25 = vld [vmem:[#allocation2 + $0xd28] sm:$0xf0] }
 0x179   :  { %v6574_v27 = vld [vmem:[#allocation2 + $0xf0c] sm:$0xf]  ;;  %v5724_v35 = vor.u32 %v6510_v24, %v5721_v25  ;;  %3523 = vmatpush.bf16.msrb.mxu1 %v5468_v34 }
 0x17a   :  { %v5977_v28 = vld [vmem:[#allocation2 + $0xf28] sm:$0xf0] }
 0x17b   :  { %v6374_v36 = vld [vmem:[#allocation2 + $0x8cc] sm:$0xf]  ;;  %v5980_v41 = vor.u32 %v6574_v27, %v5977_v28  ;;  %3536 = vmatpush.bf16.msrb.mxu2 %v5724_v35  ;;  %v3284_v27 = vpop.f32.mrf.mxu2  ;;  %v3297_v35 = vpop.f32.mrf.mxu3 }
 0x17c   :  { %v5177_v37 = vld [vmem:[#allocation2 + $0x8e8] sm:$0xf0] }
 0x17d   :  { %v6438_v39 = vld [vmem:[#allocation2 + $0xacc] sm:$0xf]  ;;  %v5180_v48 = vor.u32 %v6374_v36, %v5177_v37  ;;  %3549 = vmatpush.bf16.msrb.mxu3 %v5980_v41  ;;  %v4287_v36 = vld [vmem:[#allocation2 + $0x1d0] sm:$0xf] }
 0x17e   :  { %v5433_v42 = vld [vmem:[#allocation2 + $0xae8] sm:$0xf0]  ;;  %v6155_v37 = vld [vmem:[#allocation2 + $0x1ec] sm:$0xf0] }
 0x17f   :  { %v6502_v43 = vld [vmem:[#allocation2 + $0xccc] sm:$0xf]  ;;  %v5436_v49 = vor.u32 %v6438_v39, %v5433_v42  ;;  %3511 = vmatpush.bf16.msrb.mxu0 %v5180_v48  ;;  %v4543_v39 = vld [vmem:[#allocation2 + $0x3d0] sm:$0xf] }
 0x180   :  { %v5689_v44 = vld [vmem:[#allocation2 + $0xce8] sm:$0xf0]  ;;  %v6219_v41 = vld [vmem:[#allocation2 + $0x3ec] sm:$0xf0] }
 0x181   :  { %v6566_v46 = vld [vmem:[#allocation2 + $0xecc] sm:$0xf]  ;;  %v5692_v50 = vor.u32 %v6502_v43, %v5689_v44  ;;  %3524 = vmatpush.bf16.msrb.mxu1 %v5436_v49  ;;  %v4799_v42 = vld [vmem:[#allocation2 + $0x5d0] sm:$0xf]  ;;  %v4288_v49 = vor.u32 %v6155_v37, %v4287_v36 }
 0x182   :  { %v5945_v47 = vld [vmem:[#allocation2 + $0xee8] sm:$0xf0]  ;;  %v6283_v43 = vld [vmem:[#allocation2 + $0x5ec] sm:$0xf0] }
 0x183   :  { %v6366_v51 = vld [vmem:[#allocation2 + $0x88c] sm:$0xf]  ;;  %v5948_v21 = vor.u32 %v6566_v46, %v5945_v47  ;;  %3537 = vmatpush.bf16.msrb.mxu2 %v5692_v50  ;;  %v5055_v46 = vld [vmem:[#allocation2 + $0x7d0] sm:$0xf]  ;;  %v4544_v50 = vor.u32 %v6219_v41, %v4543_v39 }
 0x184   :  { %v5145_v20 = vld [vmem:[#allocation2 + $0x8a8] sm:$0xf0]  ;;  %v6347_v47 = vld [vmem:[#allocation2 + $0x7ec] sm:$0xf0] }
 0x185   :  { %v6430_v52 = vld [vmem:[#allocation2 + $0xa8c] sm:$0xf]  ;;  %v5148_v53 = vor.u32 %v6366_v51, %v5145_v20  ;;  %3550 = vmatpush.bf16.msrb.mxu3 %v5948_v21  ;;  %v4800_v51 = vor.u32 %v6283_v43, %v4799_v42  ;;  %v4255_v20 = vld [vmem:[#allocation2 + $0x190] sm:$0xf]  ;;  %v5056_v21 = vor.u32 %v6347_v47, %v5055_v46  ;;  %v3334_v46 = vpop.f32.mrf.mxu2 }
 0x186   :  { %v5401_v22 = vld [vmem:[#allocation2 + $0xaa8] sm:$0xf0]  ;;  %v6187_v36 = vld [vmem:[#allocation2 + $0x2ec] sm:$0xf0] }
 0x187   :  { %v6494_v55 = vld [vmem:[#allocation2 + $0xc8c] sm:$0xf]  ;;  %v5404_v62 = vor.u32 %v6430_v52, %v5401_v22  ;;  %3512 = vmatpush.bf16.msrb.mxu0 %v5148_v53  ;;  %v6147_v52 = vld [vmem:[#allocation2 + $0x1ac] sm:$0xf0] }
 0x188   :  { %v5657_v26 = vld [vmem:[#allocation2 + $0xca8] sm:$0xf0]  ;;  %v6211_v22 = vld [vmem:[#allocation2 + $0x3ac] sm:$0xf0] }
 0x189   :  { %v6558_v58 = vld [vmem:[#allocation2 + $0xe8c] sm:$0xf]  ;;  %v5660_v63 = vor.u32 %v6494_v55, %v5657_v26  ;;  %3525 = vmatpush.bf16.msrb.mxu1 %v5404_v62  ;;  %v4767_v55 = vld [vmem:[#allocation2 + $0x590] sm:$0xf] }
 0x18a   :  { %v5913_v59 = vld [vmem:[#allocation2 + $0xea8] sm:$0xf0]  ;;  %v6275_v26 = vld [vmem:[#allocation2 + $0x5ac] sm:$0xf0] }
 0x18b   :  { %v6358_v0 = vld [vmem:[#allocation2 + $0x84c] sm:$0xf]  ;;  %v5916_v5 = vor.u32 %v6558_v58, %v5913_v59  ;;  %3538 = vmatpush.bf16.msrb.mxu2 %v5660_v63  ;;  %v4256_v58 = vor.u32 %v6147_v52, %v4255_v20  ;;  %v4512_v59 = vor.u32 %v6211_v22, %v4511_v54  ;;  %v4768_v53 = vor.u32 %v6275_v26, %v4767_v55  ;;  %v6139_v62 = vld [vmem:[#allocation2 + $0x16c] sm:$0xf0] }
 0x18c   :  { %v5113_v1 = vld [vmem:[#allocation2 + $0x868] sm:$0xf0]  ;;  %v4479_v63 = vld [vmem:[#allocation2 + $0x350] sm:$0xf] }
 0x18d   :  { %v6422_v2 = vld [vmem:[#allocation2 + $0xa4c] sm:$0xf]  ;;  %v5116_v32 = vor.u32 %v6358_v0, %v5113_v1  ;;  %3551 = vmatpush.bf16.msrb.mxu3 %v5916_v5  ;;  %v5024_v0 = vor.u32 %v6339_v57, %v5023_v56  ;;  %v6203_v1 = vld [vmem:[#allocation2 + $0x36c] sm:$0xf0] }
 0x18e   :  { %v5369_v6 = vld [vmem:[#allocation2 + $0xa68] sm:$0xf0]  ;;  %v4991_v5 = vld [vmem:[#allocation2 + $0x750] sm:$0xf] }
 0x18f   :  { %v6486_v8 = vld [vmem:[#allocation2 + $0xc4c] sm:$0xf]  ;;  %v5372_v17 = vor.u32 %v6422_v2, %v5369_v6  ;;  %3513 = vmatpush.bf16.msrb.mxu0 %v5116_v32  ;;  %v4735_v2 = vld [vmem:[#allocation2 + $0x550] sm:$0xf] }
 0x190   :  { %v5625_v29 = vld [vmem:[#allocation2 + $0xc68] sm:$0xf0]  ;;  %v6331_v6 = vld [vmem:[#allocation2 + $0x76c] sm:$0xf0] }
 0x191   :  { %v6550_v11 = vld [vmem:[#allocation2 + $0xe4c] sm:$0xf]  ;;  %v5628_v18 = vor.u32 %v6486_v8, %v5625_v29  ;;  %3526 = vmatpush.bf16.msrb.mxu1 %v5372_v17  ;;  %v4224_v8 = vor.u32 %v6139_v62, %v4223_v61  ;;  %v4480_v29 = vor.u32 %v6203_v1, %v4479_v63  ;;  %v4447_v32 = vld [vmem:[#allocation2 + $0x310] sm:$0xf] }
 0x192   :  { %v5881_v31 = vld [vmem:[#allocation2 + $0xe68] sm:$0xf0]  ;;  %v4703_v17 = vld [vmem:[#allocation2 + $0x510] sm:$0xf] }
 0x193   :  { %v6350_v14 = vld [vmem:[#allocation2 + $0x80c] sm:$0xf]  ;;  %v5884_v28 = vor.u32 %v6550_v11, %v5881_v31  ;;  %3539 = vmatpush.bf16.msrb.mxu2 %v5628_v18  ;;  %v4736_v11 = vor.u32 %v6267_v3, %v4735_v2  ;;  %v4191_v31 = vld [vmem:[#allocation2 + $0x110] sm:$0xf] }
 0x194   :  { %v5081_v38 = vld [vmem:[#allocation2 + $0x828] sm:$0xf0]  ;;  %v4959_v18 = vld [vmem:[#allocation2 + $0x710] sm:$0xf] }
 0x195   :  { %v6414_v19 = vld [vmem:[#allocation2 + $0xa0c] sm:$0xf]  ;;  %v5084_v40 = vor.u32 %v6350_v14, %v5081_v38  ;;  %3552 = vmatpush.bf16.msrb.mxu3 %v5884_v28  ;;  %v4992_v14 = vor.u32 %v6331_v6, %v4991_v5  ;;  %v6195_v38 = vld [vmem:[#allocation2 + $0x32c] sm:$0xf0]  ;;  %v3321_v28 = vpop.f32.mrf.mxu1 }
 0x196   :  { %v5337_v24 = vld [vmem:[#allocation2 + $0xa28] sm:$0xf0]  ;;  %v4671_v37 = vld [vmem:[#allocation2 + $0x4d0] sm:$0xf] }
 0x197   :  { %v6478_v25 = vld [vmem:[#allocation2 + $0xc0c] sm:$0xf]  ;;  %v5340_v44 = vor.u32 %v6414_v19, %v5337_v24  ;;  %3514 = vmatpush.bf16.msrb.mxu0 %v5084_v40  ;;  %v3308_v24 = vpop.f32.mrf.mxu0  ;;  %v6251_v39 = vld [vmem:[#allocation2 + $0x4ec] sm:$0xf0] }
 0x198   :  { %v5593_v30 = vld [vmem:[#allocation2 + $0xc28] sm:$0xf0]  ;;  %v3309_v27 = vadd.f32 %v3308_v24, %v6785_v60  ;;  %v4927_v41 = vld [vmem:[#allocation2 + $0x6d0] sm:$0xf] }
 0x199   :  { %v6542_v33 = vld [vmem:[#allocation2 + $0xe0c] sm:$0xf]  ;;  %v5596_v45 = vor.u32 %v6478_v25, %v5593_v30  ;;  %3527 = vmatpush.bf16.msrb.mxu1 %v5340_v44  ;;  %v4159_v30 = vld [vmem:[#allocation2 + $0xd0] sm:$0xf] }
 0x19a   :  { %v5849_v34 = vld [vmem:[#allocation2 + $0xe28] sm:$0xf0]  ;;  %3515 = vmatmul.bf16.vlgmr.msrb.gmra.mxu0 %v6761_v15  ;;  %v6259_v15 = vld [vmem:[#allocation2 + $0x52c] sm:$0xf0]  ;;  %v3322_v40 = vadd.f32 %v3321_v28, %v3309_v27 }
 0x19b   :  { %v5852_v48 = vor.u32 %v6542_v33, %v5849_v34  ;;  %3540 = vmatpush.bf16.msrb.mxu2 %v5596_v45  ;;  %3559 = vmatpush.bf16.msra.mxu0 %v4288_v49  ;;  %v4704_v25 = vor.u32 %v6259_v15, %v4703_v17  ;;  %v6123_v33 = vld [vmem:[#allocation2 + $0xec] sm:$0xf0]  ;;  %v4672_v45 = vor.u32 %v6251_v39, %v4671_v37  ;;  %v3336_v15 = vpop.f32.mrf.mxu2 }
 0x19c   :  { %3528 = vmatmul.bf16.vlgmr.msrb.gmra.mxu1 %v6767_v23  ;;  %v4448_v23 = vor.u32 %v6195_v38, %v4447_v32  ;;  %v4415_v34 = vld [vmem:[#allocation2 + $0x2d0] sm:$0xf]  ;;  %v4160_v43 = vor.u32 %v6123_v33, %v4159_v30 }
 0x19d   :  { %3553 = vmatpush.bf16.msrb.mxu3 %v5852_v48  ;;  %3572 = vmatpush.bf16.msra.mxu1 %v4544_v50  ;;  %v6315_v42 = vld [vmem:[#allocation2 + $0x6ec] sm:$0xf0]  ;;  %v4416_v44 = vor.u32 %v6187_v36, %v4415_v34  ;;  %v3335_v50 = vadd.f32 %v3334_v46, %v3322_v40  ;;  %v3323_v63 = vpop.f32.mrf.mxu1 }
 0x19e   :  { %3541 = vmatmul.bf16.vlgmr.msrb.gmra.mxu2 %v6758_v13  ;;  %v6131_v13 = vld [vmem:[#allocation2 + $0x12c] sm:$0xf0]  ;;  %v4928_v49 = vor.u32 %v6315_v42, %v4927_v41 }
 0x19f   :  { %3585 = vmatpush.bf16.msra.mxu2 %v4800_v51  ;;  %3560 = vmatpush.bf16.msra.mxu0 %v4256_v58  ;;  %v4192_v19 = vor.u32 %v6131_v13, %v4191_v31  ;;  %v4127_v60 = vld [vmem:[#allocation2 + $0x90] sm:$0xf]  ;;  %v3347_v51 = vpop.f32.mrf.mxu3  ;;  %v3310_v57 = vpop.f32.mrf.mxu0 }
 0x1a0   :  { %3554 = vmatmul.bf16.vlgmr.msrb.gmra.mxu3 %v6764_v16  ;;  %v6323_v16 = vld [vmem:[#allocation2 + $0x72c] sm:$0xf0]  ;;  %v3348_v55 = vadd.f32 %v3347_v51, %v3335_v50 }
 0x1a1   :  { %3598 = vmatpush.bf16.msra.mxu3 %v5056_v21  ;;  %3573 = vmatpush.bf16.msra.mxu1 %v4512_v59  ;;  %v4960_v35 = vor.u32 %v6323_v16, %v4959_v18  ;;  %v6115_v47 = vld [vmem:[#allocation2 + $0xac] sm:$0xf0] }
 0x1a2   :  { %v4383_v48 = vld [vmem:[#allocation2 + $0x290] sm:$0xf]  ;;  %v4128_v26 = vor.u32 %v6115_v47, %v4127_v60 }
 0x1a3   :  { %3586 = vmatpush.bf16.msra.mxu2 %v4768_v53  ;;  %3561 = vmatpush.bf16.msra.mxu0 %v4224_v8  ;;  %v6179_v20 = vld [vmem:[#allocation2 + $0x2ac] sm:$0xf0] }
 0x1a4   :  { %v4639_v52 = vld [vmem:[#allocation2 + $0x490] sm:$0xf]  ;;  %v4384_v58 = vor.u32 %v6179_v20, %v4383_v48 }
 0x1a5   :  { %3599 = vmatpush.bf16.msra.mxu3 %v5024_v0  ;;  %3574 = vmatpush.bf16.msra.mxu1 %v4480_v29  ;;  %v6243_v54 = vld [vmem:[#allocation2 + $0x4ac] sm:$0xf0]  ;;  %v3983_v0 = vrot.slane %v3348_v55, 6 }
 0x1a6   :  { %v4895_v21 = vld [vmem:[#allocation2 + $0x690] sm:$0xf]  ;;  %v4640_v59 = vor.u32 %v6243_v54, %v4639_v52 }
 0x1a7   :  { %3587 = vmatpush.bf16.msra.mxu2 %v4736_v11  ;;  %3562 = vmatpush.bf16.msra.mxu0 %v4192_v19  ;;  %v6307_v22 = vld [vmem:[#allocation2 + $0x6ac] sm:$0xf0]  ;;  %v6794_v8 = vsel %vm3989_vm0, %v6771_v4, %v3983_v0 }
 0x1a8   :  { %v4095_v56 = vld [vmem:[#allocation2 + $0x50] sm:$0xf]  ;;  %v4896_v1 = vor.u32 %v6307_v22, %v4895_v21 }
 0x1a9   :  { %3600 = vmatpush.bf16.msra.mxu3 %v4992_v14  ;;  %3575 = vmatpush.bf16.msra.mxu1 %v4448_v23  ;;  %v6107_v53 = vld [vmem:[#allocation2 + $0x6c] sm:$0xf0]  ;;  %v3349_v23 = vpop.f32.mrf.mxu3 }
 0x1aa   :  { %v4351_v61 = vld [vmem:[#allocation2 + $0x250] sm:$0xf]  ;;  %v4096_v29 = vor.u32 %v6107_v53, %v4095_v56 }
 0x1ab   :  { %3588 = vmatpush.bf16.msra.mxu2 %v4704_v25  ;;  %3563 = vmatpush.bf16.msra.mxu0 %v4160_v43  ;;  %v6171_v62 = vld [vmem:[#allocation2 + $0x26c] sm:$0xf0] }
 0x1ac   :  { %v4607_v2 = vld [vmem:[#allocation2 + $0x450] sm:$0xf]  ;;  %v4352_v13 = vor.u32 %v6171_v62, %v4351_v61 }
 0x1ad   :  { %3601 = vmatpush.bf16.msra.mxu3 %v4960_v35  ;;  %3576 = vmatpush.bf16.msra.mxu1 %v4416_v44  ;;  %v6235_v3 = vld [vmem:[#allocation2 + $0x46c] sm:$0xf0] }
 0x1ae   :  { %v4863_v5 = vld [vmem:[#allocation2 + $0x650] sm:$0xf]  ;;  %v4608_v32 = vor.u32 %v6235_v3, %v4607_v2 }
 0x1af   :  { %3589 = vmatpush.bf16.msra.mxu2 %v4672_v45  ;;  %v6299_v6 = vld [vmem:[#allocation2 + $0x66c] sm:$0xf0]  ;;  %3564 = vmatpush.bf16.msra.mxu0 %v4128_v26 }
 0x1b0   :  { %v4063_v11 = vld [vmem:[#allocation2 + $0x10] sm:$0xf]  ;;  %v4864_v18 = vor.u32 %v6299_v6, %v4863_v5 }
 0x1b1   :  { %3602 = vmatpush.bf16.msra.mxu3 %v4928_v49  ;;  %v6099_v31 = vld [vmem:[#allocation2 + $0x2c] sm:$0xf0]  ;;  %3577 = vmatpush.bf16.msra.mxu1 %v4384_v58 }
 0x1b2   :  { %v4319_v14 = vld [vmem:[#allocation2 + $0x210] sm:$0xf]  ;;  %v4064_v28 = vor.u32 %v6099_v31, %v4063_v11  ;;  %v3360_v11 = vpop.f32.mrf.mxu0 }
 0x1b3   :  { %3590 = vmatpush.bf16.msra.mxu2 %v4640_v59  ;;  %v6163_v38 = vld [vmem:[#allocation2 + $0x22c] sm:$0xf0]  ;;  %3565 = vmatpush.bf16.msra.mxu0 %v4096_v29 }
 0x1b4   :  { %v4575_v17 = vld [vmem:[#allocation2 + $0x410] sm:$0xf]  ;;  %v4320_v35 = vor.u32 %v6163_v38, %v4319_v14  ;;  %v3373_v38 = vpop.f32.mrf.mxu1 }
 0x1b5   :  { %3603 = vmatpush.bf16.msra.mxu3 %v4896_v1  ;;  %v6227_v16 = vld [vmem:[#allocation2 + $0x42c] sm:$0xf0]  ;;  %3578 = vmatpush.bf16.msra.mxu1 %v4352_v13 }
 0x1b6   :  { %v4831_v19 = vld [vmem:[#allocation2 + $0x610] sm:$0xf]  ;;  %v4576_v36 = vor.u32 %v6227_v16, %v4575_v17 }
 0x1b7   :  { %v6291_v24 = vld [vmem:[#allocation2 + $0x62c] sm:$0xf0]  ;;  %3591 = vmatpush.bf16.msra.mxu2 %v4608_v32  ;;  %3566 = vmatpush.bf16.msra.mxu0 %v4064_v28 }
 0x1b8   :  { %v5311_v4 = vld [vmem:[#allocation2 + $0x9d0] sm:$0xf]  ;;  %v4832_v40 = vor.u32 %v6291_v24, %v4831_v19  ;;  %v3374_v19 = vadd.f32 %v3373_v38, %v3360_v11  ;;  %v6279_v11 = vld [vmem:[#allocation2 + $0x5d4] sm:$0xf] }
 0x1b9   :  { %v6411_v25 = vld [vmem:[#allocation2 + $0x9ec] sm:$0xf0]  ;;  %3604 = vmatpush.bf16.msra.mxu3 %v4864_v18  ;;  %3579 = vmatpush.bf16.msra.mxu1 %v4320_v35 }
 0x1ba   :  { %v5567_v27 = vld [vmem:[#allocation2 + $0xbd0] sm:$0xf]  ;;  %v5312_v41 = vor.u32 %v6411_v25, %v5311_v4  ;;  %3567 = vmatmul.bf16.vlgmr.msra.gmra.mxu0 %v6776_v9 }
 0x1bb   :  { %v6475_v30 = vld [vmem:[#allocation2 + $0xbec] sm:$0xf0]  ;;  %3592 = vmatpush.bf16.msra.mxu2 %v4576_v36 }
 0x1bc   :  { %v5823_v33 = vld [vmem:[#allocation2 + $0xdd0] sm:$0xf]  ;;  %v5568_v42 = vor.u32 %v6475_v30, %v5567_v27  ;;  %3611 = vmatpush.bf16.msrb.mxu0 %v5312_v41  ;;  %3580 = vmatmul.bf16.vlgmr.msra.gmra.mxu1 %v6782_v12  ;;  %v3399_v41 = vpop.f32.mrf.mxu3 }
 0x1bd   :  { %v6539_v34 = vld [vmem:[#allocation2 + $0xdec] sm:$0xf0]  ;;  %3605 = vmatpush.bf16.msra.mxu3 %v4832_v40 }
 0x1be   :  { %v6079_v37 = vld [vmem:[#allocation2 + $0xfd0] sm:$0xf]  ;;  %v5824_v43 = vor.u32 %v6539_v34, %v5823_v33  ;;  %3624 = vmatpush.bf16.msrb.mxu1 %v5568_v42  ;;  %3593 = vmatmul.bf16.vlgmr.msra.gmra.mxu2 %v6773_v7  ;;  %v3386_v34 = vpop.f32.mrf.mxu2 }
 0x1bf   :  { %v6603_v39 = vld [vmem:[#allocation2 + $0xfec] sm:$0xf0]  ;;  %v3387_v40 = vadd.f32 %v3386_v34, %v3374_v19  ;;  %v4257_v19 = vld [vmem:[#allocation2 + $0x1b0] sm:$0xf0] }
 0x1c0   :  { %v5279_v44 = vld [vmem:[#allocation2 + $0x990] sm:$0xf]  ;;  %v6080_v60 = vor.u32 %v6603_v39, %v6079_v37  ;;  %3637 = vmatpush.bf16.msrb.mxu2 %v5824_v43  ;;  %3606 = vmatmul.bf16.vlgmr.msra.gmra.mxu3 %v6779_v10 }
 0x1c1   :  { %v6403_v45 = vld [vmem:[#allocation2 + $0x9ac] sm:$0xf0] }
 0x1c2   :  { %v5535_v46 = vld [vmem:[#allocation2 + $0xb90] sm:$0xf]  ;;  %v5280_v20 = vor.u32 %v6403_v45, %v5279_v44  ;;  %3650 = vmatpush.bf16.msrb.mxu3 %v6080_v60  ;;  %v6800_v45 = vadd.f32 %v3399_v41, %v3387_v40 }
 0x1c3   :  { %v6467_v47 = vld [vmem:[#allocation2 + $0xbac] sm:$0xf0] }
 0x1c4   :  { %v5791_v48 = vld [vmem:[#allocation2 + $0xd90] sm:$0xf]  ;;  %v5536_v52 = vor.u32 %v6467_v47, %v5535_v46  ;;  %3612 = vmatpush.bf16.msrb.mxu0 %v5280_v20  ;;  %v3362_v46 = vpop.f32.mrf.mxu0 }
 0x1c5   :  { %v6531_v49 = vld [vmem:[#allocation2 + $0xdac] sm:$0xf0]  ;;  %v6805_v46 = vld [vmem:[#allocation1 + $0x24] sm:$0xff] }
 0x1c6   :  { %v6047_v50 = vld [vmem:[#allocation2 + $0xf90] sm:$0xf]  ;;  %v5792_v54 = vor.u32 %v6531_v49, %v5791_v48  ;;  %3625 = vmatpush.bf16.msrb.mxu1 %v5536_v52 }
 0x1c7   :  { %v6595_v51 = vld [vmem:[#allocation2 + $0xfac] sm:$0xf0] }
 0x1c8   :  { %v5247_v21 = vld [vmem:[#allocation2 + $0x950] sm:$0xf]  ;;  %v6048_v26 = vor.u32 %v6595_v51, %v6047_v50  ;;  %3638 = vmatpush.bf16.msrb.mxu2 %v5792_v54  ;;  %v3375_v51 = vpop.f32.mrf.mxu1 }
 0x1c9   :  { %v6395_v22 = vld [vmem:[#allocation2 + $0x96c] sm:$0xf0] }
 0x1ca   :  { %v5503_v55 = vld [vmem:[#allocation2 + $0xb50] sm:$0xf]  ;;  %v5248_v61 = vor.u32 %v6395_v22, %v5247_v21  ;;  %3651 = vmatpush.bf16.msrb.mxu3 %v6048_v26 }
 0x1cb   :  { %v6459_v56 = vld [vmem:[#allocation2 + $0xb6c] sm:$0xf0] }
 0x1cc   :  { %v5759_v57 = vld [vmem:[#allocation2 + $0xd50] sm:$0xf]  ;;  %v5504_v62 = vor.u32 %v6459_v56, %v5503_v55  ;;  %3613 = vmatpush.bf16.msrb.mxu0 %v5248_v61 }
 0x1cd   :  { %v6523_v58 = vld [vmem:[#allocation2 + $0xd6c] sm:$0xf0] }
 0x1ce   :  { %v6015_v59 = vld [vmem:[#allocation2 + $0xf50] sm:$0xf]  ;;  %v5760_v63 = vor.u32 %v6523_v58, %v5759_v57  ;;  %3626 = vmatpush.bf16.msrb.mxu1 %v5504_v62 }
 0x1cf   :  { %v6587_v53 = vld [vmem:[#allocation2 + $0xf6c] sm:$0xf0] }
 0x1d0   :  { %v5215_v0 = vld [vmem:[#allocation2 + $0x910] sm:$0xf]  ;;  %v6016_v3 = vor.u32 %v6587_v53, %v6015_v59  ;;  %3639 = vmatpush.bf16.msrb.mxu2 %v5760_v63  ;;  %v3388_v63 = vpop.f32.mrf.mxu2 }
 0x1d1   :  { %v6387_v1 = vld [vmem:[#allocation2 + $0x92c] sm:$0xf0]  ;;  %v6119_v63 = vld [vmem:[#allocation2 + $0xd4] sm:$0xf] }
 0x1d2   :  { %v5471_v2 = vld [vmem:[#allocation2 + $0xb10] sm:$0xf]  ;;  %v5216_v10 = vor.u32 %v6387_v1, %v5215_v0  ;;  %3652 = vmatpush.bf16.msrb.mxu3 %v6016_v3 }
 0x1d3   :  { %v6451_v7 = vld [vmem:[#allocation2 + $0xb2c] sm:$0xf0] }
 0x1d4   :  { %v5727_v5 = vld [vmem:[#allocation2 + $0xd10] sm:$0xf]  ;;  %v5472_v12 = vor.u32 %v6451_v7, %v5471_v2  ;;  %3614 = vmatpush.bf16.msrb.mxu0 %v5216_v10  ;;  %v3401_v7 = vpop.f32.mrf.mxu3  ;;  %v4545_v10 = vld [vmem:[#allocation2 + $0x3f0] sm:$0xf0] }
 0x1d5   :  { %v6515_v6 = vld [vmem:[#allocation2 + $0xd2c] sm:$0xf0]  ;;  %v4417_v7 = vld [vmem:[#allocation2 + $0x2f0] sm:$0xf0] }
 0x1d6   :  { %v5983_v29 = vld [vmem:[#allocation2 + $0xf10] sm:$0xf]  ;;  %v5728_v31 = vor.u32 %v6515_v6, %v5727_v5  ;;  %3627 = vmatpush.bf16.msrb.mxu1 %v5472_v12  ;;  %v6151_v5 = vld [vmem:[#allocation2 + $0x1d4] sm:$0xf] }
 0x1d7   :  { %v6579_v9 = vld [vmem:[#allocation2 + $0xf2c] sm:$0xf0]  ;;  %v4289_v6 = vld [vmem:[#allocation2 + $0x1f0] sm:$0xf0] }
 0x1d8   :  { %v5183_v13 = vld [vmem:[#allocation2 + $0x8d0] sm:$0xf]  ;;  %v5984_v17 = vor.u32 %v6579_v9, %v5983_v29  ;;  %3640 = vmatpush.bf16.msrb.mxu2 %v5728_v31  ;;  %v6215_v29 = vld [vmem:[#allocation2 + $0x3d4] sm:$0xf] }
 0x1d9   :  { %v6379_v32 = vld [vmem:[#allocation2 + $0x8ec] sm:$0xf0]  ;;  %v4801_v12 = vld [vmem:[#allocation2 + $0x5f0] sm:$0xf0] }
 0x1da   :  { %v5439_v14 = vld [vmem:[#allocation2 + $0xad0] sm:$0xf]  ;;  %v5184_v4 = vor.u32 %v6379_v32, %v5183_v13  ;;  %3653 = vmatpush.bf16.msrb.mxu3 %v5984_v17  ;;  %v6343_v32 = vld [vmem:[#allocation2 + $0x7d4] sm:$0xf]  ;;  %v4292_v17 = vor.u32 %v6151_v5, %v4289_v6 }
 0x1db   :  { %v6443_v15 = vld [vmem:[#allocation2 + $0xaec] sm:$0xf0]  ;;  %v6247_v5 = vld [vmem:[#allocation2 + $0x4d4] sm:$0xf] }
 0x1dc   :  { %v5695_v18 = vld [vmem:[#allocation2 + $0xcd0] sm:$0xf]  ;;  %v5440_v25 = vor.u32 %v6443_v15, %v5439_v14  ;;  %3615 = vmatpush.bf16.msrb.mxu0 %v5184_v4  ;;  %v5057_v14 = vld [vmem:[#allocation2 + $0x7f0] sm:$0xf0]  ;;  %v4548_v15 = vor.u32 %v6215_v29, %v4545_v10 }
 0x1dd   :  { %v6507_v16 = vld [vmem:[#allocation2 + $0xcec] sm:$0xf0]  ;;  %v4513_v4 = vld [vmem:[#allocation2 + $0x3b0] sm:$0xf0] }
 0x1de   :  { %v5951_v24 = vld [vmem:[#allocation2 + $0xed0] sm:$0xf]  ;;  %v5696_v27 = vor.u32 %v6507_v16, %v5695_v18  ;;  %3628 = vmatpush.bf16.msrb.mxu1 %v5440_v25  ;;  %v4804_v18 = vor.u32 %v6279_v11, %v4801_v12  ;;  %v6143_v16 = vld [vmem:[#allocation2 + $0x194] sm:$0xf] }
 0x1df   :  { %v6571_v23 = vld [vmem:[#allocation2 + $0xeec] sm:$0xf0]  ;;  %v6271_v25 = vld [vmem:[#allocation2 + $0x594] sm:$0xf] }
 0x1e0   :  { %v5151_v28 = vld [vmem:[#allocation2 + $0x890] sm:$0xf]  ;;  %v5952_v35 = vor.u32 %v6571_v23, %v5951_v24  ;;  %3641 = vmatpush.bf16.msrb.mxu2 %v5696_v27  ;;  %v6207_v24 = vld [vmem:[#allocation2 + $0x394] sm:$0xf]  ;;  %v5060_v23 = vor.u32 %v6343_v32, %v5057_v14  ;;  %v6818_v14 = vpop.f32.mrf.mxu2 }
 0x1e1   :  { %v6371_v30 = vld [vmem:[#allocation2 + $0x8ac] sm:$0xf0]  ;;  %v4769_v27 = vld [vmem:[#allocation2 + $0x5b0] sm:$0xf0]  ;;  %v4516_v34 = vor.u32 %v6207_v24, %v4513_v4 }
 0x1e2   :  { %v5407_v33 = vld [vmem:[#allocation2 + $0xa90] sm:$0xf]  ;;  %v5152_v44 = vor.u32 %v6371_v30, %v5151_v28  ;;  %3654 = vmatpush.bf16.msrb.mxu3 %v5952_v35  ;;  %v6335_v28 = vld [vmem:[#allocation2 + $0x794] sm:$0xf]  ;;  %v4772_v35 = vor.u32 %v6271_v25, %v4769_v27 }
 0x1e3   :  { %v6435_v36 = vld [vmem:[#allocation2 + $0xaac] sm:$0xf0]  ;;  %v5025_v30 = vld [vmem:[#allocation2 + $0x7b0] sm:$0xf0] }
 0x1e4   :  { %v5663_v37 = vld [vmem:[#allocation2 + $0xc90] sm:$0xf]  ;;  %v5408_v60 = vor.u32 %v6435_v36, %v5407_v33  ;;  %3616 = vmatpush.bf16.msrb.mxu0 %v5152_v44  ;;  %v4260_v33 = vor.u32 %v6143_v16, %v4257_v19  ;;  %v6135_v36 = vld [vmem:[#allocation2 + $0x154] sm:$0xf]  ;;  %v5028_v40 = vor.u32 %v6335_v28, %v5025_v30  ;;  %v6820_v16 = vpop.f32.mrf.mxu3 }
 0x1e5   :  { %v6499_v39 = vld [vmem:[#allocation2 + $0xcac] sm:$0xf0]  ;;  %v4737_v44 = vld [vmem:[#allocation2 + $0x570] sm:$0xf0] }
 0x1e6   :  { %v5919_v42 = vld [vmem:[#allocation2 + $0xe90] sm:$0xf]  ;;  %v5664_v47 = vor.u32 %v6499_v39, %v5663_v37  ;;  %3629 = vmatpush.bf16.msrb.mxu1 %v5408_v60  ;;  %v4225_v37 = vld [vmem:[#allocation2 + $0x170] sm:$0xf0] }
 0x1e7   :  { %v6563_v43 = vld [vmem:[#allocation2 + $0xeac] sm:$0xf0]  ;;  %v6199_v39 = vld [vmem:[#allocation2 + $0x354] sm:$0xf] }
 0x1e8   :  { %v5119_v48 = vld [vmem:[#allocation2 + $0x850] sm:$0xf]  ;;  %v5920_v20 = vor.u32 %v6563_v43, %v5919_v42  ;;  %3642 = vmatpush.bf16.msrb.mxu2 %v5664_v47  ;;  %v4481_v42 = vld [vmem:[#allocation2 + $0x370] sm:$0xf0] }
 0x1e9   :  { %v6363_v49 = vld [vmem:[#allocation2 + $0x86c] sm:$0xf0]  ;;  %v6263_v43 = vld [vmem:[#allocation2 + $0x554] sm:$0xf]  ;;  %v4484_v51 = vor.u32 %v6199_v39, %v4481_v42 }
 0x1ea   :  { %v5375_v50 = vld [vmem:[#allocation2 + $0xa50] sm:$0xf]  ;;  %v5120_v26 = vor.u32 %v6363_v49, %v5119_v48  ;;  %3655 = vmatpush.bf16.msrb.mxu3 %v5920_v20  ;;  %v6808_v60 = vld [vmem:[#allocation1 + $0x3f] sm:$0xff]  ;;  %v4228_v49 = vor.u32 %v6135_v36, %v4225_v37  ;;  %v4740_v20 = vor.u32 %v6263_v43, %v4737_v44 }
 0x1eb   :  { %v6427_v52 = vld [vmem:[#allocation2 + $0xa6c] sm:$0xf0]  ;;  %v6327_v47 = vld [vmem:[#allocation2 + $0x754] sm:$0xf] }
 0x1ec   :  { %v5631_v54 = vld [vmem:[#allocation2 + $0xc50] sm:$0xf]  ;;  %v5376_v58 = vor.u32 %v6427_v52, %v5375_v50  ;;  %3617 = vmatpush.bf16.msrb.mxu0 %v5120_v26  ;;  %v4993_v48 = vld [vmem:[#allocation2 + $0x770] sm:$0xf0]  ;;  %v6811_v50 = vld [vmem:[#allocation1 + $0x2d] sm:$0xff] }
 0x1ed   :  { %v6491_v21 = vld [vmem:[#allocation2 + $0xc6c] sm:$0xf0]  ;;  %v6127_v52 = vld [vmem:[#allocation2 + $0x114] sm:$0xf] }
 0x1ee   :  { %v5887_v22 = vld [vmem:[#allocation2 + $0xe50] sm:$0xf]  ;;  %v5632_v59 = vor.u32 %v6491_v21, %v5631_v54  ;;  %3630 = vmatpush.bf16.msrb.mxu1 %v5376_v58  ;;  %v4193_v54 = vld [vmem:[#allocation2 + $0x130] sm:$0xf0] }
 0x1ef   :  { %v6555_v55 = vld [vmem:[#allocation2 + $0xe6c] sm:$0xf0]  ;;  %v6191_v21 = vld [vmem:[#allocation2 + $0x314] sm:$0xf] }
 0x1f0   :  { %v5087_v56 = vld [vmem:[#allocation2 + $0x810] sm:$0xf]  ;;  %v5888_v0 = vor.u32 %v6555_v55, %v5887_v22  ;;  %3643 = vmatpush.bf16.msrb.mxu2 %v5632_v59  ;;  %v4996_v22 = vor.u32 %v6327_v47, %v4993_v48  ;;  %v4449_v55 = vld [vmem:[#allocation2 + $0x330] sm:$0xf0]  ;;  %v4196_v59 = vor.u32 %v6127_v52, %v4193_v54  ;;  %v3440_v54 = vpop.f32.mrf.mxu2 }
 0x1f1   :  { %v6355_v57 = vld [vmem:[#allocation2 + $0x82c] sm:$0xf0]  ;;  %v6255_v26 = vld [vmem:[#allocation2 + $0x514] sm:$0xf] }
 0x1f2   :  { %v5343_v53 = vld [vmem:[#allocation2 + $0xa10] sm:$0xf]  ;;  %v5088_v9 = vor.u32 %v6355_v57, %v5087_v56  ;;  %3656 = vmatpush.bf16.msrb.mxu3 %v5888_v0  ;;  %v4705_v56 = vld [vmem:[#allocation2 + $0x530] sm:$0xf0] }
 0x1f3   :  { %v6419_v61 = vld [vmem:[#allocation2 + $0xa2c] sm:$0xf0]  ;;  %v6319_v57 = vld [vmem:[#allocation2 + $0x714] sm:$0xf] }
 0x1f4   :  { %v5599_v62 = vld [vmem:[#allocation2 + $0xc10] sm:$0xf]  ;;  %v5344_v31 = vor.u32 %v6419_v61, %v5343_v53  ;;  %3618 = vmatpush.bf16.msrb.mxu0 %v5088_v9  ;;  %v4961_v58 = vld [vmem:[#allocation2 + $0x730] sm:$0xf0]  ;;  %v6814_v53 = vpop.f32.mrf.mxu0  ;;  %v4452_v61 = vor.u32 %v6191_v21, %v4449_v55 }
 0x1f5   :  { %v6483_v1 = vld [vmem:[#allocation2 + $0xc2c] sm:$0xf0]  ;;  %v4161_v0 = vld [vmem:[#allocation2 + $0xf0] sm:$0xf0] }
 0x1f6   :  { %v5855_v2 = vld [vmem:[#allocation2 + $0xe10] sm:$0xf]  ;;  %v5600_v13 = vor.u32 %v6483_v1, %v5599_v62  ;;  %3631 = vmatpush.bf16.msrb.mxu1 %v5344_v31  ;;  %v4708_v62 = vor.u32 %v6255_v26, %v4705_v56  ;;  %v6183_v1 = vld [vmem:[#allocation2 + $0x2d4] sm:$0xf]  ;;  %v4164_v10 = vor.u32 %v6119_v63, %v4161_v0  ;;  %v3453_v56 = vpop.f32.mrf.mxu3 }
 0x1f7   :  { %v6547_v3 = vld [vmem:[#allocation2 + $0xe2c] sm:$0xf0]  ;;  %3619 = vmatmul.bf16.vlgmr.msrb.gmra.mxu0 %v6805_v46  ;;  %v4673_v6 = vld [vmem:[#allocation2 + $0x4f0] sm:$0xf0]  ;;  %v4420_v11 = vor.u32 %v6183_v1, %v4417_v7 }
 0x1f8   :  { %v5856_v38 = vor.u32 %v6547_v3, %v5855_v2  ;;  %3644 = vmatpush.bf16.msrb.mxu2 %v5600_v13  ;;  %3663 = vmatpush.bf16.msra.mxu0 %v4292_v17  ;;  %v6802_v41 = vld [vmem:[#allocation1 + $0x36] sm:$0xff]  ;;  %v6816_v2 = vpop.f32.mrf.mxu1  ;;  %v4964_v3 = vor.u32 %v6319_v57, %v4961_v58  ;;  %v4676_v12 = vor.u32 %v6247_v5, %v4673_v6 }
 0x1f9   :  { %3632 = vmatmul.bf16.vlgmr.msrb.gmra.mxu1 %v6811_v50  ;;  %v6311_v29 = vld [vmem:[#allocation2 + $0x6d4] sm:$0xf] }
 0x1fa   :  { %3657 = vmatpush.bf16.msrb.mxu3 %v5856_v38  ;;  %3676 = vmatpush.bf16.msra.mxu1 %v4548_v15  ;;  %v4929_v9 = vld [vmem:[#allocation2 + $0x6f0] sm:$0xf0] }
 0x1fb   :  { %3645 = vmatmul.bf16.vlgmr.msrb.gmra.mxu2 %v6802_v41  ;;  %v6111_v31 = vld [vmem:[#allocation2 + $0x94] sm:$0xf]  ;;  %v4932_v38 = vor.u32 %v6311_v29, %v4929_v9 }
 0x1fc   :  { %3689 = vmatpush.bf16.msra.mxu2 %v4804_v18  ;;  %3664 = vmatpush.bf16.msra.mxu0 %v4260_v33  ;;  %v4129_v13 = vld [vmem:[#allocation2 + $0xb0] sm:$0xf0]  ;;  %v3414_v4 = vpop.f32.mrf.mxu0 }
 0x1fd   :  { %3658 = vmatmul.bf16.vlgmr.msrb.gmra.mxu3 %v6808_v60  ;;  %v6175_v32 = vld [vmem:[#allocation2 + $0x294] sm:$0xf] }
 0x1fe   :  { %3702 = vmatpush.bf16.msra.mxu3 %v5060_v23  ;;  %3677 = vmatpush.bf16.msra.mxu1 %v4516_v34  ;;  %v4385_v17 = vld [vmem:[#allocation2 + $0x2b0] sm:$0xf0]  ;;  %v4132_v23 = vor.u32 %v6111_v31, %v4129_v13 }
 0x1ff   :  { %v6239_v15 = vld [vmem:[#allocation2 + $0x494] sm:$0xf]  ;;  %v4388_v25 = vor.u32 %v6175_v32, %v4385_v17 }
 0x200   :  { %3690 = vmatpush.bf16.msra.mxu2 %v4772_v35  ;;  %3665 = vmatpush.bf16.msra.mxu0 %v4228_v49  ;;  %v4641_v18 = vld [vmem:[#allocation2 + $0x4b0] sm:$0xf0]  ;;  %v3427_v34 = vpop.f32.mrf.mxu1 }
 0x201   :  { %v6303_v19 = vld [vmem:[#allocation2 + $0x694] sm:$0xf]  ;;  %v4644_v27 = vor.u32 %v6239_v15, %v4641_v18 }
 0x202   :  { %3703 = vmatpush.bf16.msra.mxu3 %v5028_v40  ;;  %3678 = vmatpush.bf16.msra.mxu1 %v4484_v51  ;;  %v4897_v24 = vld [vmem:[#allocation2 + $0x6b0] sm:$0xf0] }
 0x203   :  { %v6103_v28 = vld [vmem:[#allocation2 + $0x54] sm:$0xf]  ;;  %v4900_v35 = vor.u32 %v6303_v19, %v4897_v24 }
 0x204   :  { %3691 = vmatpush.bf16.msra.mxu2 %v4740_v20  ;;  %3666 = vmatpush.bf16.msra.mxu0 %v4196_v59  ;;  %v4097_v30 = vld [vmem:[#allocation2 + $0x70] sm:$0xf0]  ;;  %v6834_v56 = vpop.f32.mrf.mxu0 }
 0x205   :  { %v6167_v33 = vld [vmem:[#allocation2 + $0x254] sm:$0xf]  ;;  %v4100_v43 = vor.u32 %v6103_v28, %v4097_v30 }
 0x206   :  { %3704 = vmatpush.bf16.msra.mxu3 %v4996_v22  ;;  %3679 = vmatpush.bf16.msra.mxu1 %v4452_v61  ;;  %v4353_v36 = vld [vmem:[#allocation2 + $0x270] sm:$0xf0] }
 0x207   :  { %v6231_v37 = vld [vmem:[#allocation2 + $0x454] sm:$0xf]  ;;  %v4356_v48 = vor.u32 %v6167_v33, %v4353_v36 }
 0x208   :  { %3692 = vmatpush.bf16.msra.mxu2 %v4708_v62  ;;  %3667 = vmatpush.bf16.msra.mxu0 %v4164_v10  ;;  %v4609_v39 = vld [vmem:[#allocation2 + $0x470] sm:$0xf0] }
 0x209   :  { %v6295_v40 = vld [vmem:[#allocation2 + $0x654] sm:$0xf]  ;;  %v4612_v49 = vor.u32 %v6231_v37, %v4609_v39  ;;  %v6825_v39 = vld [vmem:[#allocation1] sm:$0xff] }
 0x20a   :  { %3705 = vmatpush.bf16.msra.mxu3 %v4964_v3  ;;  %3680 = vmatpush.bf16.msra.mxu1 %v4420_v11  ;;  %v4865_v42 = vld [vmem:[#allocation2 + $0x670] sm:$0xf0] }
 0x20b   :  { %v6095_v44 = vld [vmem:[#allocation2 + $0x14] sm:$0xf]  ;;  %v4868_v21 = vor.u32 %v6295_v40, %v4865_v42 }
 0x20c   :  { %3693 = vmatpush.bf16.msra.mxu2 %v4676_v12  ;;  %3668 = vmatpush.bf16.msra.mxu0 %v4132_v23  ;;  %v4065_v47 = vld [vmem:[#allocation2 + $0x30] sm:$0xf0] }
 0x20d   :  { %v6159_v51 = vld [vmem:[#allocation2 + $0x214] sm:$0xf]  ;;  %v4068_v61 = vor.u32 %v6095_v44, %v4065_v47 }
 0x20e   :  { %3706 = vmatpush.bf16.msra.mxu3 %v4932_v38  ;;  %3681 = vmatpush.bf16.msra.mxu1 %v4388_v25  ;;  %v4321_v20 = vld [vmem:[#allocation2 + $0x230] sm:$0xf0] }
 0x20f   :  { %v6223_v52 = vld [vmem:[#allocation2 + $0x414] sm:$0xf]  ;;  %v4324_v1 = vor.u32 %v6159_v51, %v4321_v20 }
 0x210   :  { %3694 = vmatpush.bf16.msra.mxu2 %v4644_v27  ;;  %v4577_v22 = vld [vmem:[#allocation2 + $0x430] sm:$0xf0]  ;;  %3669 = vmatpush.bf16.msra.mxu0 %v4100_v43  ;;  %v6831_v43 = vld [vmem:[#allocation1 + $0x9] sm:$0xff] }
 0x211   :  { %v6287_v55 = vld [vmem:[#allocation2 + $0x614] sm:$0xf]  ;;  %v4580_v3 = vor.u32 %v6223_v52, %v4577_v22 }
 0x212   :  { %3707 = vmatpush.bf16.msra.mxu3 %v4900_v35  ;;  %v4833_v26 = vld [vmem:[#allocation2 + $0x630] sm:$0xf0]  ;;  %3682 = vmatpush.bf16.msra.mxu1 %v4356_v48  ;;  %v6822_v35 = vld [vmem:[#allocation1 + $0x12] sm:$0xff] }
 0x213   :  { %v6407_v57 = vld [vmem:[#allocation2 + $0x9d4] sm:$0xf]  ;;  %v4836_v6 = vor.u32 %v6287_v55, %v4833_v26 }
 0x214   :  { %v5313_v58 = vld [vmem:[#allocation2 + $0x9f0] sm:$0xf0]  ;;  %3695 = vmatpush.bf16.msra.mxu2 %v4612_v49  ;;  %3670 = vmatpush.bf16.msra.mxu0 %v4068_v61 }
 0x215   :  { %v6471_v59 = vld [vmem:[#allocation2 + $0xbd4] sm:$0xf]  ;;  %v5316_v29 = vor.u32 %v6407_v57, %v5313_v58 }
 0x216   :  { %v5569_v62 = vld [vmem:[#allocation2 + $0xbf0] sm:$0xf0]  ;;  %3708 = vmatpush.bf16.msra.mxu3 %v4868_v21  ;;  %3683 = vmatpush.bf16.msra.mxu1 %v4324_v1 }
 0x217   :  { %v6535_v63 = vld [vmem:[#allocation2 + $0xdd4] sm:$0xf]  ;;  %v5572_v9 = vor.u32 %v6471_v59, %v5569_v62  ;;  %3671 = vmatmul.bf16.vlgmr.msra.gmra.mxu0 %v6825_v39 }
 0x218   :  { %v5825_v0 = vld [vmem:[#allocation2 + $0xdf0] sm:$0xf0]  ;;  %3696 = vmatpush.bf16.msra.mxu2 %v4580_v3  ;;  %3715 = vmatpush.bf16.msrb.mxu0 %v5316_v29 }
 0x219   :  { %v6599_v7 = vld [vmem:[#allocation2 + $0xfd4] sm:$0xf]  ;;  %v5828_v10 = vor.u32 %v6535_v63, %v5825_v0  ;;  %3684 = vmatmul.bf16.vlgmr.msra.gmra.mxu1 %v6831_v43  ;;  %v6836_v63 = vpop.f32.mrf.mxu1 }
 0x21a   :  { %v6081_v5 = vld [vmem:[#allocation2 + $0xff0] sm:$0xf0]  ;;  %3709 = vmatpush.bf16.msra.mxu3 %v4836_v6  ;;  %3728 = vmatpush.bf16.msrb.mxu1 %v5572_v9 }
 0x21b   :  { %v6399_v11 = vld [vmem:[#allocation2 + $0x994] sm:$0xf]  ;;  %v6084_v13 = vor.u32 %v6599_v7, %v6081_v5  ;;  %3697 = vmatmul.bf16.vlgmr.msra.gmra.mxu2 %v6822_v35 }
 0x21c   :  { %v5281_v12 = vld [vmem:[#allocation2 + $0x9b0] sm:$0xf0]  ;;  %3741 = vmatpush.bf16.msrb.mxu2 %v5828_v10 }
 0x21d   :  { %v6463_v31 = vld [vmem:[#allocation2 + $0xb94] sm:$0xf]  ;;  %v5284_v19 = vor.u32 %v6399_v11, %v5281_v12 }
 0x21e   :  { %v5537_v32 = vld [vmem:[#allocation2 + $0xbb0] sm:$0xf0]  ;;  %3754 = vmatpush.bf16.msrb.mxu3 %v6084_v13  ;;  %v6838_v13 = vpop.f32.mrf.mxu2 }
 0x21f   :  { %v6527_v38 = vld [vmem:[#allocation2 + $0xd94] sm:$0xf]  ;;  %v5540_v24 = vor.u32 %v6463_v31, %v5537_v32  ;;  %3716 = vmatpush.bf16.msrb.mxu0 %v5284_v19 }
 0x220   :  { %v5793_v17 = vld [vmem:[#allocation2 + $0xdb0] sm:$0xf0] }
 0x221   :  { %v6591_v15 = vld [vmem:[#allocation2 + $0xf94] sm:$0xf]  ;;  %v5796_v23 = vor.u32 %v6527_v38, %v5793_v17  ;;  %3729 = vmatpush.bf16.msrb.mxu1 %v5540_v24 }
 0x222   :  { %v6049_v18 = vld [vmem:[#allocation2 + $0xfb0] sm:$0xf0] }
 0x223   :  { %v6391_v4 = vld [vmem:[#allocation2 + $0x954] sm:$0xf]  ;;  %v6052_v28 = vor.u32 %v6591_v15, %v6049_v18  ;;  %3742 = vmatpush.bf16.msrb.mxu2 %v5796_v23  ;;  %v6840_v18 = vpop.f32.mrf.mxu3 }
 0x224   :  { %v5249_v25 = vld [vmem:[#allocation2 + $0x970] sm:$0xf0] }
 0x225   :  { %v6455_v27 = vld [vmem:[#allocation2 + $0xb54] sm:$0xf]  ;;  %v5252_v42 = vor.u32 %v6391_v4, %v5249_v25  ;;  %3755 = vmatpush.bf16.msrb.mxu3 %v6052_v28  ;;  %v3466_v4 = vpop.f32.mrf.mxu0 }
 0x226   :  { %v5505_v30 = vld [vmem:[#allocation2 + $0xb70] sm:$0xf0] }
 0x227   :  { %v6519_v33 = vld [vmem:[#allocation2 + $0xd54] sm:$0xf]  ;;  %v5508_v44 = vor.u32 %v6455_v27, %v5505_v30  ;;  %3717 = vmatpush.bf16.msrb.mxu0 %v5252_v42 }
 0x228   :  { %v5761_v34 = vld [vmem:[#allocation2 + $0xd70] sm:$0xf0] }
 0x229   :  { %v6583_v36 = vld [vmem:[#allocation2 + $0xf54] sm:$0xf]  ;;  %v5764_v47 = vor.u32 %v6519_v33, %v5761_v34  ;;  %3730 = vmatpush.bf16.msrb.mxu1 %v5508_v44  ;;  %v3479_v34 = vpop.f32.mrf.mxu1 }
 0x22a   :  { %v6017_v37 = vld [vmem:[#allocation2 + $0xf70] sm:$0xf0]  ;;  %v3413_v34 = vadd.f32 %v6814_v53, %v6800_v45  ;;  %v4999_v45 = vld [vmem:[#allocation2 + $0x758] sm:$0xf] }
 0x22b   :  { %v6828_v40 = vld [vmem:[#allocation1 + $0x1b] sm:$0xff]  ;;  %v6020_v20 = vor.u32 %v6583_v36, %v6017_v37  ;;  %3743 = vmatpush.bf16.msrb.mxu2 %v5764_v47 }
 0x22c   :  { %3710 = vmatmul.bf16.vlgmr.msra.gmra.mxu3 %v6828_v40  ;;  %v6383_v48 = vld [vmem:[#allocation2 + $0x914] sm:$0xf]  ;;  %v6332_v53 = vld [vmem:[#allocation2 + $0x774] sm:$0xf0] }
 0x22d   :  { %v5217_v49 = vld [vmem:[#allocation2 + $0x930] sm:$0xf0]  ;;  %3756 = vmatpush.bf16.msrb.mxu3 %v6020_v20 }
 0x22e   :  { %v6447_v51 = vld [vmem:[#allocation2 + $0xb14] sm:$0xf]  ;;  %v5220_v26 = vor.u32 %v6383_v48, %v5217_v49 }
 0x22f   :  { %v5473_v52 = vld [vmem:[#allocation2 + $0xb30] sm:$0xf0] }
 0x230   :  { %v6511_v54 = vld [vmem:[#allocation2 + $0xd14] sm:$0xf]  ;;  %v5476_v57 = vor.u32 %v6447_v51, %v5473_v52  ;;  %3718 = vmatpush.bf16.msrb.mxu0 %v5220_v26  ;;  %v3492_v26 = vpop.f32.mrf.mxu2 }
 0x231   :  { %v5729_v21 = vld [vmem:[#allocation2 + $0xd30] sm:$0xf0]  ;;  %v4455_v26 = vld [vmem:[#allocation2 + $0x318] sm:$0xf] }
 0x232   :  { %v6575_v22 = vld [vmem:[#allocation2 + $0xf14] sm:$0xf]  ;;  %v5732_v58 = vor.u32 %v6511_v54, %v5729_v21  ;;  %3731 = vmatpush.bf16.msrb.mxu1 %v5476_v57 }
 0x233   :  { %v5985_v55 = vld [vmem:[#allocation2 + $0xf30] sm:$0xf0] }
 0x234   :  { %v6375_v59 = vld [vmem:[#allocation2 + $0x8d4] sm:$0xf]  ;;  %v5988_v0 = vor.u32 %v6575_v22, %v5985_v55  ;;  %3744 = vmatpush.bf16.msrb.mxu2 %v5732_v58 }
 0x235   :  { %v5185_v61 = vld [vmem:[#allocation2 + $0x8f0] sm:$0xf0] }
 0x236   :  { %v6439_v62 = vld [vmem:[#allocation2 + $0xad4] sm:$0xf]  ;;  %v5188_v29 = vor.u32 %v6375_v59, %v5185_v61  ;;  %3757 = vmatpush.bf16.msrb.mxu3 %v5988_v0  ;;  %v4295_v0 = vld [vmem:[#allocation2 + $0x1d8] sm:$0xf] }
 0x237   :  { %v5441_v1 = vld [vmem:[#allocation2 + $0xaf0] sm:$0xf0] }
 0x238   :  { %v6503_v3 = vld [vmem:[#allocation2 + $0xcd4] sm:$0xf]  ;;  %v5444_v9 = vor.u32 %v6439_v62, %v5441_v1  ;;  %3719 = vmatpush.bf16.msrb.mxu0 %v5188_v29  ;;  %v3505_v62 = vpop.f32.mrf.mxu3  ;;  %v6156_v1 = vld [vmem:[#allocation2 + $0x1f4] sm:$0xf0] }
 0x239   :  { %v5697_v7 = vld [vmem:[#allocation2 + $0xcf0] sm:$0xf0]  ;;  %v6284_v29 = vld [vmem:[#allocation2 + $0x5f4] sm:$0xf0] }
 0x23a   :  { %v6567_v5 = vld [vmem:[#allocation2 + $0xed4] sm:$0xf]  ;;  %v5700_v10 = vor.u32 %v6503_v3, %v5697_v7  ;;  %3732 = vmatpush.bf16.msrb.mxu1 %v5444_v9  ;;  %v4551_v3 = vld [vmem:[#allocation2 + $0x3d8] sm:$0xf] }
 0x23b   :  { %v5953_v6 = vld [vmem:[#allocation2 + $0xef0] sm:$0xf0] }
 0x23c   :  { %v6367_v11 = vld [vmem:[#allocation2 + $0x894] sm:$0xf]  ;;  %v5956_v32 = vor.u32 %v6567_v5, %v5953_v6  ;;  %3745 = vmatpush.bf16.msrb.mxu2 %v5700_v10  ;;  %v6220_v5 = vld [vmem:[#allocation2 + $0x3f4] sm:$0xf0] }
 0x23d   :  { %v5153_v12 = vld [vmem:[#allocation2 + $0x8b0] sm:$0xf0]  ;;  %v4807_v6 = vld [vmem:[#allocation2 + $0x5d8] sm:$0xf] }
 0x23e   :  { %v6431_v31 = vld [vmem:[#allocation2 + $0xa94] sm:$0xf]  ;;  %v5156_v23 = vor.u32 %v6367_v11, %v5153_v12  ;;  %3758 = vmatpush.bf16.msrb.mxu3 %v5956_v32  ;;  %v5063_v11 = vld [vmem:[#allocation2 + $0x7d8] sm:$0xf]  ;;  %v4296_v32 = vor.u32 %v6156_v1, %v4295_v0  ;;  %v3516_v0 = vpop.f32.mrf.mxu0 }
 0x23f   :  { %v5409_v38 = vld [vmem:[#allocation2 + $0xab0] sm:$0xf0]  ;;  %v6348_v12 = vld [vmem:[#allocation2 + $0x7f4] sm:$0xf0] }
 0x240   :  { %v6495_v17 = vld [vmem:[#allocation2 + $0xc94] sm:$0xf]  ;;  %v5412_v25 = vor.u32 %v6431_v31, %v5409_v38  ;;  %3720 = vmatpush.bf16.msrb.mxu0 %v5156_v23  ;;  %v3478_v38 = vadd.f32 %v6836_v63, %v6834_v56  ;;  %v4519_v23 = vld [vmem:[#allocation2 + $0x398] sm:$0xf]  ;;  %v5064_v4 = vor.u32 %v6348_v12, %v5063_v11 }
 0x241   :  { %v5665_v15 = vld [vmem:[#allocation2 + $0xcb0] sm:$0xf0]  ;;  %v4167_v1 = vld [vmem:[#allocation2 + $0xd8] sm:$0xf] }
 0x242   :  { %v6559_v19 = vld [vmem:[#allocation2 + $0xe94] sm:$0xf]  ;;  %v5668_v27 = vor.u32 %v6495_v17, %v5665_v15  ;;  %3733 = vmatpush.bf16.msrb.mxu1 %v5412_v25  ;;  %v4552_v17 = vor.u32 %v6220_v5, %v4551_v3  ;;  %v4808_v15 = vor.u32 %v6284_v29, %v4807_v6  ;;  %v6212_v25 = vld [vmem:[#allocation2 + $0x3b4] sm:$0xf0]  ;;  %v3491_v63 = vadd.f32 %v6838_v13, %v3478_v38  ;;  %v3529_v6 = vpop.f32.mrf.mxu1 }
 0x243   :  { %v5921_v24 = vld [vmem:[#allocation2 + $0xeb0] sm:$0xf0]  ;;  %v3426_v13 = vadd.f32 %v6816_v2, %v3413_v34  ;;  %v6324_v2 = vld [vmem:[#allocation2 + $0x734] sm:$0xf0] }
 0x244   :  { %v6359_v28 = vld [vmem:[#allocation2 + $0x854] sm:$0xf]  ;;  %v5924_v36 = vor.u32 %v6559_v19, %v5921_v24  ;;  %3746 = vmatpush.bf16.msrb.mxu2 %v5668_v27  ;;  %v4263_v19 = vld [vmem:[#allocation2 + $0x198] sm:$0xf] }
 0x245   :  { %v5121_v30 = vld [vmem:[#allocation2 + $0x870] sm:$0xf0]  ;;  %v6148_v24 = vld [vmem:[#allocation2 + $0x1b4] sm:$0xf0] }
 0x246   :  { %v6423_v33 = vld [vmem:[#allocation2 + $0xa54] sm:$0xf]  ;;  %v5124_v49 = vor.u32 %v6359_v28, %v5121_v30  ;;  %3759 = vmatpush.bf16.msrb.mxu3 %v5924_v36  ;;  %v4775_v27 = vld [vmem:[#allocation2 + $0x598] sm:$0xf]  ;;  %v4264_v56 = vor.u32 %v6148_v24, %v4263_v19  ;;  %v4520_v36 = vor.u32 %v6212_v25, %v4519_v23 }
 0x247   :  { %v5377_v37 = vld [vmem:[#allocation2 + $0xa70] sm:$0xf0]  ;;  %v6276_v28 = vld [vmem:[#allocation2 + $0x5b4] sm:$0xf0] }
 0x248   :  { %v6487_v42 = vld [vmem:[#allocation2 + $0xc54] sm:$0xf]  ;;  %v5380_v52 = vor.u32 %v6423_v33, %v5377_v37  ;;  %3721 = vmatpush.bf16.msrb.mxu0 %v5124_v49  ;;  %v5031_v30 = vld [vmem:[#allocation2 + $0x798] sm:$0xf]  ;;  %v4776_v37 = vor.u32 %v6276_v28, %v4775_v27 }
 0x249   :  { %v5633_v44 = vld [vmem:[#allocation2 + $0xc70] sm:$0xf0]  ;;  %v6340_v33 = vld [vmem:[#allocation2 + $0x7b4] sm:$0xf0] }
 0x24a   :  { %v6551_v47 = vld [vmem:[#allocation2 + $0xe54] sm:$0xf]  ;;  %v5636_v54 = vor.u32 %v6487_v42, %v5633_v44  ;;  %3734 = vmatpush.bf16.msrb.mxu1 %v5380_v52  ;;  %v4231_v42 = vld [vmem:[#allocation2 + $0x158] sm:$0xf]  ;;  %v6850_v52 = vld [vmem:[#allocation4] sm:$0xff] }
 0x24b   :  { %v5889_v48 = vld [vmem:[#allocation2 + $0xe70] sm:$0xf0]  ;;  %v6140_v44 = vld [vmem:[#allocation2 + $0x174] sm:$0xf0]  ;;  %v4012_v62 = vperm.slane %v6850_v52, 1  ;;  %v4011_v19 = vperm.slane %v6850_v52, 0 }
 0x24c   :  { %v6351_v51 = vld [vmem:[#allocation2 + $0x814] sm:$0xf]  ;;  %v5892_v57 = vor.u32 %v6551_v47, %v5889_v48  ;;  %3747 = vmatpush.bf16.msrb.mxu2 %v5636_v54  ;;  %v4487_v47 = vld [vmem:[#allocation2 + $0x358] sm:$0xf]  ;;  %v5032_v48 = vor.u32 %v6340_v33, %v5031_v30  ;;  %v4232_v54 = vor.u32 %v6140_v44, %v4231_v42  ;;  %v3542_v30 = vpop.f32.mrf.mxu2 }
 0x24d   :  { %v5089_v20 = vld [vmem:[#allocation2 + $0x830] sm:$0xf0]  ;;  %v6204_v49 = vld [vmem:[#allocation2 + $0x374] sm:$0xf0]  ;;  %v4019_v24 = vrot.slane %v4012_v62, 6 }
 0x24e   :  { %v6415_v21 = vld [vmem:[#allocation2 + $0xa14] sm:$0xf]  ;;  %v5092_v7 = vor.u32 %v6351_v51, %v5089_v20  ;;  %3760 = vmatpush.bf16.msrb.mxu3 %v5892_v57  ;;  %v4743_v51 = vld [vmem:[#allocation2 + $0x558] sm:$0xf] }
 0x24f   :  { %v5345_v22 = vld [vmem:[#allocation2 + $0xa30] sm:$0xf0]  ;;  %v6268_v20 = vld [vmem:[#allocation2 + $0x574] sm:$0xf0] }
 0x250   :  { %v6479_v55 = vld [vmem:[#allocation2 + $0xc14] sm:$0xf]  ;;  %v5348_v9 = vor.u32 %v6415_v21, %v5345_v22  ;;  %3722 = vmatpush.bf16.msrb.mxu0 %v5092_v7  ;;  %v4488_v21 = vor.u32 %v6204_v49, %v4487_v47  ;;  %v4744_v22 = vor.u32 %v6268_v20, %v4743_v51  ;;  %v6196_v57 = vld [vmem:[#allocation2 + $0x334] sm:$0xf0] }
 0x251   :  { %v5601_v58 = vld [vmem:[#allocation2 + $0xc30] sm:$0xf0]  ;;  %v4456_v3 = vor.u32 %v6196_v57, %v4455_v26  ;;  %v6124_v29 = vld [vmem:[#allocation2 + $0xf4] sm:$0xf0] }
 0x252   :  { %v6543_v59 = vld [vmem:[#allocation2 + $0xe14] sm:$0xf]  ;;  %v5604_v10 = vor.u32 %v6479_v55, %v5601_v58  ;;  %3735 = vmatpush.bf16.msrb.mxu1 %v5348_v9  ;;  %v4199_v55 = vld [vmem:[#allocation2 + $0x118] sm:$0xf] }
 0x253   :  { %v5857_v61 = vld [vmem:[#allocation2 + $0xe30] sm:$0xf0]  ;;  %3723 = vmatmul.bf16.vlgmr.msrb.gmra.mxu0 %v6805_v46  ;;  %v6132_v46 = vld [vmem:[#allocation2 + $0x134] sm:$0xf0] }
 0x254   :  { %v5860_v31 = vor.u32 %v6543_v59, %v5857_v61  ;;  %3748 = vmatpush.bf16.msrb.mxu2 %v5604_v10  ;;  %3767 = vmatpush.bf16.msra.mxu0 %v4296_v32  ;;  %v4711_v58 = vld [vmem:[#allocation2 + $0x518] sm:$0xf]  ;;  %v4013_v32 = vperm.slane %v6850_v52, 2 }
 0x255   :  { %3736 = vmatmul.bf16.vlgmr.msrb.gmra.mxu1 %v6811_v50  ;;  %v6260_v59 = vld [vmem:[#allocation2 + $0x534] sm:$0xf0]  ;;  %v3439_v50 = vadd.f32 %v6818_v14, %v3426_v13  ;;  %v4014_v14 = vperm.slane %v6850_v52, 3  ;;  %v3518_v52 = vpop.f32.mrf.mxu0  ;;  %v4025_v13 = vsel %vm3989_vm0, %v4011_v19, %v4019_v24 }
 0x256   :  { %3761 = vmatpush.bf16.msrb.mxu3 %v5860_v31  ;;  %3780 = vmatpush.bf16.msra.mxu1 %v4552_v17  ;;  %v4967_v61 = vld [vmem:[#allocation2 + $0x718] sm:$0xf]  ;;  %v4712_v7 = vor.u32 %v6260_v59, %v4711_v58  ;;  %v4020_v42 = vrot.slane %v4013_v32, 4 }
 0x257   :  { %3749 = vmatmul.bf16.vlgmr.msrb.gmra.mxu2 %v6802_v41  ;;  %v3504_v41 = vadd.f32 %v6840_v18, %v3491_v63  ;;  %v4200_v18 = vor.u32 %v6132_v46, %v4199_v55  ;;  %v4423_v9 = vld [vmem:[#allocation2 + $0x2d8] sm:$0xf]  ;;  %v4968_v11 = vor.u32 %v6324_v2, %v4967_v61  ;;  %v3452_v23 = vadd.f32 %v6820_v16, %v3439_v50  ;;  %v3531_v46 = vpop.f32.mrf.mxu1 }
 0x258   :  { %3793 = vmatpush.bf16.msra.mxu2 %v4808_v15  ;;  %3768 = vmatpush.bf16.msra.mxu0 %v4264_v56  ;;  %v6188_v10 = vld [vmem:[#allocation2 + $0x2f4] sm:$0xf0]  ;;  %v4021_v44 = vrot.slane %v4014_v14, 2 }
 0x259   :  { %3762 = vmatmul.bf16.vlgmr.msrb.gmra.mxu3 %v6808_v60  ;;  %v5000_v60 = vor.u32 %v6332_v53, %v4999_v45  ;;  %v3517_v5 = vadd.f32 %v3516_v0, %v3504_v41  ;;  %v4679_v12 = vld [vmem:[#allocation2 + $0x4d8] sm:$0xf]  ;;  %v4424_v27 = vor.u32 %v6188_v10, %v4423_v9  ;;  %v3984_v51 = vrot.slane %v3452_v23, 4  ;;  %v3544_v10 = vpop.f32.mrf.mxu2 }
 0x25a   :  { %3806 = vmatpush.bf16.msra.mxu3 %v5064_v4  ;;  %3781 = vmatpush.bf16.msra.mxu1 %v4520_v36  ;;  %v6252_v31 = vld [vmem:[#allocation2 + $0x4f4] sm:$0xf0]  ;;  %v4168_v4 = vor.u32 %v6124_v29, %v4167_v1 }
 0x25b   :  { %v3530_v38 = vadd.f32 %v3529_v6, %v3517_v5  ;;  %v4935_v17 = vld [vmem:[#allocation2 + $0x6d8] sm:$0xf]  ;;  %v4680_v28 = vor.u32 %v6252_v31, %v4679_v12 }
 0x25c   :  { %3794 = vmatpush.bf16.msra.mxu2 %v4776_v37  ;;  %3769 = vmatpush.bf16.msra.mxu0 %v4232_v54  ;;  %v6316_v15 = vld [vmem:[#allocation2 + $0x6f4] sm:$0xf0]  ;;  %v3555_v37 = vpop.f32.mrf.mxu3 }
 0x25d   :  { %v4135_v25 = vld [vmem:[#allocation2 + $0x98] sm:$0xf]  ;;  %v4936_v63 = vor.u32 %v6316_v15, %v4935_v17  ;;  %v3543_v36 = vadd.f32 %v3542_v30, %v3530_v38 }
 0x25e   :  { %3807 = vmatpush.bf16.msra.mxu3 %v5032_v48  ;;  %3782 = vmatpush.bf16.msra.mxu1 %v4488_v21  ;;  %v6116_v33 = vld [vmem:[#allocation2 + $0xb4] sm:$0xf0] }
 0x25f   :  { %v4391_v34 = vld [vmem:[#allocation2 + $0x298] sm:$0xf]  ;;  %v3556_v20 = vadd.f32 %v3555_v37, %v3543_v36  ;;  %v4136_v45 = vor.u32 %v6116_v33, %v4135_v25 }
 0x260   :  { %3795 = vmatpush.bf16.msra.mxu2 %v4744_v22  ;;  %3770 = vmatpush.bf16.msra.mxu0 %v4200_v18  ;;  %v6180_v56 = vld [vmem:[#allocation2 + $0x2b4] sm:$0xf0] }
 0x261   :  { %v4647_v47 = vld [vmem:[#allocation2 + $0x498] sm:$0xf]  ;;  %v4392_v54 = vor.u32 %v6180_v56, %v4391_v34  ;;  %v3985_v26 = vrot.slane %v3556_v20, 2 }
 0x262   :  { %3808 = vmatpush.bf16.msra.mxu3 %v5000_v60  ;;  %3783 = vmatpush.bf16.msra.mxu1 %v4456_v3  ;;  %v6244_v48 = vld [vmem:[#allocation2 + $0x4b4] sm:$0xf0]  ;;  %v4026_v60 = vsel %vm3991_vm1, %v4020_v42, %v4021_v44 }
 0x263   :  { %v4903_v16 = vld [vmem:[#allocation2 + $0x698] sm:$0xf]  ;;  %v4648_v41 = vor.u32 %v6244_v48, %v4647_v47  ;;  %v3992_v62 = vsel %vm3991_vm1, %v3984_v51, %v3985_v26 }
 0x264   :  { %3796 = vmatpush.bf16.msra.mxu2 %v4712_v7  ;;  %v6308_v49 = vld [vmem:[#allocation2 + $0x6b4] sm:$0xf0]  ;;  %3771 = vmatpush.bf16.msra.mxu0 %v4168_v4  ;;  %v3994_v3 = vsel %vm3993_vm2, %v6794_v8, %v3992_v62  ;;  %v4027_v7 = vsel %vm3993_vm2, %v4025_v13, %v4026_v60  ;;  %v3557_v14 = vpop.f32.mrf.mxu3 }
 0x265   :  { %v4103_v53 = vld [vmem:[#allocation2 + $0x58] sm:$0xf]  ;;  %v4904_v57 = vor.u32 %v6308_v49, %v4903_v16  ;;  %v4033_v19 = vadd.f32 %v4027_v7, %v3994_v3  ;;  %v3568_v3 = vpop.f32.mrf.mxu0 }
 0x266   :  { %3809 = vmatpush.bf16.msra.mxu3 %v4968_v11  ;;  %3784 = vmatpush.bf16.msra.mxu1 %v4424_v27  ;;  %v6108_v21 = vld [vmem:[#allocation2 + $0x74] sm:$0xf0] }
 0x267   :  { %v4359_v22 = vld [vmem:[#allocation2 + $0x258] sm:$0xf]  ;;  %v4104_v50 = vor.u32 %v6108_v21, %v4103_v53  ;;  %v4035_v33 = vmax.f32 %v4033_v19, 0.0 }
 0x268   :  { %3797 = vmatpush.bf16.msra.mxu2 %v4680_v28  ;;  %v6172_v55 = vld [vmem:[#allocation2 + $0x274] sm:$0xf0]  ;;  %3772 = vmatpush.bf16.msra.mxu0 %v4136_v45 }
 0x269   :  { %v4615_v58 = vld [vmem:[#allocation2 + $0x458] sm:$0xf]  ;;  %v4360_v18 = vor.u32 %v6172_v55, %v4359_v22  ;;  %4037 = vst [vmem:[%s6908_s3] sm:$0xff] %v4035_v33 }
 0x26a   :  { %3810 = vmatpush.bf16.msra.mxu3 %v4936_v63  ;;  %v6236_v59 = vld [vmem:[#allocation2 + $0x474] sm:$0xf0]  ;;  %3785 = vmatpush.bf16.msra.mxu1 %v4392_v54 }
 0x26b   :  { %v4871_v61 = vld [vmem:[#allocation2 + $0x658] sm:$0xf]  ;;  %v4616_v5 = vor.u32 %v6236_v59, %v4615_v58 }
 0x26c   :  { %v6300_v2 = vld [vmem:[#allocation2 + $0x674] sm:$0xf0]  ;;  %3798 = vmatpush.bf16.msra.mxu2 %v4648_v41  ;;  %3773 = vmatpush.bf16.msra.mxu0 %v4104_v50 }
 0x26d   :  { %v4071_v0 = vld [vmem:[#allocation2 + $0x18] sm:$0xf]  ;;  %v4872_v11 = vor.u32 %v6300_v2, %v4871_v61 }
 0x26e   :  { %v6100_v1 = vld [vmem:[#allocation2 + $0x34] sm:$0xf0]  ;;  %3811 = vmatpush.bf16.msra.mxu3 %v4904_v57  ;;  %3786 = vmatpush.bf16.msra.mxu1 %v4360_v18 }
 0x26f   :  { %v4327_v6 = vld [vmem:[#allocation2 + $0x218] sm:$0xf]  ;;  %v4072_v8 = vor.u32 %v6100_v1, %v4071_v0 }
 0x270   :  { %v6164_v29 = vld [vmem:[#allocation2 + $0x234] sm:$0xf0]  ;;  %3799 = vmatpush.bf16.msra.mxu2 %v4616_v5 }
 0x271   :  { %v4583_v9 = vld [vmem:[#allocation2 + $0x418] sm:$0xf]  ;;  %v4328_v25 = vor.u32 %v6164_v29, %v4327_v6  ;;  %3774 = vmatpush.bf16.msra.mxu0 %v4072_v8 }
 0x272   :  { %v6228_v12 = vld [vmem:[#allocation2 + $0x434] sm:$0xf0]  ;;  %3812 = vmatpush.bf16.msra.mxu3 %v4872_v11 }
 0x273   :  { %v4839_v31 = vld [vmem:[#allocation2 + $0x618] sm:$0xf]  ;;  %v4584_v27 = vor.u32 %v6228_v12, %v4583_v9  ;;  %3787 = vmatpush.bf16.msra.mxu1 %v4328_v25  ;;  %v3581_v9 = vpop.f32.mrf.mxu1 }
 0x274   :  { %v6292_v32 = vld [vmem:[#allocation2 + $0x634] sm:$0xf0]  ;;  %3775 = vmatmul.bf16.vlgmr.msra.gmra.mxu0 %v6825_v39 }
 0x275   :  { %v5319_v38 = vld [vmem:[#allocation2 + $0x9d8] sm:$0xf]  ;;  %v4840_v34 = vor.u32 %v6292_v32, %v4839_v31  ;;  %3800 = vmatpush.bf16.msra.mxu2 %v4584_v27  ;;  %v3582_v32 = vadd.f32 %v3581_v9, %v3568_v3  ;;  %v4809_v3 = vld [vmem:[#allocation2 + $0x5f8] sm:$0xf0] }
 0x276   :  { %v6412_v17 = vld [vmem:[#allocation2 + $0x9f4] sm:$0xf0]  ;;  %3788 = vmatmul.bf16.vlgmr.msra.gmra.mxu1 %v6831_v43 }
 0x277   :  { %v5575_v15 = vld [vmem:[#allocation2 + $0xbd8] sm:$0xf]  ;;  %v5320_v56 = vor.u32 %v6412_v17, %v5319_v38  ;;  %3813 = vmatpush.bf16.msra.mxu3 %v4840_v34  ;;  %v3607_v34 = vpop.f32.mrf.mxu3 }
 0x278   :  { %v6476_v24 = vld [vmem:[#allocation2 + $0xbf4] sm:$0xf0]  ;;  %3801 = vmatmul.bf16.vlgmr.msra.gmra.mxu2 %v6822_v35 }
 0x279   :  { %v5831_v23 = vld [vmem:[#allocation2 + $0xdd8] sm:$0xf]  ;;  %v5576_v63 = vor.u32 %v6476_v24, %v5575_v15  ;;  %3819 = vmatpush.bf16.msrb.mxu0 %v5320_v56 }
 0x27a   :  { %v6540_v4 = vld [vmem:[#allocation2 + $0xdf4] sm:$0xf0]  ;;  %3814 = vmatmul.bf16.vlgmr.msra.gmra.mxu3 %v6828_v40 }
 0x27b   :  { %v6087_v28 = vld [vmem:[#allocation2 + $0xfd8] sm:$0xf]  ;;  %v5832_v36 = vor.u32 %v6540_v4, %v5831_v23  ;;  %3832 = vmatpush.bf16.msrb.mxu1 %v5576_v63  ;;  %v3594_v4 = vpop.f32.mrf.mxu2 }
 0x27c   :  { %v6604_v30 = vld [vmem:[#allocation2 + $0xff4] sm:$0xf0]  ;;  %v3595_v33 = vadd.f32 %v3594_v4, %v3582_v32  ;;  %v6208_v32 = vld [vmem:[#allocation2 + $0x39c] sm:$0xf] }
 0x27d   :  { %v5287_v37 = vld [vmem:[#allocation2 + $0x998] sm:$0xf]  ;;  %v6088_v47 = vor.u32 %v6604_v30, %v6087_v28  ;;  %3845 = vmatpush.bf16.msrb.mxu2 %v5832_v36 }
 0x27e   :  { %v6404_v42 = vld [vmem:[#allocation2 + $0x9b4] sm:$0xf0] }
 0x27f   :  { %v5543_v44 = vld [vmem:[#allocation2 + $0xb98] sm:$0xf]  ;;  %v5288_v45 = vor.u32 %v6404_v42, %v5287_v37  ;;  %3858 = vmatpush.bf16.msrb.mxu3 %v6088_v47  ;;  %v6874_v37 = vadd.f32 %v3607_v34, %v3595_v33  ;;  %v3570_v42 = vpop.f32.mrf.mxu0  ;;  %v6876_v33 = vld [vmem:[#allocation1 + $0x36] sm:$0xff]  ;;  %v4489_v34 = vld [vmem:[#allocation2 + $0x378] sm:$0xf0] }
 0x280   :  { %v6468_v48 = vld [vmem:[#allocation2 + $0xbb4] sm:$0xf0] }
 0x281   :  { %v5799_v16 = vld [vmem:[#allocation2 + $0xd98] sm:$0xf]  ;;  %v5544_v53 = vor.u32 %v6468_v48, %v5543_v44  ;;  %3820 = vmatpush.bf16.msrb.mxu0 %v5288_v45 }
 0x282   :  { %v6532_v49 = vld [vmem:[#allocation2 + $0xdb4] sm:$0xf0] }
 0x283   :  { %v6055_v51 = vld [vmem:[#allocation2 + $0xf98] sm:$0xf]  ;;  %v5800_v52 = vor.u32 %v6532_v49, %v5799_v16  ;;  %3833 = vmatpush.bf16.msrb.mxu1 %v5544_v53 }
 0x284   :  { %v6596_v20 = vld [vmem:[#allocation2 + $0xfb4] sm:$0xf0] }
 0x285   :  { %v5255_v13 = vld [vmem:[#allocation2 + $0x958] sm:$0xf]  ;;  %v6056_v21 = vor.u32 %v6596_v20, %v6055_v51  ;;  %3846 = vmatpush.bf16.msrb.mxu2 %v5800_v52  ;;  %v3583_v51 = vpop.f32.mrf.mxu1 }
 0x286   :  { %v6396_v54 = vld [vmem:[#allocation2 + $0x974] sm:$0xf0] }
 0x287   :  { %v5511_v41 = vld [vmem:[#allocation2 + $0xb58] sm:$0xf]  ;;  %v5256_v57 = vor.u32 %v6396_v54, %v5255_v13  ;;  %3859 = vmatpush.bf16.msrb.mxu3 %v6056_v21 }
 0x288   :  { %v6460_v22 = vld [vmem:[#allocation2 + $0xb74] sm:$0xf0] }
 0x289   :  { %v5767_v55 = vld [vmem:[#allocation2 + $0xd58] sm:$0xf]  ;;  %v5512_v58 = vor.u32 %v6460_v22, %v5511_v41  ;;  %3821 = vmatpush.bf16.msrb.mxu0 %v5256_v57 }
 0x28a   :  { %v6524_v46 = vld [vmem:[#allocation2 + $0xd74] sm:$0xf0] }
 0x28b   :  { %v6023_v26 = vld [vmem:[#allocation2 + $0xf58] sm:$0xf]  ;;  %v5768_v59 = vor.u32 %v6524_v46, %v5767_v55  ;;  %3834 = vmatpush.bf16.msrb.mxu1 %v5512_v58  ;;  %v3596_v58 = vpop.f32.mrf.mxu2 }
 0x28c   :  { %v6588_v60 = vld [vmem:[#allocation2 + $0xf74] sm:$0xf0]  ;;  %v4169_v58 = vld [vmem:[#allocation2 + $0xf8] sm:$0xf0] }
 0x28d   :  { %v5223_v61 = vld [vmem:[#allocation2 + $0x918] sm:$0xf]  ;;  %v6024_v50 = vor.u32 %v6588_v60, %v6023_v26  ;;  %3847 = vmatpush.bf16.msrb.mxu2 %v5768_v59 }
 0x28e   :  { %v6388_v2 = vld [vmem:[#allocation2 + $0x934] sm:$0xf0] }
 0x28f   :  { %v5479_v62 = vld [vmem:[#allocation2 + $0xb18] sm:$0xf]  ;;  %v5224_v40 = vor.u32 %v6388_v2, %v5223_v61  ;;  %3860 = vmatpush.bf16.msrb.mxu3 %v6024_v50  ;;  %v3609_v50 = vpop.f32.mrf.mxu3 }
 0x290   :  { %v6452_v35 = vld [vmem:[#allocation2 + $0xb34] sm:$0xf0]  ;;  %v4425_v50 = vld [vmem:[#allocation2 + $0x2f8] sm:$0xf0] }
 0x291   :  { %v5735_v18 = vld [vmem:[#allocation2 + $0xd18] sm:$0xf]  ;;  %v5480_v43 = vor.u32 %v6452_v35, %v5479_v62  ;;  %3822 = vmatpush.bf16.msrb.mxu0 %v5224_v40  ;;  %v6152_v35 = vld [vmem:[#allocation2 + $0x1dc] sm:$0xf] }
 0x292   :  { %v6516_v0 = vld [vmem:[#allocation2 + $0xd34] sm:$0xf0]  ;;  %v6280_v40 = vld [vmem:[#allocation2 + $0x5dc] sm:$0xf] }
 0x293   :  { %v5991_v1 = vld [vmem:[#allocation2 + $0xf18] sm:$0xf]  ;;  %v5736_v7 = vor.u32 %v6516_v0, %v5735_v18  ;;  %3835 = vmatpush.bf16.msrb.mxu1 %v5480_v43  ;;  %v4297_v18 = vld [vmem:[#allocation2 + $0x1f8] sm:$0xf0] }
 0x294   :  { %v6580_v39 = vld [vmem:[#allocation2 + $0xf34] sm:$0xf0]  ;;  %v6216_v0 = vld [vmem:[#allocation2 + $0x3dc] sm:$0xf]  ;;  %v4300_v9 = vor.u32 %v6152_v35, %v4297_v18 }
 0x295   :  { %v5191_v5 = vld [vmem:[#allocation2 + $0x8d8] sm:$0xf]  ;;  %v5992_v10 = vor.u32 %v6580_v39, %v5991_v1  ;;  %3848 = vmatpush.bf16.msrb.mxu2 %v5736_v7  ;;  %v4553_v39 = vld [vmem:[#allocation2 + $0x3f8] sm:$0xf0] }
 0x296   :  { %v6380_v6 = vld [vmem:[#allocation2 + $0x8f4] sm:$0xf0]  ;;  %v6248_v35 = vld [vmem:[#allocation2 + $0x4dc] sm:$0xf] }
 0x297   :  { %v5447_v29 = vld [vmem:[#allocation2 + $0xad8] sm:$0xf]  ;;  %v5192_v17 = vor.u32 %v6380_v6, %v5191_v5  ;;  %3861 = vmatpush.bf16.msrb.mxu3 %v5992_v10  ;;  %v6344_v5 = vld [vmem:[#allocation2 + $0x7dc] sm:$0xf]  ;;  %v4556_v10 = vor.u32 %v6216_v0, %v4553_v39 }
 0x298   :  { %v6444_v11 = vld [vmem:[#allocation2 + $0xaf4] sm:$0xf0]  ;;  %v5065_v6 = vld [vmem:[#allocation2 + $0x7f8] sm:$0xf0] }
 0x299   :  { %v5703_v12 = vld [vmem:[#allocation2 + $0xcd8] sm:$0xf]  ;;  %v5448_v15 = vor.u32 %v6444_v11, %v5447_v29  ;;  %3823 = vmatpush.bf16.msrb.mxu0 %v5192_v17  ;;  %v4812_v11 = vor.u32 %v6280_v40, %v4809_v3  ;;  %v6272_v17 = vld [vmem:[#allocation2 + $0x59c] sm:$0xf] }
 0x29a   :  { %v6508_v31 = vld [vmem:[#allocation2 + $0xcf4] sm:$0xf0]  ;;  %v4681_v18 = vld [vmem:[#allocation2 + $0x4f8] sm:$0xf0] }
 0x29b   :  { %v5959_v14 = vld [vmem:[#allocation2 + $0xed8] sm:$0xf]  ;;  %v5704_v19 = vor.u32 %v6508_v31, %v5703_v12  ;;  %3836 = vmatpush.bf16.msrb.mxu1 %v5448_v15  ;;  %v6144_v12 = vld [vmem:[#allocation2 + $0x19c] sm:$0xf] }
 0x29c   :  { %v6572_v38 = vld [vmem:[#allocation2 + $0xef4] sm:$0xf0]  ;;  %v4265_v31 = vld [vmem:[#allocation2 + $0x1b8] sm:$0xf0] }
 0x29d   :  { %v5159_v8 = vld [vmem:[#allocation2 + $0x898] sm:$0xf]  ;;  %v5960_v25 = vor.u32 %v6572_v38, %v5959_v14  ;;  %3849 = vmatpush.bf16.msrb.mxu2 %v5704_v19  ;;  %v5068_v14 = vor.u32 %v6344_v5, %v5065_v6  ;;  %v4521_v38 = vld [vmem:[#allocation2 + $0x3b8] sm:$0xf0] }
 0x29e   :  { %v6372_v24 = vld [vmem:[#allocation2 + $0x8b4] sm:$0xf0]  ;;  %v4777_v15 = vld [vmem:[#allocation2 + $0x5b8] sm:$0xf0] }
 0x29f   :  { %v5415_v23 = vld [vmem:[#allocation2 + $0xa98] sm:$0xf]  ;;  %v5160_v36 = vor.u32 %v6372_v24, %v5159_v8  ;;  %3862 = vmatpush.bf16.msrb.mxu3 %v5960_v25  ;;  %v6336_v19 = vld [vmem:[#allocation2 + $0x79c] sm:$0xf]  ;;  %v4268_v24 = vor.u32 %v6144_v12, %v4265_v31  ;;  %v4780_v4 = vor.u32 %v6272_v17, %v4777_v15  ;;  %v3659_v31 = vpop.f32.mrf.mxu3 }
 0x2a0   :  { %v6436_v27 = vld [vmem:[#allocation2 + $0xab4] sm:$0xf0]  ;;  %v5033_v8 = vld [vmem:[#allocation2 + $0x7b8] sm:$0xf0] }
 0x2a1   :  { %v5671_v28 = vld [vmem:[#allocation2 + $0xc98] sm:$0xf]  ;;  %v5416_v44 = vor.u32 %v6436_v27, %v5415_v23  ;;  %3824 = vmatpush.bf16.msrb.mxu0 %v5160_v36  ;;  %v4524_v23 = vor.u32 %v6208_v32, %v4521_v38  ;;  %v6136_v25 = vld [vmem:[#allocation2 + $0x15c] sm:$0xf] }
 0x2a2   :  { %v6500_v30 = vld [vmem:[#allocation2 + $0xcb4] sm:$0xf0]  ;;  %v4233_v27 = vld [vmem:[#allocation2 + $0x178] sm:$0xf0] }
 0x2a3   :  { %v5927_v56 = vld [vmem:[#allocation2 + $0xe98] sm:$0xf]  ;;  %v5672_v47 = vor.u32 %v6500_v30, %v5671_v28  ;;  %3837 = vmatpush.bf16.msrb.mxu1 %v5416_v44  ;;  %v6200_v28 = vld [vmem:[#allocation2 + $0x35c] sm:$0xf]  ;;  %v5036_v30 = vor.u32 %v6336_v19, %v5033_v8 }
 0x2a4   :  { %v6564_v63 = vld [vmem:[#allocation2 + $0xeb4] sm:$0xf0]  ;;  %v6879_v36 = vld [vmem:[#allocation1 + $0x24] sm:$0xff] }
 0x2a5   :  { %v5127_v48 = vld [vmem:[#allocation2 + $0x858] sm:$0xf]  ;;  %v5928_v20 = vor.u32 %v6564_v63, %v5927_v56  ;;  %3850 = vmatpush.bf16.msrb.mxu2 %v5672_v47  ;;  %v6264_v56 = vld [vmem:[#allocation2 + $0x55c] sm:$0xf] }
 0x2a6   :  { %v6364_v16 = vld [vmem:[#allocation2 + $0x874] sm:$0xf0]  ;;  %v4745_v63 = vld [vmem:[#allocation2 + $0x578] sm:$0xf0] }
 0x2a7   :  { %v5383_v49 = vld [vmem:[#allocation2 + $0xa58] sm:$0xf]  ;;  %v5128_v41 = vor.u32 %v6364_v16, %v5127_v48  ;;  %3863 = vmatpush.bf16.msrb.mxu3 %v5928_v20  ;;  %v6328_v44 = vld [vmem:[#allocation2 + $0x75c] sm:$0xf]  ;;  %v4236_v48 = vor.u32 %v6136_v25, %v4233_v27  ;;  %v6885_v16 = vld [vmem:[#allocation1 + $0x2d] sm:$0xff]  ;;  %v4748_v51 = vor.u32 %v6264_v56, %v4745_v63 }
 0x2a8   :  { %v6428_v45 = vld [vmem:[#allocation2 + $0xa74] sm:$0xf0]  ;;  %v5001_v47 = vld [vmem:[#allocation2 + $0x778] sm:$0xf0] }
 0x2a9   :  { %v5639_v53 = vld [vmem:[#allocation2 + $0xc58] sm:$0xf]  ;;  %v5384_v55 = vor.u32 %v6428_v45, %v5383_v49  ;;  %3825 = vmatpush.bf16.msrb.mxu0 %v5128_v41  ;;  %v4492_v49 = vor.u32 %v6200_v28, %v4489_v34  ;;  %v6128_v20 = vld [vmem:[#allocation2 + $0x11c] sm:$0xf] }
 0x2aa   :  { %v6492_v52 = vld [vmem:[#allocation2 + $0xc74] sm:$0xf0]  ;;  %v4201_v45 = vld [vmem:[#allocation2 + $0x138] sm:$0xf0] }
 0x2ab   :  { %v5895_v13 = vld [vmem:[#allocation2 + $0xe58] sm:$0xf]  ;;  %v5640_v46 = vor.u32 %v6492_v52, %v5639_v53  ;;  %3838 = vmatpush.bf16.msrb.mxu1 %v5384_v55  ;;  %v6192_v53 = vld [vmem:[#allocation2 + $0x31c] sm:$0xf]  ;;  %v5004_v52 = vor.u32 %v6328_v44, %v5001_v47  ;;  %v4204_v55 = vor.u32 %v6128_v20, %v4201_v45 }
 0x2ac   :  { %v6556_v54 = vld [vmem:[#allocation2 + $0xe74] sm:$0xf0]  ;;  %v4713_v41 = vld [vmem:[#allocation2 + $0x538] sm:$0xf0] }
 0x2ad   :  { %v5095_v21 = vld [vmem:[#allocation2 + $0x818] sm:$0xf]  ;;  %v5896_v59 = vor.u32 %v6556_v54, %v5895_v13  ;;  %3851 = vmatpush.bf16.msrb.mxu2 %v5640_v46  ;;  %v4457_v13 = vld [vmem:[#allocation2 + $0x338] sm:$0xf0]  ;;  %v3620_v46 = vpop.f32.mrf.mxu0 }
 0x2ae   :  { %v6356_v22 = vld [vmem:[#allocation2 + $0x834] sm:$0xf0]  ;;  %v6256_v54 = vld [vmem:[#allocation2 + $0x51c] sm:$0xf] }
 0x2af   :  { %v5351_v26 = vld [vmem:[#allocation2 + $0xa18] sm:$0xf]  ;;  %v5096_v1 = vor.u32 %v6356_v22, %v5095_v21  ;;  %3864 = vmatpush.bf16.msrb.mxu3 %v5896_v59  ;;  %v6320_v21 = vld [vmem:[#allocation2 + $0x71c] sm:$0xf] }
 0x2b0   :  { %v6420_v60 = vld [vmem:[#allocation2 + $0xa34] sm:$0xf0]  ;;  %v4969_v22 = vld [vmem:[#allocation2 + $0x738] sm:$0xf0] }
 0x2b1   :  { %v5607_v57 = vld [vmem:[#allocation2 + $0xc18] sm:$0xf]  ;;  %v5352_v43 = vor.u32 %v6420_v60, %v5351_v26  ;;  %3826 = vmatpush.bf16.msrb.mxu0 %v5096_v1  ;;  %v4460_v26 = vor.u32 %v6192_v53, %v4457_v13  ;;  %v4716_v60 = vor.u32 %v6256_v54, %v4713_v41  ;;  %v6184_v59 = vld [vmem:[#allocation2 + $0x2dc] sm:$0xf] }
 0x2b2   :  { %v6484_v61 = vld [vmem:[#allocation2 + $0xc34] sm:$0xf0]  ;;  %v6312_v0 = vld [vmem:[#allocation2 + $0x6dc] sm:$0xf]  ;;  %v4428_v3 = vor.u32 %v6184_v59, %v4425_v50 }
 0x2b3   :  { %v5863_v2 = vld [vmem:[#allocation2 + $0xe18] sm:$0xf]  ;;  %v5608_v7 = vor.u32 %v6484_v61, %v5607_v57  ;;  %3839 = vmatpush.bf16.msrb.mxu1 %v5352_v43  ;;  %v6120_v57 = vld [vmem:[#allocation2 + $0xdc] sm:$0xf]  ;;  %v3621_v61 = vadd.f32 %v3620_v46, %v6874_v37  ;;  %v4684_v43 = vor.u32 %v6248_v35, %v4681_v18 }
 0x2b4   :  { %v6548_v62 = vld [vmem:[#allocation2 + $0xe34] sm:$0xf0]  ;;  %3827 = vmatmul.bf16.vlgmr.msrb.gmra.mxu0 %v6879_v36  ;;  %v4937_v1 = vld [vmem:[#allocation2 + $0x6f8] sm:$0xf0]  ;;  %v4172_v40 = vor.u32 %v6120_v57, %v4169_v58 }
 0x2b5   :  { %v5864_v29 = vor.u32 %v6548_v62, %v5863_v2  ;;  %3852 = vmatpush.bf16.msrb.mxu2 %v5608_v7  ;;  %3871 = vmatpush.bf16.msra.mxu0 %v4300_v9  ;;  %v6882_v42 = vld [vmem:[#allocation1 + $0x3f] sm:$0xff]  ;;  %v3633_v2 = vpop.f32.mrf.mxu1  ;;  %v4972_v62 = vor.u32 %v6320_v21, %v4969_v22  ;;  %v4940_v37 = vor.u32 %v6312_v0, %v4937_v1  ;;  %v3622_v15 = vpop.f32.mrf.mxu0 }
 0x2b6   :  { %3840 = vmatmul.bf16.vlgmr.msrb.gmra.mxu1 %v6885_v16  ;;  %v3634_v39 = vadd.f32 %v3633_v2, %v3621_v61  ;;  %v6112_v7 = vld [vmem:[#allocation2 + $0x9c] sm:$0xf]  ;;  %v3661_v22 = vpop.f32.mrf.mxu3 }
 0x2b7   :  { %3865 = vmatpush.bf16.msrb.mxu3 %v5864_v29  ;;  %3884 = vmatpush.bf16.msra.mxu1 %v4556_v10  ;;  %v4137_v5 = vld [vmem:[#allocation2 + $0xb8] sm:$0xf0]  ;;  %v3646_v29 = vpop.f32.mrf.mxu2 }
 0x2b8   :  { %3853 = vmatmul.bf16.vlgmr.msrb.gmra.mxu2 %v6876_v33  ;;  %v6176_v6 = vld [vmem:[#allocation2 + $0x29c] sm:$0xf]  ;;  %v3647_v12 = vadd.f32 %v3646_v29, %v3634_v39  ;;  %v4140_v38 = vor.u32 %v6112_v7, %v4137_v5 }
 0x2b9   :  { %3897 = vmatpush.bf16.msra.mxu2 %v4812_v11  ;;  %3872 = vmatpush.bf16.msra.mxu0 %v4268_v24  ;;  %v4393_v9 = vld [vmem:[#allocation2 + $0x2b8] sm:$0xf0] }
 0x2ba   :  { %3866 = vmatmul.bf16.vlgmr.msrb.gmra.mxu3 %v6882_v42  ;;  %v6240_v10 = vld [vmem:[#allocation2 + $0x49c] sm:$0xf]  ;;  %v6889_v17 = vadd.f32 %v3659_v31, %v3647_v12  ;;  %v4396_v19 = vor.u32 %v6176_v6, %v4393_v9 }
 0x2bb   :  { %3910 = vmatpush.bf16.msra.mxu3 %v5068_v14  ;;  %3885 = vmatpush.bf16.msra.mxu1 %v4524_v23  ;;  %v4649_v11 = vld [vmem:[#allocation2 + $0x4b8] sm:$0xf0] }
 0x2bc   :  { %v6304_v32 = vld [vmem:[#allocation2 + $0x69c] sm:$0xf]  ;;  %v4652_v8 = vor.u32 %v6240_v10, %v4649_v11 }
 0x2bd   :  { %3898 = vmatpush.bf16.msra.mxu2 %v4780_v4  ;;  %3873 = vmatpush.bf16.msra.mxu0 %v4236_v48  ;;  %v4905_v14 = vld [vmem:[#allocation2 + $0x6b8] sm:$0xf0]  ;;  %v3635_v25 = vpop.f32.mrf.mxu1 }
 0x2be   :  { %v6104_v24 = vld [vmem:[#allocation2 + $0x5c] sm:$0xf]  ;;  %v4908_v27 = vor.u32 %v6304_v32, %v4905_v14  ;;  %v6632_v25 = vld [vmem:[#allocation1 + $0x1b] sm:$0xff] }
 0x2bf   :  { %3911 = vmatpush.bf16.msra.mxu3 %v5036_v30  ;;  %3886 = vmatpush.bf16.msra.mxu1 %v4492_v49  ;;  %v4105_v23 = vld [vmem:[#allocation2 + $0x78] sm:$0xf0] }
 0x2c0   :  { %v6168_v4 = vld [vmem:[#allocation2 + $0x25c] sm:$0xf]  ;;  %v4108_v44 = vor.u32 %v6104_v24, %v4105_v23 }
 0x2c1   :  { %3899 = vmatpush.bf16.msra.mxu2 %v4748_v51  ;;  %3874 = vmatpush.bf16.msra.mxu0 %v4204_v55  ;;  %v4361_v28 = vld [vmem:[#allocation2 + $0x278] sm:$0xf0] }
 0x2c2   :  { %v6232_v30 = vld [vmem:[#allocation2 + $0x45c] sm:$0xf]  ;;  %v4364_v49 = vor.u32 %v6168_v4, %v4361_v28  ;;  %v6633_v28 = vld [vmem:[#allocation1 + $0x9] sm:$0xff] }
 0x2c3   :  { %3912 = vmatpush.bf16.msra.mxu3 %v5004_v52  ;;  %3887 = vmatpush.bf16.msra.mxu1 %v4460_v26  ;;  %v4617_v34 = vld [vmem:[#allocation2 + $0x478] sm:$0xf0]  ;;  %v3648_v52 = vpop.f32.mrf.mxu2 }
 0x2c4   :  { %v6296_v56 = vld [vmem:[#allocation2 + $0x65c] sm:$0xf]  ;;  %v4620_v51 = vor.u32 %v6232_v30, %v4617_v34  ;;  %v3672_v52 = vpop.f32.mrf.mxu0 }
 0x2c5   :  { %3900 = vmatpush.bf16.msra.mxu2 %v4716_v60  ;;  %3875 = vmatpush.bf16.msra.mxu0 %v4172_v40  ;;  %v4873_v63 = vld [vmem:[#allocation2 + $0x678] sm:$0xf0] }
 0x2c6   :  { %v6096_v47 = vld [vmem:[#allocation2 + $0x1c] sm:$0xf]  ;;  %v4876_v13 = vor.u32 %v6296_v56, %v4873_v63 }
 0x2c7   :  { %3913 = vmatpush.bf16.msra.mxu3 %v4972_v62  ;;  %3888 = vmatpush.bf16.msra.mxu1 %v4428_v3  ;;  %v4073_v48 = vld [vmem:[#allocation2 + $0x38] sm:$0xf0] }
 0x2c8   :  { %v6160_v20 = vld [vmem:[#allocation2 + $0x21c] sm:$0xf]  ;;  %v4076_v60 = vor.u32 %v6096_v47, %v4073_v48 }
 0x2c9   :  { %3901 = vmatpush.bf16.msra.mxu2 %v4684_v43  ;;  %3876 = vmatpush.bf16.msra.mxu0 %v4140_v38  ;;  %v4329_v45 = vld [vmem:[#allocation2 + $0x238] sm:$0xf0]  ;;  %v6630_v38 = vld [vmem:[#allocation1 + $0x12] sm:$0xff] }
 0x2ca   :  { %v6224_v53 = vld [vmem:[#allocation2 + $0x41c] sm:$0xf]  ;;  %v4332_v61 = vor.u32 %v6160_v20, %v4329_v45 }
 0x2cb   :  { %3914 = vmatpush.bf16.msra.mxu3 %v4940_v37  ;;  %3889 = vmatpush.bf16.msra.mxu1 %v4396_v19  ;;  %v4585_v54 = vld [vmem:[#allocation2 + $0x438] sm:$0xf0] }
 0x2cc   :  { %v6288_v41 = vld [vmem:[#allocation2 + $0x61c] sm:$0xf]  ;;  %v4588_v2 = vor.u32 %v6224_v53, %v4585_v54 }
 0x2cd   :  { %3902 = vmatpush.bf16.msra.mxu2 %v4652_v8  ;;  %v4841_v21 = vld [vmem:[#allocation2 + $0x638] sm:$0xf0]  ;;  %3877 = vmatpush.bf16.msra.mxu0 %v4108_v44 }
 0x2ce   :  { %v6408_v55 = vld [vmem:[#allocation2 + $0x9dc] sm:$0xf]  ;;  %v4844_v35 = vor.u32 %v6288_v41, %v4841_v21 }
 0x2cf   :  { %3915 = vmatpush.bf16.msra.mxu3 %v4908_v27  ;;  %v5321_v46 = vld [vmem:[#allocation2 + $0x9f8] sm:$0xf0]  ;;  %3890 = vmatpush.bf16.msra.mxu1 %v4364_v49 }
 0x2d0   :  { %v6472_v26 = vld [vmem:[#allocation2 + $0xbdc] sm:$0xf]  ;;  %v5324_v18 = vor.u32 %v6408_v55, %v5321_v46  ;;  %v3685_v55 = vpop.f32.mrf.mxu1 }
 0x2d1   :  { %v5577_v57 = vld [vmem:[#allocation2 + $0xbf8] sm:$0xf0]  ;;  %3903 = vmatpush.bf16.msra.mxu2 %v4620_v51  ;;  %3878 = vmatpush.bf16.msra.mxu0 %v4076_v60 }
 0x2d2   :  { %v6536_v58 = vld [vmem:[#allocation2 + $0xddc] sm:$0xf]  ;;  %v5580_v0 = vor.u32 %v6472_v26, %v5577_v57 }
 0x2d3   :  { %v5833_v59 = vld [vmem:[#allocation2 + $0xdf8] sm:$0xf0]  ;;  %3916 = vmatpush.bf16.msra.mxu3 %v4876_v13  ;;  %3891 = vmatpush.bf16.msra.mxu1 %v4332_v61 }
 0x2d4   :  { %v6600_v62 = vld [vmem:[#allocation2 + $0xfdc] sm:$0xf]  ;;  %v5836_v1 = vor.u32 %v6536_v58, %v5833_v59  ;;  %v3686_v58 = vadd.f32 %v3685_v55, %v3672_v52 }
 0x2d5   :  { %v6089_v50 = vld [vmem:[#allocation2 + $0xff8] sm:$0xf0]  ;;  %3904 = vmatpush.bf16.msra.mxu2 %v4588_v2  ;;  %3923 = vmatpush.bf16.msrb.mxu0 %v5324_v18 }
 0x2d6   :  { %v6400_v39 = vld [vmem:[#allocation2 + $0x99c] sm:$0xf]  ;;  %v6092_v43 = vor.u32 %v6600_v62, %v6089_v50  ;;  %3892 = vmatmul.bf16.vlgmr.msra.gmra.mxu1 %v6633_v28 }
 0x2d7   :  { %v5289_v40 = vld [vmem:[#allocation2 + $0x9b8] sm:$0xf0]  ;;  %3917 = vmatpush.bf16.msra.mxu3 %v4844_v35  ;;  %3936 = vmatpush.bf16.msrb.mxu1 %v5580_v0 }
 0x2d8   :  { %v6464_v3 = vld [vmem:[#allocation2 + $0xb9c] sm:$0xf]  ;;  %v5292_v9 = vor.u32 %v6400_v39, %v5289_v40  ;;  %3905 = vmatmul.bf16.vlgmr.msra.gmra.mxu2 %v6630_v38  ;;  %v3687_v38 = vpop.f32.mrf.mxu1 }
 0x2d9   :  { %v5545_v7 = vld [vmem:[#allocation2 + $0xbb8] sm:$0xf0]  ;;  %3949 = vmatpush.bf16.msrb.mxu2 %v5836_v1  ;;  %v3698_v1 = vpop.f32.mrf.mxu2 }
 0x2da   :  { %v6528_v5 = vld [vmem:[#allocation2 + $0xd9c] sm:$0xf]  ;;  %v5548_v10 = vor.u32 %v6464_v3, %v5545_v7  ;;  %3918 = vmatmul.bf16.vlgmr.msra.gmra.mxu3 %v6632_v25  ;;  %3924 = vmatpush.bf16.msrb.mxu0 %v5292_v9  ;;  %v3699_v7 = vadd.f32 %v3698_v1, %v3686_v58 }
 0x2db   :  { %v5801_v6 = vld [vmem:[#allocation2 + $0xdb8] sm:$0xf0]  ;;  %3962 = vmatpush.bf16.msrb.mxu3 %v6092_v43 }
 0x2dc   :  { %v6592_v29 = vld [vmem:[#allocation2 + $0xf9c] sm:$0xf]  ;;  %v5804_v11 = vor.u32 %v6528_v5, %v5801_v6  ;;  %3937 = vmatpush.bf16.msrb.mxu1 %v5548_v10  ;;  %v3711_v5 = vpop.f32.mrf.mxu3  ;;  %v3674_v10 = vpop.f32.mrf.mxu0 }
 0x2dd   :  { %v6057_v37 = vld [vmem:[#allocation2 + $0xfb8] sm:$0xf0]  ;;  %v3712_v9 = vadd.f32 %v3711_v5, %v3699_v7 }
 0x2de   :  { %v6392_v12 = vld [vmem:[#allocation2 + $0x95c] sm:$0xf]  ;;  %v6060_v14 = vor.u32 %v6592_v29, %v6057_v37  ;;  %3950 = vmatpush.bf16.msrb.mxu2 %v5804_v11 }
 0x2df   :  { %v5257_v31 = vld [vmem:[#allocation2 + $0x978] sm:$0xf0] }
 0x2e0   :  { %v6456_v32 = vld [vmem:[#allocation2 + $0xb5c] sm:$0xf]  ;;  %v5260_v27 = vor.u32 %v6392_v12, %v5257_v31  ;;  %3963 = vmatpush.bf16.msrb.mxu3 %v6060_v14 }
 0x2e1   :  { %v5513_v15 = vld [vmem:[#allocation2 + $0xb78] sm:$0xf0] }
 0x2e2   :  { %v6520_v19 = vld [vmem:[#allocation2 + $0xd5c] sm:$0xf]  ;;  %v5516_v30 = vor.u32 %v6456_v32, %v5513_v15  ;;  %3925 = vmatpush.bf16.msrb.mxu0 %v5260_v27 }
 0x2e3   :  { %v5769_v8 = vld [vmem:[#allocation2 + $0xd78] sm:$0xf0] }
 0x2e4   :  { %v6584_v24 = vld [vmem:[#allocation2 + $0xf5c] sm:$0xf]  ;;  %v5772_v34 = vor.u32 %v6520_v19, %v5769_v8  ;;  %3938 = vmatpush.bf16.msrb.mxu1 %v5516_v30 }
 0x2e5   :  { %v6025_v23 = vld [vmem:[#allocation2 + $0xf78] sm:$0xf0] }
 0x2e6   :  { %v6631_v4 = vld [vmem:[#allocation1] sm:$0xff]  ;;  %v6028_v47 = vor.u32 %v6584_v24, %v6025_v23  ;;  %3951 = vmatpush.bf16.msrb.mxu2 %v5772_v34 }
 0x2e7   :  { %3879 = vmatmul.bf16.vlgmr.msra.gmra.mxu0 %v6631_v4  ;;  %v6384_v56 = vld [vmem:[#allocation2 + $0x91c] sm:$0xf] }
 0x2e8   :  { %v5225_v63 = vld [vmem:[#allocation2 + $0x938] sm:$0xf0]  ;;  %3964 = vmatpush.bf16.msrb.mxu3 %v6028_v47 }
 0x2e9   :  { %v6448_v44 = vld [vmem:[#allocation2 + $0xb1c] sm:$0xf]  ;;  %v5228_v53 = vor.u32 %v6384_v56, %v5225_v63  ;;  %v3700_v63 = vpop.f32.mrf.mxu2 }
 0x2ea   :  { %v5481_v48 = vld [vmem:[#allocation2 + $0xb38] sm:$0xf0] }
 0x2eb   :  { %v6512_v49 = vld [vmem:[#allocation2 + $0xd1c] sm:$0xf]  ;;  %v5484_v13 = vor.u32 %v6448_v44, %v5481_v48  ;;  %3926 = vmatpush.bf16.msrb.mxu0 %v5228_v53 }
 0x2ec   :  { %v5737_v51 = vld [vmem:[#allocation2 + $0xd38] sm:$0xf0] }
 0x2ed   :  { %v6576_v20 = vld [vmem:[#allocation2 + $0xf1c] sm:$0xf]  ;;  %v5740_v54 = vor.u32 %v6512_v49, %v5737_v51  ;;  %3939 = vmatpush.bf16.msrb.mxu1 %v5484_v13  ;;  %v3713_v51 = vpop.f32.mrf.mxu3 }
 0x2ee   :  { %v5993_v45 = vld [vmem:[#allocation2 + $0xf38] sm:$0xf0] }
 0x2ef   :  { %v6376_v41 = vld [vmem:[#allocation2 + $0x8dc] sm:$0xf]  ;;  %v5996_v46 = vor.u32 %v6576_v20, %v5993_v45  ;;  %3952 = vmatpush.bf16.msrb.mxu2 %v5740_v54 }
 0x2f0   :  { %v5193_v21 = vld [vmem:[#allocation2 + $0x8f8] sm:$0xf0] }
 0x2f1   :  { %v6440_v22 = vld [vmem:[#allocation2 + $0xadc] sm:$0xf]  ;;  %v5196_v2 = vor.u32 %v6376_v41, %v5193_v21  ;;  %3965 = vmatpush.bf16.msrb.mxu3 %v5996_v46  ;;  %v3724_v41 = vpop.f32.mrf.mxu0  ;;  %v3750_v46 = vpop.f32.mrf.mxu2 }
 0x2f2   :  { %v5449_v26 = vld [vmem:[#allocation2 + $0xaf8] sm:$0xf0]  ;;  %v3725_v21 = vadd.f32 %v3724_v41, %v3712_v9 }
 0x2f3   :  { %v6504_v60 = vld [vmem:[#allocation2 + $0xcdc] sm:$0xf]  ;;  %v5452_v62 = vor.u32 %v6440_v22, %v5449_v26  ;;  %3927 = vmatpush.bf16.msrb.mxu0 %v5196_v2  ;;  %v3737_v22 = vpop.f32.mrf.mxu1 }
 0x2f4   :  { %v5705_v57 = vld [vmem:[#allocation2 + $0xcf8] sm:$0xf0]  ;;  %v3738_v55 = vadd.f32 %v3737_v22, %v3725_v21 }
 0x2f5   :  { %v6568_v59 = vld [vmem:[#allocation2 + $0xedc] sm:$0xf]  ;;  %v5708_v50 = vor.u32 %v6504_v60, %v5705_v57  ;;  %3940 = vmatpush.bf16.msrb.mxu1 %v5452_v62  ;;  %v3763_v60 = vpop.f32.mrf.mxu3 }
 0x2f6   :  { %v5961_v61 = vld [vmem:[#allocation2 + $0xef8] sm:$0xf0]  ;;  %v3751_v26 = vadd.f32 %v3750_v46, %v3738_v55 }
 0x2f7   :  { %v6368_v35 = vld [vmem:[#allocation2 + $0x89c] sm:$0xf]  ;;  %v5964_v39 = vor.u32 %v6568_v59, %v5961_v61  ;;  %3953 = vmatpush.bf16.msrb.mxu2 %v5708_v50 }
 0x2f8   :  { %v5161_v18 = vld [vmem:[#allocation2 + $0x8b8] sm:$0xf0]  ;;  %v3764_v57 = vadd.f32 %v3763_v60, %v3751_v26 }
 0x2f9   :  { %v6432_v0 = vld [vmem:[#allocation2 + $0xa9c] sm:$0xf]  ;;  %v5164_v37 = vor.u32 %v6368_v35, %v5161_v18  ;;  %3966 = vmatpush.bf16.msrb.mxu3 %v5964_v39  ;;  %v3726_v58 = vpop.f32.mrf.mxu0  ;;  %v3752_v2 = vpop.f32.mrf.mxu2 }
 0x2fa   :  { %v5417_v40 = vld [vmem:[#allocation2 + $0xab8] sm:$0xf0]  ;;  %v3986_v61 = vrot.slane %v3764_v57, 6 }
 0x2fb   :  { %v6496_v3 = vld [vmem:[#allocation2 + $0xc9c] sm:$0xf]  ;;  %v5420_v11 = vor.u32 %v6432_v0, %v5417_v40  ;;  %3928 = vmatpush.bf16.msrb.mxu0 %v5164_v37  ;;  %v3739_v59 = vpop.f32.mrf.mxu1 }
 0x2fc   :  { %v5673_v43 = vld [vmem:[#allocation2 + $0xcb8] sm:$0xf0] }
 0x2fd   :  { %v6560_v6 = vld [vmem:[#allocation2 + $0xe9c] sm:$0xf]  ;;  %v5676_v12 = vor.u32 %v6496_v3, %v5673_v43  ;;  %3941 = vmatpush.bf16.msrb.mxu1 %v5420_v11 }
 0x2fe   :  { %v5929_v29 = vld [vmem:[#allocation2 + $0xeb8] sm:$0xf0] }
 0x2ff   :  { %v6360_v31 = vld [vmem:[#allocation2 + $0x85c] sm:$0xf]  ;;  %v5932_v15 = vor.u32 %v6560_v6, %v5929_v29  ;;  %3954 = vmatpush.bf16.msrb.mxu2 %v5676_v12 }
 0x300   :  { %v5129_v32 = vld [vmem:[#allocation2 + $0x878] sm:$0xf0] }
 0x301   :  { %v6424_v14 = vld [vmem:[#allocation2 + $0xa5c] sm:$0xf]  ;;  %v5132_v25 = vor.u32 %v6360_v31, %v5129_v32  ;;  %3967 = vmatpush.bf16.msrb.mxu3 %v5932_v15  ;;  %v3776_v62 = vpop.f32.mrf.mxu0 }
 0x302   :  { %v5385_v19 = vld [vmem:[#allocation2 + $0xa78] sm:$0xf0] }
 0x303   :  { %v6488_v8 = vld [vmem:[#allocation2 + $0xc5c] sm:$0xf]  ;;  %v5388_v27 = vor.u32 %v6424_v14, %v5385_v19  ;;  %3929 = vmatpush.bf16.msrb.mxu0 %v5132_v25 }
 0x304   :  { %v5641_v24 = vld [vmem:[#allocation2 + $0xc78] sm:$0xf0] }
 0x305   :  { %v6552_v23 = vld [vmem:[#allocation2 + $0xe5c] sm:$0xf]  ;;  %v5644_v28 = vor.u32 %v6488_v8, %v5641_v24  ;;  %3942 = vmatpush.bf16.msrb.mxu1 %v5388_v27 }
 0x306   :  { %v5897_v4 = vld [vmem:[#allocation2 + $0xe78] sm:$0xf0] }
 0x307   :  { %v6352_v30 = vld [vmem:[#allocation2 + $0x81c] sm:$0xf]  ;;  %v5900_v44 = vor.u32 %v6552_v23, %v5897_v4  ;;  %3955 = vmatpush.bf16.msrb.mxu2 %v5644_v28 }
 0x308   :  { %v5097_v34 = vld [vmem:[#allocation2 + $0x838] sm:$0xf0] }
 0x309   :  { %v6416_v56 = vld [vmem:[#allocation2 + $0xa1c] sm:$0xf]  ;;  %v5100_v53 = vor.u32 %v6352_v30, %v5097_v34  ;;  %3968 = vmatpush.bf16.msrb.mxu3 %v5900_v44  ;;  %v3778_v1 = vpop.f32.mrf.mxu0  ;;  %v6634_v30 = vld [vmem:[#allocation4] sm:$0xff] }
 0x30a   :  { %v5353_v47 = vld [vmem:[#allocation2 + $0xa38] sm:$0xf0]  ;;  %v4016_v34 = vperm.slane %v6634_v30, 5  ;;  %v4018_v63 = vperm.slane %v6634_v30, 7 }
 0x30b   :  { %v6480_v48 = vld [vmem:[#allocation2 + $0xc1c] sm:$0xf]  ;;  %v5356_v52 = vor.u32 %v6416_v56, %v5353_v47  ;;  %3930 = vmatpush.bf16.msrb.mxu0 %v5100_v53  ;;  %v4017_v56 = vperm.slane %v6634_v30, 6 }
 0x30c   :  { %v5609_v49 = vld [vmem:[#allocation2 + $0xc38] sm:$0xf0] }
 0x30d   :  { %v6544_v20 = vld [vmem:[#allocation2 + $0xe1c] sm:$0xf]  ;;  %v5612_v13 = vor.u32 %v6480_v48, %v5609_v49  ;;  %3943 = vmatpush.bf16.msrb.mxu1 %v5356_v52  ;;  %v4015_v48 = vperm.slane %v6634_v30, 4  ;;  %v4022_v49 = vrot.slane %v4016_v34, 6 }
 0x30e   :  { %v5865_v45 = vld [vmem:[#allocation2 + $0xe38] sm:$0xf0]  ;;  %3931 = vmatmul.bf16.vlgmr.msrb.gmra.mxu0 %v6879_v36  ;;  %v3995_v36 = vsel %vm3989_vm0, %v6889_v17, %v3986_v61 }
 0x30f   :  { %v5868_v54 = vor.u32 %v6544_v20, %v5865_v45  ;;  %3956 = vmatpush.bf16.msrb.mxu2 %v5612_v13  ;;  %v4023_v20 = vrot.slane %v4017_v56, 4  ;;  %v4024_v45 = vrot.slane %v4018_v63, 2  ;;  %v4028_v22 = vsel %vm3989_vm0, %v4015_v48, %v4022_v49 }
 0x310   :  { %3944 = vmatmul.bf16.vlgmr.msrb.gmra.mxu1 %v6885_v16  ;;  %v3765_v16 = vpop.f32.mrf.mxu3 }
 0x311   :  { %3969 = vmatpush.bf16.msrb.mxu3 %v5868_v54  ;;  %v4029_v55 = vsel %vm3991_vm1, %v4023_v20, %v4024_v45 }
 0x312   :  { %3957 = vmatmul.bf16.vlgmr.msrb.gmra.mxu2 %v6876_v33  ;;  %v3789_v33 = vpop.f32.mrf.mxu1  ;;  %v4030_v57 = vsel %vm3993_vm2, %v4028_v22, %v4029_v55 }
 0x313   :  { %v3790_v50 = vadd.f32 %v3789_v33, %v3776_v62 }
 0x314   :  { %3970 = vmatmul.bf16.vlgmr.msrb.gmra.mxu3 %v6882_v42  ;;  %v3802_v42 = vpop.f32.mrf.mxu2 }
 0x315   :  { %v3803_v35 = vadd.f32 %v3802_v42, %v3790_v50 }
 0x318   :  { %v3815_v18 = vpop.f32.mrf.mxu3 }
 0x319   :  { %v3816_v0 = vadd.f32 %v3815_v18, %v3803_v35 }
 0x31a   :  { %v3791_v39 = vpop.f32.mrf.mxu1 }
 0x31c   :  { %v3804_v40 = vpop.f32.mrf.mxu2 }
 0x320   :  { %v3817_v3 = vpop.f32.mrf.mxu3 }
 0x331   :  { %v3828_v43 = vpop.f32.mrf.mxu0 }
 0x332   :  { %v3829_v8 = vadd.f32 %v3828_v43, %v3816_v0 }
 0x333   :  { %v3841_v7 = vpop.f32.mrf.mxu1 }
 0x334   :  { %v3842_v23 = vadd.f32 %v3841_v7, %v3829_v8 }
 0x339   :  { %v3830_v29 = vpop.f32.mrf.mxu0 }
 0x33b   :  { %v3854_v5 = vpop.f32.mrf.mxu2  ;;  %v3843_v37 = vpop.f32.mrf.mxu1 }
 0x33c   :  { %v3855_v44 = vadd.f32 %v3854_v5, %v3842_v23 }
 0x33d   :  { %v3867_v6 = vpop.f32.mrf.mxu3 }
 0x33e   :  { %v3868_v53 = vadd.f32 %v3867_v6, %v3855_v44 }
 0x340   :  { %v3987_v46 = vrot.slane %v3868_v53, 4 }
 0x343   :  { %v3856_v17 = vpop.f32.mrf.mxu2 }
 0x345   :  { %v3869_v9 = vpop.f32.mrf.mxu3 }
 0x353   :  { %v3893_v11 = vpop.f32.mrf.mxu1 }
 0x35b   :  { %v3906_v12 = vpop.f32.mrf.mxu2  ;;  %v3895_v14 = vpop.f32.mrf.mxu1 }
 0x35d   :  { %v3919_v31 = vpop.f32.mrf.mxu3 }
 0x363   :  { %v3908_v38 = vpop.f32.mrf.mxu2 }
 0x364   :  { %v3880_v10 = vpop.f32.mrf.mxu0 }
 0x365   :  { %v3921_v15 = vpop.f32.mrf.mxu3  ;;  %v3894_v19 = vadd.f32 %v3893_v11, %v3880_v10 }
 0x367   :  { %v3907_v24 = vadd.f32 %v3906_v12, %v3894_v19 }
 0x369   :  { %v3920_v4 = vadd.f32 %v3919_v31, %v3907_v24 }
 0x36c   :  { %v3882_v32 = vpop.f32.mrf.mxu0 }
 0x38b   :  { %v3932_v25 = vpop.f32.mrf.mxu0 }
 0x38c   :  { %v3933_v28 = vadd.f32 %v3932_v25, %v3920_v4 }
 0x38d   :  { %v3945_v27 = vpop.f32.mrf.mxu1 }
 0x38e   :  { %v3946_v47 = vadd.f32 %v3945_v27, %v3933_v28 }
 0x393   :  { %v3934_v54 = vpop.f32.mrf.mxu0 }
 0x395   :  { %v3958_v51 = vpop.f32.mrf.mxu2  ;;  %v3947_v41 = vpop.f32.mrf.mxu1 }
 0x396   :  { %v3959_v52 = vadd.f32 %v3958_v51, %v3946_v47 }
 0x397   :  { %v3971_v13 = vpop.f32.mrf.mxu3 }
 0x398   :  { %v3972_v21 = vadd.f32 %v3971_v13, %v3959_v52 }
 0x39a   :  { %v3988_v26 = vrot.slane %v3972_v21, 2 }
 0x39c   :  { %v3996_v60 = vsel %vm3991_vm1, %v3987_v46, %v3988_v26 }
 0x39d   :  { %v3997_v58 = vsel %vm3993_vm2, %v3995_v36, %v3996_v60  ;;  %v3960_v59 = vpop.f32.mrf.mxu2 }
 0x39e   :  { %v4034_v2 = vadd.f32 %v4030_v57, %v3997_v58 }
 0x39f   :  { %v3973_v61 = vpop.f32.mrf.mxu3 }
 0x3a0   :  { %v4036_v16 = vmax.f32 %v4034_v2, 0.0 }
 0x3a2   :  { %4038 = vst [vmem:[%s6908_s3 + $0x8] sm:$0xff] %v4036_v16 }
 0x3a3   :  { %4043 = vsyncpa [#allocation3], 1 }
 0x3a4   :  { %4044 = vsyncpa [#allocation5], 1 }

</bundles_post_ra>
